<compile_context>
chip_gen: v6e
topology: v6e:2x2x1
jax: 0.10.0
libtpu: 0.0.40
codegen_flags: <defaults>
</compile_context>

<pallas_src>
import functools
import numpy as np
import jax
import jax.numpy as jnp
from jax.experimental import pallas as pl
from jax.experimental.pallas import tpu as pltpu

# ----- configuration matching SchNet.__init__ semantics -----------------------
NUM_LAYERS   = 2          # num_layers
EMB_DIM      = 32         # emb_dim  (hidden_feats = [emb_dim] * num_layers)
OUT_DIM      = 8          # out_dim
EFEAT_DIM    = 3          # efeat_dim (3-D displacement vectors per edge)
NUM_NTYPES   = 2          # SchNetGNN(num_node_types=2)
CUTOFF       = 51.0
GAP          = 0.1
NUM_CENTERS  = int(np.ceil((CUTOFF - 0.0) / GAP))   # 510 RBF centers
RBF_PAD      = 512        # pad RBF dim to a lane/sublane-friendly size
GAMMA        = 1.0 / GAP
LOG2         = float(np.log(2.0))
N_DEC_HIDDEN = 4          # node_decoder: 4 x (Linear + PReLU) then final Linear
EDGE_TILE    = 512        # max edges per grid step (actual tile derived from E)
RBF_CACHE_MAX_BYTES = 8 * 1024 * 1024   # cache RBF across layers only when it fits
# NOTE: hidden_dim / activation / norm_type / dropout are unused by the reference
# forward pass, so they are not modelled here.
# TODO(synk): dgllife RBFExpansion center spacing (linspace vs arange) is ambiguous in
# the spec; linspace(0, cutoff, ceil(cutoff/gap)) is used here, matching the JAX ref.


def _ssp(x):
    # shifted softplus: softplus(x) - log(2)
    return jnp.maximum(x, 0.0) + jnp.log(1.0 + jnp.exp(-jnp.abs(x))) - LOG2


def _schnet_kernel(n_pad, te, cache_rbf,
                   h0_ref, d_ref, sidx_ref, didx_ref, cen_ref,
                   we1_ref, be1_ref, we2_ref, be2_ref,
                   wn_ref, bn_ref, wco_ref, bco_ref, wpo_ref, bpo_ref,
                   wd_ref, bd_ref, wout_ref, bout_ref, alpha_ref,
                   out_ref,
                   h_scr, hv_scr, agg_scr, rbf_scr):
    f32, bf16 = jnp.float32, jnp.bfloat16
    layer = pl.program_id(0)
    et = pl.program_id(1)
    last_layer = pl.num_programs(0) - 1
    last_et = pl.num_programs(1) - 1

    # ---- once: load embedded node types (kept f32) into the carried scratch -------
    @pl.when(jnp.logical_and(layer == 0, et == 0))
    def _():
        h_scr[...] = h0_ref[...]                                    # (D, n_pad) f32

    # ---- per layer, first edge tile: CFConv.project_node + zero the aggregator ----
    @pl.when(et == 0)
    def _():
        hv = jnp.dot(wn_ref[...], h_scr[...].astype(bf16),
                     preferred_element_type=f32) + bn_ref[...]
        hv_scr[...] = hv.astype(bf16)
        agg_scr[...] = jnp.zeros_like(agg_scr)

    # ---- RBF expansion, feature-major (RBF_PAD, te); d and centers pre-scaled by ---
    # sqrt(gamma) host-side, padded centers = 1e9 so their rows are exactly 0.
    def _rbf():
        diff = d_ref[...] - cen_ref[...]                            # (RBF_PAD, te)
        return jnp.exp(-(diff * diff)).astype(bf16)

    if cache_rbf:
        # rbf is layer-invariant: compute on layer 0 only, reuse on later layers.
        @pl.when(layer == 0)
        def _():
            rbf_scr[et] = _rbf()
        rbf_t = rbf_scr[et]
    else:
        rbf_t = _rbf()

    # ---- edge filter MLP (transposed): he^T = ssp(We2^T @ ssp(We1^T rbf^T + b1)+b2)
    he = _ssp(jnp.dot(we1_ref[...], rbf_t,
                      preferred_element_type=f32) + be1_ref[...])
    he = _ssp(jnp.dot(we2_ref[...], he.astype(bf16),
                      preferred_element_type=f32) + be2_ref[...])   # (D, te) f32

    # ---- one-hot incidence built on-chip (exact in bf16). Padded edges carry
    # index -1 -> all-zero one-hot rows/cols, so their gather AND scatter vanish
    # (the nonzero he column of a padded edge is multiplied by the zero gather).
    src_ohT = (jax.lax.broadcasted_iota(jnp.int32, (n_pad, te), 0)
               == sidx_ref[...]).astype(bf16)                       # (n_pad, te)
    dst_oh = (jax.lax.broadcasted_iota(jnp.int32, (te, n_pad), 1)
              == didx_ref[...]).astype(bf16)                        # (te, n_pad)

    # gather * filter, then scatter-add (segment sum) — lane-dense MXU matmuls.
    # (messages are rounded to bf16 for the scatter matmul, as on the MXU path.)
    m = jnp.dot(hv_scr[...], src_ohT, preferred_element_type=f32) * he   # (D, te)
    agg_scr[...] += jnp.dot(m.astype(bf16), dst_oh, preferred_element_type=f32)

    # ---- per layer, last edge tile: CFConv.project_out + Interaction.project_out ---
    @pl.when(et == last_et)
    def _():
        hc = _ssp(jnp.dot(wco_ref[...], agg_scr[...].astype(bf16),
                          preferred_element_type=f32) + bco_ref[...])
        h_scr[...] = jnp.dot(wpo_ref[...], hc.astype(bf16),
                             preferred_element_type=f32) + bpo_ref[...]

    # ---- very last grid step: node decoder (4 x Linear+PReLU, then Linear) --------
    @pl.when(jnp.logical_and(layer == last_layer, et == last_et))
    def _():
        x = h_scr[...]
        for dd in range(N_DEC_HIDDEN):
            x = jnp.dot(wd_ref[dd], x.astype(bf16),
                        preferred_element_type=f32) + bd_ref[dd]
            a = alpha_ref[dd]                        # SMEM scalar PReLU slope
            x = jnp.where(x >= 0.0, x, a * x)
        out_ref[...] = jnp.dot(wout_ref[...], x.astype(bf16),
                               preferred_element_type=f32) + bout_ref[...]


def init_params(key):
    ks = jax.random.split(key, 16)
    def w(k, shape, scale=0.1):
        return (scale * jax.random.normal(k, shape)).astype(jnp.float32)
    L, D = NUM_LAYERS, EMB_DIM
    p = {}
    p["embed"] = w(ks[0], (NUM_NTYPES, D), 1.0)
    p["we1"] = w(ks[1], (L, RBF_PAD, D))
    p["we1"] = p["we1"].at[:, NUM_CENTERS:, :].set(0.0)   # zero padded RBF rows
    p["be1"] = w(ks[2], (L, 1, D))
    p["we2"] = w(ks[3], (L, D, D))
    p["be2"] = w(ks[4], (L, 1, D))
    p["wn"]  = w(ks[5], (L, D, D))
    p["bn"]  = w(ks[6], (L, 1, D))
    p["wco"] = w(ks[7], (L, D, D))
    p["bco"] = w(ks[8], (L, 1, D))
    p["wpo"] = w(ks[9], (L, D, D))
    p["bpo"] = w(ks[10], (L, 1, D))
    p["wd"]  = w(ks[11], (N_DEC_HIDDEN, D, D))
    p["bd"]  = w(ks[12], (N_DEC_HIDDEN, 1, D))
    p["alpha"] = jnp.full((N_DEC_HIDDEN,), 0.25, jnp.float32)   # PReLU init
    p["wout"] = w(ks[13], (D, OUT_DIM))
    p["bout"] = w(ks[14], (1, OUT_DIM))
    return p


def _round_up(x, m):
    return ((x + m - 1) // m) * m


def _vmem_limit_bytes(n_pad, te, n_et_cache):
    """Derive the scoped-VMEM request from the actual shapes (valid on 64 MiB v7x)."""
    D, f32, bf16 = EMB_DIM, 4, 2
    blocks = 2 * (                                    # double-buffered in/out blocks
        D * n_pad * f32                               # h0^T
        + 2 * 8 * te * f32                            # dist + src-idx rows
        + te * 128 * 4                                # dst-idx column (lane padded)
        + RBF_PAD * 128 * f32                         # centers column (lane padded)
        + D * RBF_PAD * bf16 + 4 * D * D * bf16       # per-layer weights
        + 5 * D * 128 * f32                           # per-layer bias columns
        + N_DEC_HIDDEN * (D * D * bf16 + D * 128 * f32)
        + OUT_DIM * (D * bf16 + 128 * f32)
        + OUT_DIM * n_pad * f32)                      # output block
    scratch = (2 * D * n_pad * f32 + D * n_pad * bf16
               + n_et_cache * RBF_PAD * te * bf16)
    temps = (RBF_PAD * te * f32                       # rbf diff/exp temporaries
             + 2 * n_pad * te * bf16                  # one-hot tiles
             + 4 * D * te * f32)                      # he / m temporaries
    est = blocks + scratch + temps + 8 * 1024 * 1024
    return min(64 * 1024 * 1024, max(32 * 1024 * 1024, est))


def schnet_forward(src_idx, dst_idx, nfeats, efeats, params):
    """Returns ([], h) exactly like SchNet.forward."""
    N = int(nfeats.shape[0])
    E = int(efeats.shape[0])
    D = EMB_DIM
    n_pad = _round_up(max(N, 1), 128)                      # lane-dense node count
    te = min(EDGE_TILE, _round_up(max(E, 1), 128))         # edge tile derived from E
    e_pad = _round_up(max(E, 1), te)
    n_et = e_pad // te

    cache_rbf = (n_et * RBF_PAD * te * 2) <= RBF_CACHE_MAX_BYTES
    n_et_cache = n_et if cache_rbf else 1
    rbf_scr_shape = (n_et_cache, RBF_PAD, te) if cache_rbf else (1, 8, 128)

    bf = lambda a: a.astype(jnp.bfloat16)
    trT = lambda a: jnp.swapaxes(a, -1, -2)

    # ---- thin JAX glue (embedding gather, 3-wide norm, padding, transposes) -------
    node_types = nfeats[:, 0].astype(jnp.int32)            # nfeats.squeeze(1)
    h0 = params["embed"][node_types].astype(jnp.float32)   # (N, D) f32 (kept f32)
    h0T = jnp.pad(h0, ((0, n_pad - N), (0, 0))).T          # (D, n_pad)

    dists = jnp.sqrt(jnp.sum(efeats.astype(jnp.float32) ** 2, axis=1))
    d_row = (float(np.sqrt(GAMMA)) * jnp.pad(dists, (0, e_pad - E))).reshape(1, e_pad)

    sidx_row = jnp.pad(src_idx.astype(jnp.int32), (0, e_pad - E),
                       constant_values=-1).reshape(1, e_pad)
    didx_col = jnp.pad(dst_idx.astype(jnp.int32), (0, e_pad - E),
                       constant_values=-1).reshape(e_pad, 1)

    # pre-scaled RBF centers; padded centers = 1e9 -> exp term is exactly 0 there.
    cen = np.full((RBF_PAD, 1), 1e9, np.float32)
    cen[:NUM_CENTERS, 0] = np.sqrt(GAMMA) * np.linspace(0.0, CUTOFF, NUM_CENTERS)
    cen = jnp.asarray(cen)

    # feature-major (transposed) weights, bf16 MXU operands, f32 bias columns
    we1T, be1c = bf(trT(params["we1"])), trT(params["be1"])
    we2T, be2c = bf(trT(params["we2"])), trT(params["be2"])
    wnT,  bnc  = bf(trT(params["wn"])),  trT(params["bn"])
    wcoT, bcoc = bf(trT(params["wco"])), trT(params["bco"])
    wpoT, bpoc = bf(trT(params["wpo"])), trT(params["bpo"])
    wdT,  bdc  = bf(trT(params["wd"])),  trT(params["bd"])
    woutT, boutc = bf(params["wout"].T), params["bout"].T

    def full(shape):
        return pl.BlockSpec(shape, lambda l, e, _n=len(shape): (0,) * _n)

    def per_layer(shape):
        return pl.BlockSpec((None,) + shape,
                            lambda l, e, _n=len(shape): (l,) + (0,) * _n)

    in_specs = [
        full((D, n_pad)),                               # h0^T (embedded node types)
        pl.BlockSpec((1, te), lambda l, e: (0, e)),     # scaled distances (row)
        pl.BlockSpec((1, te), lambda l, e: (0, e)),     # src indices (row)
        pl.BlockSpec((te, 1), lambda l, e: (e, 0)),     # dst indices (column)
        full((RBF_PAD, 1)),                             # scaled RBF centers (column)
        per_layer((D, RBF_PAD)), per_layer((D, 1)),     # we1^T, be1
        per_layer((D, D)),       per_layer((D, 1)),     # we2^T, be2
        per_layer((D, D)),       per_layer((D, 1)),     # wn^T,  bn
        per_layer((D, D)),       per_layer((D, 1)),     # wco^T, bco
        per_layer((D, D)),       per_layer((D, 1)),     # wpo^T, bpo
        full((N_DEC_HIDDEN, D, D)),                     # decoder weights^T
        full((N_DEC_HIDDEN, D, 1)),                     # decoder bias columns
        full((OUT_DIM, D)),                             # wout^T
        full((OUT_DIM, 1)),                             # bout column
        pl.BlockSpec(memory_space=pltpu.MemorySpace.SMEM),   # PReLU alphas (scalars)
    ]
    out_spec = full((OUT_DIM, n_pad))

    kernel = functools.partial(_schnet_kernel, n_pad, te, cache_rbf)

    out = pl.pallas_call(
        kernel,
        out_shape=jax.ShapeDtypeStruct((OUT_DIM, n_pad), jnp.float32),
        grid_spec=pltpu.PrefetchScalarGridSpec(
            num_scalar_prefetch=0,
            grid=(NUM_LAYERS, n_et),                    # layer outer, edge tiles inner
            in_specs=in_specs,
            out_specs=out_spec,
            scratch_shapes=[
                pltpu.VMEM((D, n_pad), jnp.float32),    # h^T   (carried node features)
                pltpu.VMEM((D, n_pad), jnp.bfloat16),   # hv^T  (project_node output)
                pltpu.VMEM((D, n_pad), jnp.float32),    # agg^T (edge-tile accumulator)
                pltpu.VMEM(rbf_scr_shape, jnp.bfloat16) # layer-invariant RBF cache
            ]),
        compiler_params=pltpu.CompilerParams(
            dimension_semantics=("arbitrary", "arbitrary"),
            vmem_limit_bytes=_vmem_limit_bytes(n_pad, te, n_et_cache)),
    )(h0T, d_row, sidx_row, didx_col, cen,
      we1T, be1c, we2T, be2c, wnT, bnc, wcoT, bcoc, wpoT, bpoc,
      wdT, bdc, woutT, boutc, params["alpha"])

    return [], out[:, :N].T


def schnet_reference(src_idx, dst_idx, nfeats, efeats, params):
    """Pure-JAX f32 reference (gather/segment_sum) for correctness checking."""
    node_types = nfeats[:, 0].astype(jnp.int32)
    dists = jnp.sqrt(jnp.sum(efeats.astype(jnp.float32) ** 2, axis=1, keepdims=True))
    centers = jnp.asarray(np.linspace(0.0, CUTOFF, NUM_CENTERS), jnp.float32)
    rbf = jnp.exp(-GAMMA * (dists - centers[None, :]) ** 2)
    ssp = lambda x: jax.nn.softplus(x) - LOG2
    h = params["embed"][node_types]
    N = h.shape[0]
    for l in range(NUM_LAYERS):
        hv = h @ params["wn"][l] + params["bn"][l]
        he = ssp(rbf @ params["we1"][l][:NUM_CENTERS] + params["be1"][l])
        he = ssp(he @ params["we2"][l] + params["be2"][l])
        m = hv[src_idx] * he
        agg = jax.ops.segment_sum(m, dst_idx, num_segments=N)
        hc = ssp(agg @ params["wco"][l] + params["bco"][l])
        h = hc @ params["wpo"][l] + params["bpo"][l]
    x = h
    for d in range(N_DEC_HIDDEN):
        x = x @ params["wd"][d] + params["bd"][d]
        x = jnp.where(x >= 0, x, params["alpha"][d] * x)
    return x @ params["wout"] + params["bout"]


if __name__ == "__main__":
    key = jax.random.PRNGKey(0)
    k1, k2, k3 = jax.random.split(key, 3)

    # small synthetic graph: 12 nodes, 24 directed edges (ring, both directions)
    N, E = 12, 24
    src = np.concatenate([np.arange(N), (np.arange(N) + 1) % N]).astype(np.int32)
    dst = np.concatenate([(np.arange(N) + 1) % N, np.arange(N)]).astype(np.int32)
    src_j = jnp.asarray(src)
    dst_j = jnp.asarray(dst)

    nfeats = jax.random.randint(k1, (N, 1), 0, NUM_NTYPES, dtype=jnp.int32)   # node types
    efeats = jax.random.normal(k2, (E, EFEAT_DIM), jnp.float32)               # 3-D edge vectors
    params = init_params(k3)

    _, h = schnet_forward(src_j, dst_j, nfeats, efeats, params)
    h = jax.block_until_ready(h)
    assert h.shape == (N, OUT_DIM)

    ref = schnet_reference(src_j, dst_j, nfeats, efeats, params)
    np.testing.assert_allclose(np.asarray(h), np.asarray(ref), rtol=2e-2, atol=2e-2)

    print("KERNEL_OK")
</pallas_src>

<mosaic_0001>
module attributes {stable_mosaic.version = 11 : i64} {
  func.func @_schnet_kernel(%arg0: i32, %arg1: i32, %arg2: memref<32x128xf32, #tpu.memory_space<vmem>>, %arg3: memref<1x128xf32, #tpu.memory_space<vmem>>, %arg4: memref<1x128xi32, #tpu.memory_space<vmem>>, %arg5: memref<128x1xi32, #tpu.memory_space<vmem>>, %arg6: memref<512x1xf32, #tpu.memory_space<vmem>>, %arg7: memref<1x32x512xbf16, #tpu.memory_space<vmem>>, %arg8: memref<1x32x1xf32, #tpu.memory_space<vmem>>, %arg9: memref<1x32x32xbf16, #tpu.memory_space<vmem>>, %arg10: memref<1x32x1xf32, #tpu.memory_space<vmem>>, %arg11: memref<1x32x32xbf16, #tpu.memory_space<vmem>>, %arg12: memref<1x32x1xf32, #tpu.memory_space<vmem>>, %arg13: memref<1x32x32xbf16, #tpu.memory_space<vmem>>, %arg14: memref<1x32x1xf32, #tpu.memory_space<vmem>>, %arg15: memref<1x32x32xbf16, #tpu.memory_space<vmem>>, %arg16: memref<1x32x1xf32, #tpu.memory_space<vmem>>, %arg17: memref<4x32x32xbf16, #tpu.memory_space<vmem>>, %arg18: memref<4x32x1xf32, #tpu.memory_space<vmem>>, %arg19: memref<8x32xbf16, #tpu.memory_space<vmem>>, %arg20: memref<8x1xf32, #tpu.memory_space<vmem>>, %arg21: memref<4xf32, #tpu.memory_space<smem>>, %arg22: memref<8x128xf32, #tpu.memory_space<vmem>>, %arg23: memref<32x128xf32, #tpu.memory_space<vmem>>, %arg24: memref<32x128xbf16, #tpu.memory_space<vmem>>, %arg25: memref<32x128xf32, #tpu.memory_space<vmem>>, %arg26: memref<1x512x128xbf16, #tpu.memory_space<vmem>>) attributes {dimension_semantics = [#tpu.dimension_semantics<arbitrary>, #tpu.dimension_semantics<arbitrary>], iteration_bounds = array<i64: 2, 1>, scalar_prefetch = 0 : i64, scratch_operands = 4 : i64, tpu.core_type = #tpu.core_type<tc>, window_params = [{pipeline_mode = #tpu.pipeline_mode<synchronous>, transform_indices = @transform_0, window_bounds = array<i64: 32, 128>}, {transform_indices = @transform_1, window_bounds = array<i64: 1, 128>}, {transform_indices = @transform_2, window_bounds = array<i64: 1, 128>}, {transform_indices = @transform_3, window_bounds = array<i64: 128, 1>}, {pipeline_mode = #tpu.pipeline_mode<synchronous>, transform_indices = @transform_4, window_bounds = array<i64: 512, 1>}, {transform_indices = @transform_5, window_bounds = array<i64: 1, 32, 512>}, {transform_indices = @transform_6, window_bounds = array<i64: 1, 32, 1>}, {transform_indices = @transform_7, window_bounds = array<i64: 1, 32, 32>}, {transform_indices = @transform_8, window_bounds = array<i64: 1, 32, 1>}, {transform_indices = @transform_9, window_bounds = array<i64: 1, 32, 32>}, {transform_indices = @transform_10, window_bounds = array<i64: 1, 32, 1>}, {transform_indices = @transform_11, window_bounds = array<i64: 1, 32, 32>}, {transform_indices = @transform_12, window_bounds = array<i64: 1, 32, 1>}, {transform_indices = @transform_13, window_bounds = array<i64: 1, 32, 32>}, {transform_indices = @transform_14, window_bounds = array<i64: 1, 32, 1>}, {pipeline_mode = #tpu.pipeline_mode<synchronous>, transform_indices = @transform_15, window_bounds = array<i64: 4, 32, 32>}, {pipeline_mode = #tpu.pipeline_mode<synchronous>, transform_indices = @transform_16, window_bounds = array<i64: 4, 32, 1>}, {pipeline_mode = #tpu.pipeline_mode<synchronous>, transform_indices = @transform_17, window_bounds = array<i64: 8, 32>}, {pipeline_mode = #tpu.pipeline_mode<synchronous>, transform_indices = @transform_18, window_bounds = array<i64: 8, 1>}, {transform_indices = @transform_19, window_bounds = array<i64: 4>}, {pipeline_mode = #tpu.pipeline_mode<synchronous>, transform_indices = @transform_20, window_bounds = array<i64: 8, 128>}]} {
    %c0_i32 = arith.constant 0 : i32
    %0 = arith.cmpi eq, %arg0, %c0_i32 : i32
    %c0_i32_0 = arith.constant 0 : i32
    %1 = arith.cmpi eq, %arg1, %c0_i32_0 : i32
    %2 = arith.andi %0, %1 : i1
    %3 = arith.extui %2 : i1 to i32
    %c0_i32_1 = arith.constant 0 : i32
    %4 = arith.cmpi ne, %3, %c0_i32_1 : i32
    scf.if %4 {
      %c0_44 = arith.constant 0 : index
      %c0_45 = arith.constant 0 : index
      %83 = vector.load %arg2[%c0_44, %c0_45] : memref<32x128xf32, #tpu.memory_space<vmem>>, vector<32x128xf32>
      %c0_46 = arith.constant 0 : index
      %c0_47 = arith.constant 0 : index
      %84 = vector.load %arg23[%c0_46, %c0_47] : memref<32x128xf32, #tpu.memory_space<vmem>>, vector<32x128xf32>
      tpu.vector_store %arg23[%c0_46, %c0_47], %83 {strides = array<i32>} : memref<32x128xf32, #tpu.memory_space<vmem>>, vector<32x128xf32>,
    } else {
    }
    %c0_i32_2 = arith.constant 0 : i32
    %5 = arith.cmpi eq, %arg1, %c0_i32_2 : i32
    %6 = arith.extui %5 : i1 to i32
    %c0_i32_3 = arith.constant 0 : i32
    %7 = arith.cmpi ne, %6, %c0_i32_3 : i32
    scf.if %7 {
      %c0_44 = arith.constant 0 : index
      %c0_45 = arith.constant 0 : index
      %c0_46 = arith.constant 0 : index
      %83 = vector.load %arg11[%c0_44, %c0_45, %c0_46] : memref<1x32x32xbf16, #tpu.memory_space<vmem>>, vector<1x32x32xbf16>
      %84 = vector.shape_cast %83 : vector<1x32x32xbf16> to vector<32x32xbf16>
      %c0_47 = arith.constant 0 : index
      %c0_48 = arith.constant 0 : index
      %85 = vector.load %arg23[%c0_47, %c0_48] : memref<32x128xf32, #tpu.memory_space<vmem>>, vector<32x128xf32>
      %86 = arith.truncf %85 : vector<32x128xf32> to vector<32x128xbf16>
      %cst_49 = arith.constant dense<0.000000e+00> : vector<32x128xf32>
      %87 = tpu.matmul %84, %86, %cst_49 {dimension_numbers = #tpu.dot_dimension_numbers<[1], [0], [0], [1], [0, 0, 1, 1], [], []>} : vector<32x32xbf16>, vector<32x128xbf16>, vector<32x128xf32> -> vector<32x128xf32>
      %c0_50 = arith.constant 0 : index
      %c0_51 = arith.constant 0 : index
      %c0_52 = arith.constant 0 : index
      %88 = vector.load %arg12[%c0_50, %c0_51, %c0_52] : memref<1x32x1xf32, #tpu.memory_space<vmem>>, vector<1x32x1xf32>
      %89 = vector.shape_cast %88 : vector<1x32x1xf32> to vector<32x1xf32>
      %90 = vector.broadcast %89 : vector<32x1xf32> to vector<32x128xf32>
      %91 = arith.addf %87, %90 : vector<32x128xf32>
      %92 = arith.truncf %91 : vector<32x128xf32> to vector<32x128xbf16>
      %c0_53 = arith.constant 0 : index
      %c0_54 = arith.constant 0 : index
      %93 = vector.load %arg24[%c0_53, %c0_54] : memref<32x128xbf16, #tpu.memory_space<vmem>>, vector<32x128xbf16>
      tpu.vector_store %arg24[%c0_53, %c0_54], %92 {strides = array<i32>} : memref<32x128xbf16, #tpu.memory_space<vmem>>, vector<32x128xbf16>,
      %cst_55 = arith.constant 0.000000e+00 : f32
      %94 = vector.broadcast %cst_55 : f32 to vector<32x128xf32>
      %c0_56 = arith.constant 0 : index
      %c0_57 = arith.constant 0 : index
      %95 = vector.load %arg25[%c0_56, %c0_57] : memref<32x128xf32, #tpu.memory_space<vmem>>, vector<32x128xf32>
      tpu.vector_store %arg25[%c0_56, %c0_57], %94 {strides = array<i32>} : memref<32x128xf32, #tpu.memory_space<vmem>>, vector<32x128xf32>,
    } else {
    }
    %c0_i32_4 = arith.constant 0 : i32
    %8 = arith.cmpi eq, %arg0, %c0_i32_4 : i32
    %9 = arith.extui %8 : i1 to i32
    %c0_i32_5 = arith.constant 0 : i32
    %10 = arith.cmpi ne, %9, %c0_i32_5 : i32
    scf.if %10 {
      %c0_44 = arith.constant 0 : index
      %c0_45 = arith.constant 0 : index
      %83 = vector.load %arg3[%c0_44, %c0_45] : memref<1x128xf32, #tpu.memory_space<vmem>>, vector<1x128xf32>
      %c0_46 = arith.constant 0 : index
      %c0_47 = arith.constant 0 : index
      %84 = vector.load %arg6[%c0_46, %c0_47] : memref<512x1xf32, #tpu.memory_space<vmem>>, vector<512x1xf32>
      %85 = vector.broadcast %83 : vector<1x128xf32> to vector<512x128xf32>
      %86 = vector.broadcast %84 : vector<512x1xf32> to vector<512x128xf32>
      %87 = arith.subf %85, %86 : vector<512x128xf32>
      %88 = arith.mulf %87, %87 : vector<512x128xf32>
      %cst_48 = arith.constant 0.000000e+00 : f32
      %89 = vector.broadcast %cst_48 : f32 to vector<512x128xf32>
      %90 = arith.subf %89, %88 : vector<512x128xf32>
      %91 = math.exp %90 : vector<512x128xf32>
      %92 = arith.truncf %91 : vector<512x128xf32> to vector<512x128xbf16>
      %93 = arith.index_cast %arg1 : i32 to index
      %c0_49 = arith.constant 0 : index
      %c0_50 = arith.constant 0 : index
      %94 = vector.load %arg26[%93, %c0_49, %c0_50] : memref<1x512x128xbf16, #tpu.memory_space<vmem>>, vector<1x512x128xbf16>
      %95 = vector.shape_cast %94 : vector<1x512x128xbf16> to vector<512x128xbf16>
      %96 = vector.shape_cast %92 : vector<512x128xbf16> to vector<1x512x128xbf16>
      tpu.vector_store %arg26[%93, %c0_49, %c0_50], %96 {strides = array<i32>} : memref<1x512x128xbf16, #tpu.memory_space<vmem>>, vector<1x512x128xbf16>,
    } else {
    }
    %11 = arith.index_cast %arg1 : i32 to index
    %c0 = arith.constant 0 : index
    %c0_6 = arith.constant 0 : index
    %12 = vector.load %arg26[%11, %c0, %c0_6] : memref<1x512x128xbf16, #tpu.memory_space<vmem>>, vector<1x512x128xbf16>
    %13 = vector.shape_cast %12 : vector<1x512x128xbf16> to vector<512x128xbf16>
    %c0_7 = arith.constant 0 : index
    %c0_8 = arith.constant 0 : index
    %c0_9 = arith.constant 0 : index
    %14 = vector.load %arg7[%c0_7, %c0_8, %c0_9] : memref<1x32x512xbf16, #tpu.memory_space<vmem>>, vector<1x32x512xbf16>
    %15 = vector.shape_cast %14 : vector<1x32x512xbf16> to vector<32x512xbf16>
    %cst = arith.constant dense<0.000000e+00> : vector<32x128xf32>
    %16 = tpu.matmul %15, %13, %cst {dimension_numbers = #tpu.dot_dimension_numbers<[1], [0], [0], [1], [0, 0, 1, 1], [], []>} : vector<32x512xbf16>, vector<512x128xbf16>, vector<32x128xf32> -> vector<32x128xf32>
    %c0_10 = arith.constant 0 : index
    %c0_11 = arith.constant 0 : index
    %c0_12 = arith.constant 0 : index
    %17 = vector.load %arg8[%c0_10, %c0_11, %c0_12] : memref<1x32x1xf32, #tpu.memory_space<vmem>>, vector<1x32x1xf32>
    %18 = vector.shape_cast %17 : vector<1x32x1xf32> to vector<32x1xf32>
    %19 = vector.broadcast %18 : vector<32x1xf32> to vector<32x128xf32>
    %20 = arith.addf %16, %19 : vector<32x128xf32>
    %cst_13 = arith.constant 0.000000e+00 : f32
    %21 = vector.broadcast %cst_13 : f32 to vector<32x128xf32>
    %22 = arith.maximumf %20, %21 : vector<32x128xf32>
    %23 = math.absf %20 : vector<32x128xf32>
    %cst_14 = arith.constant 0.000000e+00 : f32
    %24 = vector.broadcast %cst_14 : f32 to vector<32x128xf32>
    %25 = arith.subf %24, %23 : vector<32x128xf32>
    %26 = math.exp %25 : vector<32x128xf32>
    %cst_15 = arith.constant 1.000000e+00 : f32
    %27 = vector.broadcast %cst_15 : f32 to vector<32x128xf32>
    %28 = arith.addf %27, %26 : vector<32x128xf32>
    %29 = math.log %28 : vector<32x128xf32>
    %30 = arith.addf %22, %29 : vector<32x128xf32>
    %cst_16 = arith.constant 0.693147182 : f32
    %31 = vector.broadcast %cst_16 : f32 to vector<32x128xf32>
    %32 = arith.subf %30, %31 : vector<32x128xf32>
    %c0_17 = arith.constant 0 : index
    %c0_18 = arith.constant 0 : index
    %c0_19 = arith.constant 0 : index
    %33 = vector.load %arg9[%c0_17, %c0_18, %c0_19] : memref<1x32x32xbf16, #tpu.memory_space<vmem>>, vector<1x32x32xbf16>
    %34 = vector.shape_cast %33 : vector<1x32x32xbf16> to vector<32x32xbf16>
    %35 = arith.truncf %32 : vector<32x128xf32> to vector<32x128xbf16>
    %cst_20 = arith.constant dense<0.000000e+00> : vector<32x128xf32>
    %36 = tpu.matmul %34, %35, %cst_20 {dimension_numbers = #tpu.dot_dimension_numbers<[1], [0], [0], [1], [0, 0, 1, 1], [], []>} : vector<32x32xbf16>, vector<32x128xbf16>, vector<32x128xf32> -> vector<32x128xf32>
    %c0_21 = arith.constant 0 : index
    %c0_22 = arith.constant 0 : index
    %c0_23 = arith.constant 0 : index
    %37 = vector.load %arg10[%c0_21, %c0_22, %c0_23] : memref<1x32x1xf32, #tpu.memory_space<vmem>>, vector<1x32x1xf32>
    %38 = vector.shape_cast %37 : vector<1x32x1xf32> to vector<32x1xf32>
    %39 = vector.broadcast %38 : vector<32x1xf32> to vector<32x128xf32>
    %40 = arith.addf %36, %39 : vector<32x128xf32>
    %cst_24 = arith.constant 0.000000e+00 : f32
    %41 = vector.broadcast %cst_24 : f32 to vector<32x128xf32>
    %42 = arith.maximumf %40, %41 : vector<32x128xf32>
    %43 = math.absf %40 : vector<32x128xf32>
    %cst_25 = arith.constant 0.000000e+00 : f32
    %44 = vector.broadcast %cst_25 : f32 to vector<32x128xf32>
    %45 = arith.subf %44, %43 : vector<32x128xf32>
    %46 = math.exp %45 : vector<32x128xf32>
    %cst_26 = arith.constant 1.000000e+00 : f32
    %47 = vector.broadcast %cst_26 : f32 to vector<32x128xf32>
    %48 = arith.addf %47, %46 : vector<32x128xf32>
    %49 = math.log %48 : vector<32x128xf32>
    %50 = arith.addf %42, %49 : vector<32x128xf32>
    %cst_27 = arith.constant 0.693147182 : f32
    %51 = vector.broadcast %cst_27 : f32 to vector<32x128xf32>
    %52 = arith.subf %50, %51 : vector<32x128xf32>
    %53 = tpu.iota {dimensions = array<i32: 0>} : vector<128x128xi32>
    %c0_28 = arith.constant 0 : index
    %c0_29 = arith.constant 0 : index
    %54 = vector.load %arg4[%c0_28, %c0_29] : memref<1x128xi32, #tpu.memory_space<vmem>>, vector<1x128xi32>
    %55 = vector.broadcast %54 : vector<1x128xi32> to vector<128x128xi32>
    %56 = arith.cmpi eq, %53, %55 : vector<128x128xi32>
    %57 = arith.extui %56 : vector<128x128xi1> to vector<128x128xi32>
    %58 = arith.sitofp %57 : vector<128x128xi32> to vector<128x128xf32>
    %59 = arith.truncf %58 : vector<128x128xf32> to vector<128x128xbf16>
    %60 = tpu.iota {dimensions = array<i32: 1>} : vector<128x128xi32>
    %c0_30 = arith.constant 0 : index
    %c0_31 = arith.constant 0 : index
    %61 = vector.load %arg5[%c0_30, %c0_31] : memref<128x1xi32, #tpu.memory_space<vmem>>, vector<128x1xi32>
    %62 = vector.broadcast %61 : vector<128x1xi32> to vector<128x128xi32>
    %63 = arith.cmpi eq, %60, %62 : vector<128x128xi32>
    %64 = arith.extui %63 : vector<128x128xi1> to vector<128x128xi32>
    %65 = arith.sitofp %64 : vector<128x128xi32> to vector<128x128xf32>
    %66 = arith.truncf %65 : vector<128x128xf32> to vector<128x128xbf16>
    %c0_32 = arith.constant 0 : index
    %c0_33 = arith.constant 0 : index
    %67 = vector.load %arg24[%c0_32, %c0_33] : memref<32x128xbf16, #tpu.memory_space<vmem>>, vector<32x128xbf16>
    %cst_34 = arith.constant dense<0.000000e+00> : vector<32x128xf32>
    %68 = tpu.matmul %67, %59, %cst_34 {dimension_numbers = #tpu.dot_dimension_numbers<[1], [0], [0], [1], [0, 0, 1, 1], [], []>} : vector<32x128xbf16>, vector<128x128xbf16>, vector<32x128xf32> -> vector<32x128xf32>
    %69 = arith.mulf %68, %52 : vector<32x128xf32>
    %c0_35 = arith.constant 0 : index
    %c0_36 = arith.constant 0 : index
    %70 = vector.load %arg25[%c0_35, %c0_36] : memref<32x128xf32, #tpu.memory_space<vmem>>, vector<32x128xf32>
    %71 = arith.truncf %69 : vector<32x128xf32> to vector<32x128xbf16>
    %cst_37 = arith.constant dense<0.000000e+00> : vector<32x128xf32>
    %72 = tpu.matmul %71, %66, %cst_37 {dimension_numbers = #tpu.dot_dimension_numbers<[1], [0], [0], [1], [0, 0, 1, 1], [], []>} : vector<32x128xbf16>, vector<128x128xbf16>, vector<32x128xf32> -> vector<32x128xf32>
    %73 = arith.addf %70, %72 : vector<32x128xf32>
    %c0_38 = arith.constant 0 : index
    %c0_39 = arith.constant 0 : index
    %74 = vector.load %arg25[%c0_38, %c0_39] : memref<32x128xf32, #tpu.memory_space<vmem>>, vector<32x128xf32>
    tpu.vector_store %arg25[%c0_38, %c0_39], %73 {strides = array<i32>} : memref<32x128xf32, #tpu.memory_space<vmem>>, vector<32x128xf32>,
    %c0_i32_40 = arith.constant 0 : i32
    %75 = arith.cmpi eq, %arg1, %c0_i32_40 : i32
    %76 = arith.extui %75 : i1 to i32
    %c0_i32_41 = arith.constant 0 : i32
    %77 = arith.cmpi ne, %76, %c0_i32_41 : i32
    scf.if %77 {
      %c0_44 = arith.constant 0 : index
      %c0_45 = arith.constant 0 : index
      %c0_46 = arith.constant 0 : index
      %83 = vector.load %arg13[%c0_44, %c0_45, %c0_46] : memref<1x32x32xbf16, #tpu.memory_space<vmem>>, vector<1x32x32xbf16>
      %84 = vector.shape_cast %83 : vector<1x32x32xbf16> to vector<32x32xbf16>
      %c0_47 = arith.constant 0 : index
      %c0_48 = arith.constant 0 : index
      %85 = vector.load %arg25[%c0_47, %c0_48] : memref<32x128xf32, #tpu.memory_space<vmem>>, vector<32x128xf32>
      %86 = arith.truncf %85 : vector<32x128xf32> to vector<32x128xbf16>
      %cst_49 = arith.constant dense<0.000000e+00> : vector<32x128xf32>
      %87 = tpu.matmul %84, %86, %cst_49 {dimension_numbers = #tpu.dot_dimension_numbers<[1], [0], [0], [1], [0, 0, 1, 1], [], []>} : vector<32x32xbf16>, vector<32x128xbf16>, vector<32x128xf32> -> vector<32x128xf32>
      %c0_50 = arith.constant 0 : index
      %c0_51 = arith.constant 0 : index
      %c0_52 = arith.constant 0 : index
      %88 = vector.load %arg14[%c0_50, %c0_51, %c0_52] : memref<1x32x1xf32, #tpu.memory_space<vmem>>, vector<1x32x1xf32>
      %89 = vector.shape_cast %88 : vector<1x32x1xf32> to vector<32x1xf32>
      %90 = vector.broadcast %89 : vector<32x1xf32> to vector<32x128xf32>
      %91 = arith.addf %87, %90 : vector<32x128xf32>
      %cst_53 = arith.constant 0.000000e+00 : f32
      %92 = vector.broadcast %cst_53 : f32 to vector<32x128xf32>
      %93 = arith.maximumf %91, %92 : vector<32x128xf32>
      %94 = math.absf %91 : vector<32x128xf32>
      %cst_54 = arith.constant 0.000000e+00 : f32
      %95 = vector.broadcast %cst_54 : f32 to vector<32x128xf32>
      %96 = arith.subf %95, %94 : vector<32x128xf32>
      %97 = math.exp %96 : vector<32x128xf32>
      %cst_55 = arith.constant 1.000000e+00 : f32
      %98 = vector.broadcast %cst_55 : f32 to vector<32x128xf32>
      %99 = arith.addf %98, %97 : vector<32x128xf32>
      %100 = math.log %99 : vector<32x128xf32>
      %101 = arith.addf %93, %100 : vector<32x128xf32>
      %cst_56 = arith.constant 0.693147182 : f32
      %102 = vector.broadcast %cst_56 : f32 to vector<32x128xf32>
      %103 = arith.subf %101, %102 : vector<32x128xf32>
      %c0_57 = arith.constant 0 : index
      %c0_58 = arith.constant 0 : index
      %c0_59 = arith.constant 0 : index
      %104 = vector.load %arg15[%c0_57, %c0_58, %c0_59] : memref<1x32x32xbf16, #tpu.memory_space<vmem>>, vector<1x32x32xbf16>
      %105 = vector.shape_cast %104 : vector<1x32x32xbf16> to vector<32x32xbf16>
      %106 = arith.truncf %103 : vector<32x128xf32> to vector<32x128xbf16>
      %cst_60 = arith.constant dense<0.000000e+00> : vector<32x128xf32>
      %107 = tpu.matmul %105, %106, %cst_60 {dimension_numbers = #tpu.dot_dimension_numbers<[1], [0], [0], [1], [0, 0, 1, 1], [], []>} : vector<32x32xbf16>, vector<32x128xbf16>, vector<32x128xf32> -> vector<32x128xf32>
      %c0_61 = arith.constant 0 : index
      %c0_62 = arith.constant 0 : index
      %c0_63 = arith.constant 0 : index
      %108 = vector.load %arg16[%c0_61, %c0_62, %c0_63] : memref<1x32x1xf32, #tpu.memory_space<vmem>>, vector<1x32x1xf32>
      %109 = vector.shape_cast %108 : vector<1x32x1xf32> to vector<32x1xf32>
      %110 = vector.broadcast %109 : vector<32x1xf32> to vector<32x128xf32>
      %111 = arith.addf %107, %110 : vector<32x128xf32>
      %c0_64 = arith.constant 0 : index
      %c0_65 = arith.constant 0 : index
      %112 = vector.load %arg23[%c0_64, %c0_65] : memref<32x128xf32, #tpu.memory_space<vmem>>, vector<32x128xf32>
      tpu.vector_store %arg23[%c0_64, %c0_65], %111 {strides = array<i32>} : memref<32x128xf32, #tpu.memory_space<vmem>>, vector<32x128xf32>,
    } else {
    }
    %c1_i32 = arith.constant 1 : i32
    %78 = arith.cmpi eq, %arg0, %c1_i32 : i32
    %c0_i32_42 = arith.constant 0 : i32
    %79 = arith.cmpi eq, %arg1, %c0_i32_42 : i32
    %80 = arith.andi %78, %79 : i1
    %81 = arith.extui %80 : i1 to i32
    %c0_i32_43 = arith.constant 0 : i32
    %82 = arith.cmpi ne, %81, %c0_i32_43 : i32
    scf.if %82 {
      %c0_44 = arith.constant 0 : index
      %c0_45 = arith.constant 0 : index
      %83 = vector.load %arg23[%c0_44, %c0_45] : memref<32x128xf32, #tpu.memory_space<vmem>>, vector<32x128xf32>
      %c0_46 = arith.constant 0 : index
      %c0_47 = arith.constant 0 : index
      %c0_48 = arith.constant 0 : index
      %84 = vector.load %arg17[%c0_46, %c0_47, %c0_48] : memref<4x32x32xbf16, #tpu.memory_space<vmem>>, vector<1x32x32xbf16>
      %85 = vector.shape_cast %84 : vector<1x32x32xbf16> to vector<32x32xbf16>
      %86 = arith.truncf %83 : vector<32x128xf32> to vector<32x128xbf16>
      %cst_49 = arith.constant dense<0.000000e+00> : vector<32x128xf32>
      %87 = tpu.matmul %85, %86, %cst_49 {dimension_numbers = #tpu.dot_dimension_numbers<[1], [0], [0], [1], [0, 0, 1, 1], [], []>} : vector<32x32xbf16>, vector<32x128xbf16>, vector<32x128xf32> -> vector<32x128xf32>
      %c0_50 = arith.constant 0 : index
      %c0_51 = arith.constant 0 : index
      %c0_52 = arith.constant 0 : index
      %88 = vector.load %arg18[%c0_50, %c0_51, %c0_52] : memref<4x32x1xf32, #tpu.memory_space<vmem>>, vector<1x32x1xf32>
      %89 = vector.shape_cast %88 : vector<1x32x1xf32> to vector<32x1xf32>
      %90 = vector.broadcast %89 : vector<32x1xf32> to vector<32x128xf32>
      %91 = arith.addf %87, %90 : vector<32x128xf32>
      %c0_53 = arith.constant 0 : index
      %92 = memref.load %arg21[%c0_53] : memref<4xf32, #tpu.memory_space<smem>>
      %cst_54 = arith.constant 0.000000e+00 : f32
      %93 = vector.broadcast %cst_54 : f32 to vector<32x128xf32>
      %94 = arith.cmpf oge, %91, %93 : vector<32x128xf32>
      %95 = vector.broadcast %92 : f32 to vector<32x128xf32>
      %96 = arith.mulf %95, %91 : vector<32x128xf32>
      %97 = arith.select %94, %91, %96 : vector<32x128xi1>, vector<32x128xf32>
      %c1 = arith.constant 1 : index
      %c0_55 = arith.constant 0 : index
      %c0_56 = arith.constant 0 : index
      %98 = vector.load %arg17[%c1, %c0_55, %c0_56] : memref<4x32x32xbf16, #tpu.memory_space<vmem>>, vector<1x32x32xbf16>
      %99 = vector.shape_cast %98 : vector<1x32x32xbf16> to vector<32x32xbf16>
      %100 = arith.truncf %97 : vector<32x128xf32> to vector<32x128xbf16>
      %cst_57 = arith.constant dense<0.000000e+00> : vector<32x128xf32>
      %101 = tpu.matmul %99, %100, %cst_57 {dimension_numbers = #tpu.dot_dimension_numbers<[1], [0], [0], [1], [0, 0, 1, 1], [], []>} : vector<32x32xbf16>, vector<32x128xbf16>, vector<32x128xf32> -> vector<32x128xf32>
      %c1_58 = arith.constant 1 : index
      %c0_59 = arith.constant 0 : index
      %c0_60 = arith.constant 0 : index
      %102 = vector.load %arg18[%c1_58, %c0_59, %c0_60] : memref<4x32x1xf32, #tpu.memory_space<vmem>>, vector<1x32x1xf32>
      %103 = vector.shape_cast %102 : vector<1x32x1xf32> to vector<32x1xf32>
      %104 = vector.broadcast %103 : vector<32x1xf32> to vector<32x128xf32>
      %105 = arith.addf %101, %104 : vector<32x128xf32>
      %c1_61 = arith.constant 1 : index
      %106 = memref.load %arg21[%c1_61] : memref<4xf32, #tpu.memory_space<smem>>
      %cst_62 = arith.constant 0.000000e+00 : f32
      %107 = vector.broadcast %cst_62 : f32 to vector<32x128xf32>
      %108 = arith.cmpf oge, %105, %107 : vector<32x128xf32>
      %109 = vector.broadcast %106 : f32 to vector<32x128xf32>
      %110 = arith.mulf %109, %105 : vector<32x128xf32>
      %111 = arith.select %108, %105, %110 : vector<32x128xi1>, vector<32x128xf32>
      %c2 = arith.constant 2 : index
      %c0_63 = arith.constant 0 : index
      %c0_64 = arith.constant 0 : index
      %112 = vector.load %arg17[%c2, %c0_63, %c0_64] : memref<4x32x32xbf16, #tpu.memory_space<vmem>>, vector<1x32x32xbf16>
      %113 = vector.shape_cast %112 : vector<1x32x32xbf16> to vector<32x32xbf16>
      %114 = arith.truncf %111 : vector<32x128xf32> to vector<32x128xbf16>
      %cst_65 = arith.constant dense<0.000000e+00> : vector<32x128xf32>
      %115 = tpu.matmul %113, %114, %cst_65 {dimension_numbers = #tpu.dot_dimension_numbers<[1], [0], [0], [1], [0, 0, 1, 1], [], []>} : vector<32x32xbf16>, vector<32x128xbf16>, vector<32x128xf32> -> vector<32x128xf32>
      %c2_66 = arith.constant 2 : index
      %c0_67 = arith.constant 0 : index
      %c0_68 = arith.constant 0 : index
      %116 = vector.load %arg18[%c2_66, %c0_67, %c0_68] : memref<4x32x1xf32, #tpu.memory_space<vmem>>, vector<1x32x1xf32>
      %117 = vector.shape_cast %116 : vector<1x32x1xf32> to vector<32x1xf32>
      %118 = vector.broadcast %117 : vector<32x1xf32> to vector<32x128xf32>
      %119 = arith.addf %115, %118 : vector<32x128xf32>
      %c2_69 = arith.constant 2 : index
      %120 = memref.load %arg21[%c2_69] : memref<4xf32, #tpu.memory_space<smem>>
      %cst_70 = arith.constant 0.000000e+00 : f32
      %121 = vector.broadcast %cst_70 : f32 to vector<32x128xf32>
      %122 = arith.cmpf oge, %119, %121 : vector<32x128xf32>
      %123 = vector.broadcast %120 : f32 to vector<32x128xf32>
      %124 = arith.mulf %123, %119 : vector<32x128xf32>
      %125 = arith.select %122, %119, %124 : vector<32x128xi1>, vector<32x128xf32>
      %c3 = arith.constant 3 : index
      %c0_71 = arith.constant 0 : index
      %c0_72 = arith.constant 0 : index
      %126 = vector.load %arg17[%c3, %c0_71, %c0_72] : memref<4x32x32xbf16, #tpu.memory_space<vmem>>, vector<1x32x32xbf16>
      %127 = vector.shape_cast %126 : vector<1x32x32xbf16> to vector<32x32xbf16>
      %128 = arith.truncf %125 : vector<32x128xf32> to vector<32x128xbf16>
      %cst_73 = arith.constant dense<0.000000e+00> : vector<32x128xf32>
      %129 = tpu.matmul %127, %128, %cst_73 {dimension_numbers = #tpu.dot_dimension_numbers<[1], [0], [0], [1], [0, 0, 1, 1], [], []>} : vector<32x32xbf16>, vector<32x128xbf16>, vector<32x128xf32> -> vector<32x128xf32>
      %c3_74 = arith.constant 3 : index
      %c0_75 = arith.constant 0 : index
      %c0_76 = arith.constant 0 : index
      %130 = vector.load %arg18[%c3_74, %c0_75, %c0_76] : memref<4x32x1xf32, #tpu.memory_space<vmem>>, vector<1x32x1xf32>
      %131 = vector.shape_cast %130 : vector<1x32x1xf32> to vector<32x1xf32>
      %132 = vector.broadcast %131 : vector<32x1xf32> to vector<32x128xf32>
      %133 = arith.addf %129, %132 : vector<32x128xf32>
      %c3_77 = arith.constant 3 : index
      %134 = memref.load %arg21[%c3_77] : memref<4xf32, #tpu.memory_space<smem>>
      %cst_78 = arith.constant 0.000000e+00 : f32
      %135 = vector.broadcast %cst_78 : f32 to vector<32x128xf32>
      %136 = arith.cmpf oge, %133, %135 : vector<32x128xf32>
      %137 = vector.broadcast %134 : f32 to vector<32x128xf32>
      %138 = arith.mulf %137, %133 : vector<32x128xf32>
      %139 = arith.select %136, %133, %138 : vector<32x128xi1>, vector<32x128xf32>
      %c0_79 = arith.constant 0 : index
      %c0_80 = arith.constant 0 : index
      %140 = vector.load %arg19[%c0_79, %c0_80] : memref<8x32xbf16, #tpu.memory_space<vmem>>, vector<8x32xbf16>
      %141 = arith.truncf %139 : vector<32x128xf32> to vector<32x128xbf16>
      %cst_81 = arith.constant dense<0.000000e+00> : vector<8x128xf32>
      %142 = tpu.matmul %140, %141, %cst_81 {dimension_numbers = #tpu.dot_dimension_numbers<[1], [0], [0], [1], [0, 0, 1, 1], [], []>} : vector<8x32xbf16>, vector<32x128xbf16>, vector<8x128xf32> -> vector<8x128xf32>
      %c0_82 = arith.constant 0 : index
      %c0_83 = arith.constant 0 : index
      %143 = vector.load %arg20[%c0_82, %c0_83] : memref<8x1xf32, #tpu.memory_space<vmem>>, vector<8x1xf32>
      %144 = vector.broadcast %143 : vector<8x1xf32> to vector<8x128xf32>
      %145 = arith.addf %142, %144 : vector<8x128xf32>
      %c0_84 = arith.constant 0 : index
      %c0_85 = arith.constant 0 : index
      %146 = vector.load %arg22[%c0_84, %c0_85] : memref<8x128xf32, #tpu.memory_space<vmem>>, vector<8x128xf32>
      tpu.vector_store %arg22[%c0_84, %c0_85], %145 {strides = array<i32>} : memref<8x128xf32, #tpu.memory_space<vmem>>, vector<8x128xf32>,
    } else {
    }
    return
  }
  func.func @transform_0(%arg0: i32, %arg1: i32) -> (i32, i32) {
    %c0_i32 = arith.constant 0 : i32
    %c0_i32_0 = arith.constant 0 : i32
    %c0_i32_1 = arith.constant 0 : i32
    return %c0_i32, %c0_i32_0 : i32, i32
  }
  func.func @transform_1(%arg0: i32, %arg1: i32) -> (i32, i32) {
    %c0_i32 = arith.constant 0 : i32
    %c0_i32_0 = arith.constant 0 : i32
    return %c0_i32, %arg1 : i32, i32
  }
  func.func @transform_2(%arg0: i32, %arg1: i32) -> (i32, i32) {
    %c0_i32 = arith.constant 0 : i32
    %c0_i32_0 = arith.constant 0 : i32
    return %c0_i32, %arg1 : i32, i32
  }
  func.func @transform_3(%arg0: i32, %arg1: i32) -> (i32, i32) {
    %c0_i32 = arith.constant 0 : i32
    %c0_i32_0 = arith.constant 0 : i32
    return %arg1, %c0_i32 : i32, i32
  }
  func.func @transform_4(%arg0: i32, %arg1: i32) -> (i32, i32) {
    %c0_i32 = arith.constant 0 : i32
    %c0_i32_0 = arith.constant 0 : i32
    %c0_i32_1 = arith.constant 0 : i32
    return %c0_i32, %c0_i32_0 : i32, i32
  }
  func.func @transform_5(%arg0: i32, %arg1: i32) -> (i32, i32, i32) {
    %c0_i32 = arith.constant 0 : i32
    %c0_i32_0 = arith.constant 0 : i32
    %c0_i32_1 = arith.constant 0 : i32
    return %arg0, %c0_i32, %c0_i32_0 : i32, i32, i32
  }
  func.func @transform_6(%arg0: i32, %arg1: i32) -> (i32, i32, i32) {
    %c0_i32 = arith.constant 0 : i32
    %c0_i32_0 = arith.constant 0 : i32
    %c0_i32_1 = arith.constant 0 : i32
    return %arg0, %c0_i32, %c0_i32_0 : i32, i32, i32
  }
  func.func @transform_7(%arg0: i32, %arg1: i32) -> (i32, i32, i32) {
    %c0_i32 = arith.constant 0 : i32
    %c0_i32_0 = arith.constant 0 : i32
    %c0_i32_1 = arith.constant 0 : i32
    return %arg0, %c0_i32, %c0_i32_0 : i32, i32, i32
  }
  func.func @transform_8(%arg0: i32, %arg1: i32) -> (i32, i32, i32) {
    %c0_i32 = arith.constant 0 : i32
    %c0_i32_0 = arith.constant 0 : i32
    %c0_i32_1 = arith.constant 0 : i32
    return %arg0, %c0_i32, %c0_i32_0 : i32, i32, i32
  }
  func.func @transform_9(%arg0: i32, %arg1: i32) -> (i32, i32, i32) {
    %c0_i32 = arith.constant 0 : i32
    %c0_i32_0 = arith.constant 0 : i32
    %c0_i32_1 = arith.constant 0 : i32
    return %arg0, %c0_i32, %c0_i32_0 : i32, i32, i32
  }
  func.func @transform_10(%arg0: i32, %arg1: i32) -> (i32, i32, i32) {
    %c0_i32 = arith.constant 0 : i32
    %c0_i32_0 = arith.constant 0 : i32
    %c0_i32_1 = arith.constant 0 : i32
    return %arg0, %c0_i32, %c0_i32_0 : i32, i32, i32
  }
  func.func @transform_11(%arg0: i32, %arg1: i32) -> (i32, i32, i32) {
    %c0_i32 = arith.constant 0 : i32
    %c0_i32_0 = arith.constant 0 : i32
    %c0_i32_1 = arith.constant 0 : i32
    return %arg0, %c0_i32, %c0_i32_0 : i32, i32, i32
  }
  func.func @transform_12(%arg0: i32, %arg1: i32) -> (i32, i32, i32) {
    %c0_i32 = arith.constant 0 : i32
    %c0_i32_0 = arith.constant 0 : i32
    %c0_i32_1 = arith.constant 0 : i32
    return %arg0, %c0_i32, %c0_i32_0 : i32, i32, i32
  }
  func.func @transform_13(%arg0: i32, %arg1: i32) -> (i32, i32, i32) {
    %c0_i32 = arith.constant 0 : i32
    %c0_i32_0 = arith.constant 0 : i32
    %c0_i32_1 = arith.constant 0 : i32
    return %arg0, %c0_i32, %c0_i32_0 : i32, i32, i32
  }
  func.func @transform_14(%arg0: i32, %arg1: i32) -> (i32, i32, i32) {
    %c0_i32 = arith.constant 0 : i32
    %c0_i32_0 = arith.constant 0 : i32
    %c0_i32_1 = arith.constant 0 : i32
    return %arg0, %c0_i32, %c0_i32_0 : i32, i32, i32
  }
  func.func @transform_15(%arg0: i32, %arg1: i32) -> (i32, i32, i32) {
    %c0_i32 = arith.constant 0 : i32
    %c0_i32_0 = arith.constant 0 : i32
    %c0_i32_1 = arith.constant 0 : i32
    %c0_i32_2 = arith.constant 0 : i32
    return %c0_i32, %c0_i32_0, %c0_i32_1 : i32, i32, i32
  }
  func.func @transform_16(%arg0: i32, %arg1: i32) -> (i32, i32, i32) {
    %c0_i32 = arith.constant 0 : i32
    %c0_i32_0 = arith.constant 0 : i32
    %c0_i32_1 = arith.constant 0 : i32
    %c0_i32_2 = arith.constant 0 : i32
    return %c0_i32, %c0_i32_0, %c0_i32_1 : i32, i32, i32
  }
  func.func @transform_17(%arg0: i32, %arg1: i32) -> (i32, i32) {
    %c0_i32 = arith.constant 0 : i32
    %c0_i32_0 = arith.constant 0 : i32
    %c0_i32_1 = arith.constant 0 : i32
    return %c0_i32, %c0_i32_0 : i32, i32
  }
  func.func @transform_18(%arg0: i32, %arg1: i32) -> (i32, i32) {
    %c0_i32 = arith.constant 0 : i32
    %c0_i32_0 = arith.constant 0 : i32
    %c0_i32_1 = arith.constant 0 : i32
    return %c0_i32, %c0_i32_0 : i32, i32
  }
  func.func @transform_19(%arg0: i32, %arg1: i32) -> i32 {
    %c0_i32 = arith.constant 0 : i32
    %c0_i32_0 = arith.constant 0 : i32
    return %c0_i32 : i32
  }
  func.func @transform_20(%arg0: i32, %arg1: i32) -> (i32, i32) {
    %c0_i32 = arith.constant 0 : i32
    %c0_i32_0 = arith.constant 0 : i32
    %c0_i32_1 = arith.constant 0 : i32
    return %c0_i32, %c0_i32_0 : i32, i32
  }
}

</mosaic_0001>

<bundles_post_ra>
// kernel: tpu_custom_call.1
= control target key start
LH: loop header
LB: loop body
LE: loop exit
PB: predicated region body
PF: predicated region fallthrough
CT: control target
= control target key end

     0   :  { %s5858_s0 = inlined_call_operand.vmem [shape: f32[32,128], index: 0, kind: input, shape index: {}]   ;;  %s5859_s1 = inlined_call_operand.vmem [shape: f32[1,128], index: 1, kind: input, shape index: {}]   ;;  %s5860_s2 = inlined_call_operand.vmem [shape: s32[1,128], index: 2, kind: input, shape index: {}]   ;;  %s5861_s3 = inlined_call_operand.vmem [shape: s32[128,1], index: 3, kind: input, shape index: {}]   ;;  %s5862_s4 = inlined_call_operand.vmem [shape: f32[512,1], index: 4, kind: input, shape index: {}]   ;;  %s5863_s5 = inlined_call_operand.vmem [shape: bf16[2,32,512], index: 5, kind: input, shape index: {}]   ;;  %s5864_s6 = inlined_call_operand.vmem [shape: f32[2,32,1], index: 6, kind: input, shape index: {}]   ;;  %s5865_s7 = inlined_call_operand.vmem [shape: bf16[2,32,32], index: 7, kind: input, shape index: {}]   ;;  %s5866_s8 = inlined_call_operand.vmem [shape: f32[2,32,1], index: 8, kind: input, shape index: {}]   ;;  %s5867_s9 = inlined_call_operand.vmem [shape: bf16[2,32,32], index: 9, kind: input, shape index: {}]   ;;  %s5868_s10 = inlined_call_operand.vmem [shape: f32[2,32,1], index: 10, kind: input, shape index: {}]   ;;  %s5869_s11 = inlined_call_operand.vmem [shape: bf16[2,32,32], index: 11, kind: input, shape index: {}]   ;;  %s5870_s12 = inlined_call_operand.vmem [shape: f32[2,32,1], index: 12, kind: input, shape index: {}]   ;;  %s5871_s13 = inlined_call_operand.vmem [shape: bf16[2,32,32], index: 13, kind: input, shape index: {}]   ;;  %s5872_s14 = inlined_call_operand.vmem [shape: f32[2,32,1], index: 14, kind: input, shape index: {}]   ;;  %s5873_s15 = inlined_call_operand.vmem [shape: bf16[4,32,32], index: 15, kind: input, shape index: {}]   ;;  %s5874_s16 = inlined_call_operand.vmem [shape: f32[4,32,1], index: 16, kind: input, shape index: {}]   ;;  %s5875_s17 = inlined_call_operand.vmem [shape: bf16[8,32], index: 17, kind: input, shape index: {}]   ;;  %s5876_s18 = inlined_call_operand.vmem [shape: f32[8,1], index: 18, kind: input, shape index: {}]   ;;  %s5877_s19 = inlined_call_operand.vmem [shape: f32[4], index: 19, kind: input, shape index: {}]   ;;  %s5878_s20 = inlined_call_operand.hbm [shape: f32[8,128], index: 20, kind: output, shape index: {}]  }
   0x1   :  { %5885 = sst [smem:[#allocation15_spill]] %s5858_s0 }
   0x2   :  { %5886 = sst [smem:[#allocation16_spill]] %s5859_s1 }
   0x3   :  { %5887 = sst [smem:[#allocation17_spill]] %s5860_s2 }
   0x4   :  { %5888 = sst [smem:[#allocation18_spill]] %s5861_s3 }
   0x5   :  { %5889 = sst [smem:[#allocation19_spill]] %s5862_s4 }
   0x6   :  { %5890 = sst [smem:[#allocation20_spill]] %s5863_s5 }
   0x7   :  { %5891 = sst [smem:[#allocation21_spill]] %s5864_s6 }
   0x8   :  { %5892 = sst [smem:[#allocation22_spill]] %s5865_s7 }
   0x9   :  { %5893 = sst [smem:[#allocation23_spill]] %s5866_s8 }
   0xa   :  { %5894 = sst [smem:[#allocation24_spill]] %s5867_s9 }
   0xb   :  { %5895 = sst [smem:[#allocation25_spill]] %s5875_s17 }
   0xc   :  { %5896 = sst [smem:[#allocation26_spill]] %s5877_s19 }
   0xd   :  { %5897 = sst [smem:[#allocation27_spill]] %s5878_s20 }
   0xe   :  { %25 = vsyncpa [#allocation8], 0 }
   0xf   :  { %26 = vsyncpa [#allocation7], 0  ;;  %s5220_s1 = smov 0   ;;  %s5222_s22 = smov 0  }
  0x10   :  { %s5224_s23 = smov 0  }
  0x11 LB: > { %5898 = sst [smem:[#allocation12_spill]] %s5100_s22  ;;  %s5882_s24 = sadd.s32 4294967295, %s5104_s23   ;;  %s5104_s23 = sphi %s5224_s23, %s32_s23   ;;  %s5100_s22 = sphi %s5222_s22, %s5921_s22   ;;  %s5096_s1 = sphi %s5220_s1, %s5920_s1  }
  0x12   : > { %5899 = sst [smem:[#allocation13_spill]] %s5104_s23  ;;  %s44_s2 = sadd.s32 1, %s5100_s22 }
  0x13   : > { %p46_p0 = scmp.ge.s32.totalorder %s44_s2, 2  ;;  %p3952_p1 = scmp.ge.s32.totalorder %s5104_s23, 1 }
  0x14   : > { %p555_p2 = scmp.lt.s32.totalorder %s5104_s23, 3  ;;  %p5247_p4 = scmp.eq.s32.totalorder %s5882_s24, 0 }
  0x15   : > { %s5923_s2 = smov (%p46_p0, %s44_s2), 0  ;;  %s5903_s19 = sld [smem:[#allocation26_spill]] }
  0x16   : > { %5900 = sst [smem:[#allocation14_spill]] %s5923_s2  ;;  %p5241_p3 = pnand %p3952_p1, %p555_p2 }
  0x18   : > { %p4748_p5 = pneg %p5241_p3 }
  0x1a   : > { %p4749_p6 = pnand %p5247_p4, %p4748_p5 }
  0x1b   : > { %s607_s28 = sshll.u32 %s5903_s19, 4  ;;  %s608_s28 = int_to_ptr.vmem [resolvable:$true] %s607_s28 }
  0x1c   : > { %s5035_s4 = scalar_lea.vmem %s608_s28, 16  ;;  %p5037_p8 = pneg %p4749_p6 }
  0x1d   : > { %p5036_p7 = scmp.ne.s32.totalorder %s608_s28, %s5035_s4  ;;  %p5043_p11 = scmp.lt.s32.totalorder %s608_s28, %s608_s28 }
  0x1e   : > { %p5044_p12 = scmp.lt.s32.totalorder %s5035_s4, %s5035_s4 }
  0x1f   : > { %p5038_p9 = pnand %p5037_p8, %p5036_p7 }
  0x20   : > { %p5045_p13 = por %p5044_p12, %p5043_p11 }
  0x21   : > { %p5039_p10 = pneg %p5038_p9 }
  0x23   : > { %p5046_p0 = pnand %p5045_p13, %p5039_p10 }
  0x25   : > { %5049 = shalt.err (!%p5046_p0)
}
  0x26   : > { %s5106_s29 = smov [#allocation6]   ;;  %700 = sbr.rel (%p5241_p3) target bundleno = 2861 (0xb2d), region = 100 }
  0x27   : > { %4751 = dma.vmem_to_smem (!%p4749_p6), %s608_s28, 16, %s5106_s29, [#allocation8]  }
  0x2b   : > { %5087 = dma.done.wait (%p5247_p4), [#allocation8], 16  }
  0x2c   : > { %5089 = vsyncadd (%p5247_p4), [#allocation8], 4294967280 }
  0x2d   : > { %706 = sfence }
  0x2e   : > { %p822_p1 = scmp.lt.s32.totalorder %s5096_s1, 1  ;;  %p873_p2 = scmp.eq.s32.totalorder %s5096_s1, 0 }
  0x2f   : > { %s5904_s5 = sld [smem:[#allocation20_spill]] }
  0x30   : > { %s823_s30 = scalar_select %p822_p1, %s5096_s1, 1 }
  0x31   : > { %s5905_s6 = sld [smem:[#allocation21_spill]] }
  0x32   : > { %s4235_s0 = sshll.u32 %s823_s30, 6  ;;  %s4236_s21 = sshll.u32 %s823_s30, 5 }
  0x33   : > { %s4237_s3 = sshll.u32 %s823_s30, 4  ;;  %s5906_s8 = sld [smem:[#allocation23_spill]] }
  0x34   : > { %s5907_s7 = sld [smem:[#allocation22_spill]]  ;;  %s5295_s4 = scalar_lea.vmem %s5868_s10, %s4236_s21 }
  0x35   : > { %s5270_s25 = scalar_lea.vmem %s5904_s5, %s4235_s0  ;;  %s5908_s9 = sld [smem:[#allocation24_spill]] }
  0x36   : > { %s5300_s19 = scalar_lea.vmem %s5869_s11, %s4237_s3  ;;  %s5305_s20 = scalar_lea.vmem %s5870_s12, %s4236_s21 }
  0x37   : > { %s5275_s29 = scalar_lea.vmem %s5905_s6, %s4236_s21  ;;  %s5310_s17 = scalar_lea.vmem %s5871_s13, %s4237_s3 }
  0x38   : > { %s5315_s27 = scalar_lea.vmem %s5872_s14, %s4236_s21  ;;  %878 = sbr.rel (!%p873_p2) target bundleno = 66 (0x42), region = 108 }
  0x39   : > { %s5280_s2 = scalar_lea.vmem %s5906_s8, %s4236_s21  ;;  %s5909_s30 = sld [smem:[#allocation15_spill]] (%p873_p2) }
  0x3a   : > { %s5285_s23 = scalar_lea.vmem %s5907_s7, %s4237_s3 }
  0x3b   : > { %s5290_s0 = scalar_lea.vmem %s5908_s9, %s4237_s3 }
  0x3f   : > { %v879_v0 = vld [vmem:[%s5909_s30] sm:$0xff]  ;;  %v880_v1 = vld [vmem:[%s5909_s30 + $0x8] sm:$0xff]  ;;  %v881_v2 = vld [vmem:[%s5909_s30 + $0x10] sm:$0xff] }
  0x40   : > { %883 = vst [vmem:[#allocation2 + $0x10] sm:$0xff] %v879_v0  ;;  %884 = vst [vmem:[#allocation2] sm:$0xff] %v880_v1  ;;  %v882_v3 = vld [vmem:[%s5909_s30 + $0x18] sm:$0xff] }
  0x41   : > { %885 = vst [vmem:[#allocation2 + $0x18] sm:$0xff] %v881_v2  ;;  %886 = vst [vmem:[#allocation2 + $0x8] sm:$0xff] %v882_v3 }
  0x42 PF: > { %vm934_vm0 = vcmask 261120   ;;  %v5107_v9 = vmov 0   ;;  %v4791_v11 = vld [vmem:[%s5290_s0] sm:$0xff]   ;;  %v902_v12 = vld [vmem:[%s5295_s4 + $0x10] sm:$0xff]  ;;  %v903_v14 = vld [vmem:[%s5295_s4 + $0x18] sm:$0xff]  ;;  %v5108_v17 = vmov 0.0  }
  0x43   : > { %4790 = vset.pattern.permute.xlu1 %v5107_v9  ;;  %4789 = vset.pattern.permute.xlu0 %v5107_v9  ;;  %v900_v13 = vld [vmem:[%s5295_s4] sm:$0xff]  ;;  %v4792_v15 = vld [vmem:[%s5290_s0 + $0x8] sm:$0xff]   ;;  %1010 = vst [vmem:[#allocation4] sm:$0xff] %v5108_v17  ;;  %1011 = vst [vmem:[#allocation4 + $0x18] sm:$0xff] %v5108_v17  ;;  %p3989_p3 = scmp.ne.s32.totalorder %s5096_s1, 0 }
  0x44   : > { %4632 = vmatprep.mubr.msk.bf16.mxu0 %vm934_vm0, %v4791_v11  ;;  %916 = vperm.xlu1 %4790, %v902_v12   ;;  %v901_v16 = vld [vmem:[%s5295_s4 + $0x8] sm:$0xff]  ;;  %1012 = vst [vmem:[#allocation4 + $0x8] sm:$0xff] %v5108_v17  ;;  %1013 = vst [vmem:[#allocation4 + $0x10] sm:$0xff] %v5108_v17  ;;  %s5910_s0 = sld [smem:[#allocation19_spill]] (!%p3989_p3) }
  0x45   : > { %906 = vperm.xlu0 %4789, %v900_v13   ;;  %s5911_s28 = sld [smem:[#allocation16_spill]] (!%p3989_p3) }
  0x47   : > { %v894_v6 = vld [vmem:[#allocation2 + $0x10] sm:$0xff]  ;;  %v895_v8 = vld [vmem:[#allocation2] sm:$0xff] }
  0x48   : > { %v896_v4 = vld [vmem:[#allocation2 + $0x18] sm:$0xff]  ;;  %v897_v5 = vld [vmem:[#allocation2 + $0x8] sm:$0xff]  ;;  %v898_v10 = vpack.c.bf16 %v895_v8, %v894_v6  ;;  %921 = vperm.xlu1 %4790, %v903_v14  }
  0x49   : > { %v899_v7 = vpack.c.bf16 %v897_v5, %v896_v4  ;;  %911 = vperm.xlu0 %4789, %v901_v16  }
  0x4b   : > { %4628 = vmatprep.subr.bf16.mxu0 %v899_v7 }
  0x4c   : > { %4629 = vmatpush3.bf16.msra.mxu0 %v899_v7 }
  0x4d   : > { %4630 = vmatprep.subr.bf16.mxu0 %v898_v10 }
  0x50   : > { %4631 = vmatpush3.bf16.msra.mxu0 %v898_v10 }
  0x53   : > { %4633 = vmatmul.mubr.msk.bf16.vlgmr.msra.gmra.mxu0 %vm934_vm0, %v4792_v15 }
  0xbf   : > { %v917_v18 = vpop.permute.xlu1 %916 }
  0xc0   : > { %v907_v19 = vpop.permute.xlu0 %906 }
  0xc3   : > { %v922_v22 = vpop.permute.xlu1 %921 }
  0xc4   : > { %v912_v26 = vpop.permute.xlu0 %911 }
 0x113   : > { %v4634_v20 = vpop.f32.mrf.mxu0 }
 0x114   : > { %v984_v24 = vadd.f32 %v4634_v20, %v917_v18 }
 0x115   : > { %v975_v21 = vpop.f32.mrf.mxu0 }
 0x116   : > { %v976_v28 = vadd.f32 %v975_v21, %v907_v19 }
 0x117   : > { %v4635_v23 = vpop.f32.mrf.mxu0 }
 0x118   : > { %v987_v25 = vadd.f32 %v4635_v23, %v922_v22 }
 0x119   : > { %v978_v27 = vpop.f32.mrf.mxu0 }
 0x11a   : > { %v4323_v29 = vpack.c.bf16 %v987_v25, %v984_v24  ;;  %v979_v30 = vadd.f32 %v978_v27, %v912_v26  ;;  %1016 = sbr.rel (%p3989_p3) target bundleno = 563 (0x233), region = 116 }
 0x11c   : > { %4485 = vst [vmem:[#allocation3 + $0x8] sm:$0xff] %v4323_v29   ;;  %v4318_v31 = vpack.c.bf16 %v979_v30, %v976_v28 }
 0x11e   : > { %4319 = vst [vmem:[#allocation3] sm:$0xff] %v4318_v31  }
 0x11f   : > { %v1020_v32 = vld [vmem:[%s5910_s0 + $0x10] sm:$0xff]  ;;  %v1018_v33 = vld [vmem:[%s5910_s0] sm:$0xff]  ;;  %v5109_v34 = vmov 0   ;;  %v1021_v35 = vld [vmem:[%s5910_s0 + $0x18] sm:$0xff] }
 0x120   : > { %4794 = vset.pattern.permute.xlu1 %v5109_v34  ;;  %4793 = vset.pattern.permute.xlu0 %v5109_v34  ;;  %v1019_v36 = vld [vmem:[%s5910_s0 + $0x8] sm:$0xff]  ;;  %v1022_v38 = vld [vmem:[%s5910_s0 + $0x20] sm:$0xff]  ;;  %v1025_v39 = vld [vmem:[%s5910_s0 + $0x38] sm:$0xff] }
 0x121   : > { %1100 = vperm.xlu1 %4794, %v1020_v32   ;;  %1090 = vperm.xlu0 %4793, %v1018_v33   ;;  %v1023_v37 = vld [vmem:[%s5910_s0 + $0x28] sm:$0xff]  ;;  %v1024_v40 = vld [vmem:[%s5910_s0 + $0x30] sm:$0xff]  ;;  %v1026_v42 = vld [vmem:[%s5910_s0 + $0x40] sm:$0xff] }
 0x122   : > { %v1027_v41 = vld [vmem:[%s5910_s0 + $0x48] sm:$0xff]  ;;  %v1029_v43 = vld [vmem:[%s5910_s0 + $0x58] sm:$0xff]  ;;  %v1028_v44 = vld [vmem:[%s5910_s0 + $0x50] sm:$0xff] }
 0x123   : > { %v1031_v45 = vld [vmem:[%s5910_s0 + $0x68] sm:$0xff]  ;;  %v1030_v46 = vld [vmem:[%s5910_s0 + $0x60] sm:$0xff]  ;;  %v1033_v47 = vld [vmem:[%s5910_s0 + $0x78] sm:$0xff] }
 0x124   : > { %v1032_v48 = vld [vmem:[%s5910_s0 + $0x70] sm:$0xff]  ;;  %v1035_v49 = vld [vmem:[%s5910_s0 + $0x88] sm:$0xff]  ;;  %v1034_v50 = vld [vmem:[%s5910_s0 + $0x80] sm:$0xff] }
 0x125   : > { %1105 = vperm.xlu1 %4794, %v1021_v35   ;;  %1095 = vperm.xlu0 %4793, %v1019_v36   ;;  %v1037_v51 = vld [vmem:[%s5910_s0 + $0x98] sm:$0xff]  ;;  %v1036_v52 = vld [vmem:[%s5910_s0 + $0x90] sm:$0xff]  ;;  %v1039_v53 = vld [vmem:[%s5910_s0 + $0xa8] sm:$0xff] }
 0x126   : > { %v1038_v54 = vld [vmem:[%s5910_s0 + $0xa0] sm:$0xff]  ;;  %v1041_v55 = vld [vmem:[%s5910_s0 + $0xb8] sm:$0xff]  ;;  %v1040_v56 = vld [vmem:[%s5910_s0 + $0xb0] sm:$0xff] }
 0x127   : > { %v1043_v57 = vld [vmem:[%s5910_s0 + $0xc8] sm:$0xff]  ;;  %v1042_v58 = vld [vmem:[%s5910_s0 + $0xc0] sm:$0xff]  ;;  %v1045_v59 = vld [vmem:[%s5910_s0 + $0xd8] sm:$0xff] }
 0x128   : > { %v1044_v60 = vld [vmem:[%s5910_s0 + $0xd0] sm:$0xff]  ;;  %v1047_v61 = vld [vmem:[%s5910_s0 + $0xe8] sm:$0xff]  ;;  %v1046_v62 = vld [vmem:[%s5910_s0 + $0xe0] sm:$0xff] }
 0x129   : > { %1115 = vperm.xlu1 %4794, %v1023_v37   ;;  %1110 = vperm.xlu0 %4793, %v1022_v38   ;;  %v1049_v63 = vld [vmem:[%s5910_s0 + $0xf8] sm:$0xff]  ;;  %v1048_v0 = vld [vmem:[%s5910_s0 + $0xf0] sm:$0xff]  ;;  %v1051_v1 = vld [vmem:[%s5910_s0 + $0x108] sm:$0xff] }
 0x12a   : > { %v1050_v2 = vld [vmem:[%s5910_s0 + $0x100] sm:$0xff]  ;;  %v1053_v3 = vld [vmem:[%s5910_s0 + $0x118] sm:$0xff]  ;;  %v1052_v4 = vld [vmem:[%s5910_s0 + $0x110] sm:$0xff] }
 0x12b   : > { %v1055_v5 = vld [vmem:[%s5910_s0 + $0x128] sm:$0xff]  ;;  %v1054_v6 = vld [vmem:[%s5910_s0 + $0x120] sm:$0xff]  ;;  %v1057_v7 = vld [vmem:[%s5910_s0 + $0x138] sm:$0xff] }
 0x12c   : > { %v1056_v8 = vld [vmem:[%s5910_s0 + $0x130] sm:$0xff]  ;;  %v1059_v10 = vld [vmem:[%s5910_s0 + $0x148] sm:$0xff]  ;;  %v1058_v11 = vld [vmem:[%s5910_s0 + $0x140] sm:$0xff] }
 0x12d   : > { %1125 = vperm.xlu1 %4794, %v1025_v39   ;;  %1120 = vperm.xlu0 %4793, %v1024_v40   ;;  %v1061_v12 = vld [vmem:[%s5910_s0 + $0x158] sm:$0xff]  ;;  %v1060_v13 = vld [vmem:[%s5910_s0 + $0x150] sm:$0xff]  ;;  %v1063_v14 = vld [vmem:[%s5910_s0 + $0x168] sm:$0xff] }
 0x12e   : > { %v1062_v15 = vld [vmem:[%s5910_s0 + $0x160] sm:$0xff]  ;;  %v1065_v16 = vld [vmem:[%s5910_s0 + $0x178] sm:$0xff]  ;;  %v1064_v17 = vld [vmem:[%s5910_s0 + $0x170] sm:$0xff] }
 0x12f   : > { %v1067_v18 = vld [vmem:[%s5910_s0 + $0x188] sm:$0xff]  ;;  %v1066_v19 = vld [vmem:[%s5910_s0 + $0x180] sm:$0xff]  ;;  %v1069_v20 = vld [vmem:[%s5910_s0 + $0x198] sm:$0xff] }
 0x130   : > { %v1068_v21 = vld [vmem:[%s5910_s0 + $0x190] sm:$0xff]  ;;  %v1071_v22 = vld [vmem:[%s5910_s0 + $0x1a8] sm:$0xff]  ;;  %v1070_v23 = vld [vmem:[%s5910_s0 + $0x1a0] sm:$0xff] }
 0x131   : > { %1135 = vperm.xlu1 %4794, %v1027_v41   ;;  %1130 = vperm.xlu0 %4793, %v1026_v42   ;;  %v1073_v24 = vld [vmem:[%s5910_s0 + $0x1b8] sm:$0xff]  ;;  %v1072_v25 = vld [vmem:[%s5910_s0 + $0x1b0] sm:$0xff]  ;;  %v1075_v26 = vld [vmem:[%s5910_s0 + $0x1c8] sm:$0xff] }
 0x132   : > { %v1074_v27 = vld [vmem:[%s5910_s0 + $0x1c0] sm:$0xff]  ;;  %v1077_v28 = vld [vmem:[%s5910_s0 + $0x1d8] sm:$0xff]  ;;  %v1076_v29 = vld [vmem:[%s5910_s0 + $0x1d0] sm:$0xff] }
 0x133   : > { %v1079_v30 = vld [vmem:[%s5910_s0 + $0x1e8] sm:$0xff]  ;;  %v1078_v31 = vld [vmem:[%s5910_s0 + $0x1e0] sm:$0xff]  ;;  %v1081_v33 = vld [vmem:[%s5910_s0 + $0x1f8] sm:$0xff] }
 0x134   : > { %v5531_v32 = vld [vmem:[%s5911_s28] ss:$0 sm:$0xff]  ;;  %v1080_v34 = vld [vmem:[%s5910_s0 + $0x1f0] sm:$0xff] }
 0x135   : > { %1145 = vperm.xlu1 %4794, %v1029_v43   ;;  %1140 = vperm.xlu0 %4793, %v1028_v44  }
 0x139   : > { %1155 = vperm.xlu1 %4794, %v1031_v45   ;;  %1150 = vperm.xlu0 %4793, %v1030_v46  }
 0x13d   : > { %1165 = vperm.xlu1 %4794, %v1033_v47   ;;  %1160 = vperm.xlu0 %4793, %v1032_v48  }
 0x141   : > { %1175 = vperm.xlu1 %4794, %v1035_v49   ;;  %1170 = vperm.xlu0 %4793, %v1034_v50  }
 0x145   : > { %1185 = vperm.xlu1 %4794, %v1037_v51   ;;  %1180 = vperm.xlu0 %4793, %v1036_v52  }
 0x149   : > { %1195 = vperm.xlu1 %4794, %v1039_v53   ;;  %1190 = vperm.xlu0 %4793, %v1038_v54  }
 0x14d   : > { %1205 = vperm.xlu1 %4794, %v1041_v55   ;;  %1200 = vperm.xlu0 %4793, %v1040_v56  }
 0x151   : > { %1215 = vperm.xlu1 %4794, %v1043_v57   ;;  %1210 = vperm.xlu0 %4793, %v1042_v58  }
 0x155   : > { %1225 = vperm.xlu1 %4794, %v1045_v59   ;;  %1220 = vperm.xlu0 %4793, %v1044_v60  }
 0x159   : > { %1235 = vperm.xlu1 %4794, %v1047_v61   ;;  %1230 = vperm.xlu0 %4793, %v1046_v62  }
 0x15d   : > { %1245 = vperm.xlu1 %4794, %v1049_v63   ;;  %1240 = vperm.xlu0 %4793, %v1048_v0  }
 0x161   : > { %1255 = vperm.xlu1 %4794, %v1051_v1   ;;  %1250 = vperm.xlu0 %4793, %v1050_v2  }
 0x165   : > { %1265 = vperm.xlu1 %4794, %v1053_v3   ;;  %1260 = vperm.xlu0 %4793, %v1052_v4  }
 0x169   : > { %1275 = vperm.xlu1 %4794, %v1055_v5   ;;  %1270 = vperm.xlu0 %4793, %v1054_v6  }
 0x16d   : > { %1285 = vperm.xlu1 %4794, %v1057_v7   ;;  %1280 = vperm.xlu0 %4793, %v1056_v8  }
 0x171   : > { %1295 = vperm.xlu1 %4794, %v1059_v10   ;;  %1290 = vperm.xlu0 %4793, %v1058_v11  }
 0x175   : > { %1305 = vperm.xlu1 %4794, %v1061_v12   ;;  %1300 = vperm.xlu0 %4793, %v1060_v13  }
 0x179   : > { %1315 = vperm.xlu1 %4794, %v1063_v14   ;;  %1310 = vperm.xlu0 %4793, %v1062_v15  }
 0x17d   : > { %1325 = vperm.xlu1 %4794, %v1065_v16   ;;  %1320 = vperm.xlu0 %4793, %v1064_v17  }
 0x181   : > { %1335 = vperm.xlu1 %4794, %v1067_v18   ;;  %1330 = vperm.xlu0 %4793, %v1066_v19  }
 0x185   : > { %1345 = vperm.xlu1 %4794, %v1069_v20   ;;  %1340 = vperm.xlu0 %4793, %v1068_v21  }
 0x189   : > { %1355 = vperm.xlu1 %4794, %v1071_v22   ;;  %1350 = vperm.xlu0 %4793, %v1070_v23  }
 0x18d   : > { %1365 = vperm.xlu1 %4794, %v1073_v24   ;;  %1360 = vperm.xlu0 %4793, %v1072_v25  }
 0x191   : > { %1375 = vperm.xlu1 %4794, %v1075_v26   ;;  %1370 = vperm.xlu0 %4793, %v1074_v27  }
 0x195   : > { %1385 = vperm.xlu1 %4794, %v1077_v28   ;;  %1380 = vperm.xlu0 %4793, %v1076_v29  }
 0x199   : > { %1395 = vperm.xlu1 %4794, %v1079_v30   ;;  %1390 = vperm.xlu0 %4793, %v1078_v31  }
 0x19c   : > { %v1101_v35 = vpop.permute.xlu1 %1100  ;;  %v1091_v36 = vpop.permute.xlu0 %1090 }
 0x19d   : > { %v1410_v37 = vsub.f32 %v5531_v32, %v1101_v35  ;;  %v1408_v38 = vsub.f32 %v5531_v32, %v1091_v36  ;;  %1405 = vperm.xlu1 %4794, %v1081_v33   ;;  %1400 = vperm.xlu0 %4793, %v1080_v34  }
 0x19f   : > { %v1474_v39 = vmul.f32 %v1410_v37, %v1410_v37  ;;  %v1472_v40 = vmul.f32 %v1408_v38, %v1408_v38 }
 0x1a0   : > { %v1106_v41 = vpop.permute.xlu1 %1105  ;;  %v1096_v42 = vpop.permute.xlu0 %1095 }
 0x1a1   : > { %v1538_v43 = vsub.f32 0.0, %v1474_v39  ;;  %v1536_v44 = vsub.f32 0.0, %v1472_v40  ;;  %v1411_v45 = vsub.f32 %v5531_v32, %v1106_v41  ;;  %v1409_v46 = vsub.f32 %v5531_v32, %v1096_v42 }
 0x1a3   : > { %v1604_v47 = vmul.f32 1.442695, %v1538_v43  ;;  %v1475_v48 = vmul.f32 %v1411_v45, %v1411_v45  ;;  %v1473_v49 = vmul.f32 %v1409_v46, %v1409_v46  ;;  %v1600_v50 = vmul.f32 1.442695, %v1536_v44 }
 0x1a4   : > { %v1116_v51 = vpop.permute.xlu1 %1115  ;;  %v1111_v52 = vpop.permute.xlu0 %1110 }
 0x1a5   : > { %v1539_v53 = vsub.f32 0.0, %v1475_v48  ;;  %v1537_v54 = vsub.f32 0.0, %v1473_v49  ;;  %v1413_v55 = vsub.f32 %v5531_v32, %v1116_v51  ;;  %v1412_v56 = vsub.f32 %v5531_v32, %v1111_v52 }
 0x1a6   : > { %4795 = vpow2.f32 %v1604_v47 }
 0x1a7   : > { %v1606_v57 = vmul.f32 1.442695, %v1539_v53  ;;  %v1602_v58 = vmul.f32 1.442695, %v1537_v54  ;;  %v1477_v59 = vmul.f32 %v1413_v55, %v1413_v55  ;;  %4797 = vpow2.f32 %v1600_v50 }
 0x1a8   : > { %v1476_v60 = vmul.f32 %v1412_v56, %v1412_v56  ;;  %v1126_v61 = vpop.permute.xlu1 %1125  ;;  %v1121_v62 = vpop.permute.xlu0 %1120 }
 0x1a9   : > { %4799 = vpow2.f32 %v1606_v57  ;;  %v1541_v63 = vsub.f32 0.0, %v1477_v59  ;;  %v1415_v0 = vsub.f32 %v5531_v32, %v1126_v61  ;;  %v1414_v1 = vsub.f32 %v5531_v32, %v1121_v62 }
 0x1aa   : > { %4801 = vpow2.f32 %v1602_v58  ;;  %v1540_v2 = vsub.f32 0.0, %v1476_v60 }
 0x1ab   : > { %v1610_v3 = vmul.f32 1.442695, %v1541_v63  ;;  %v1479_v4 = vmul.f32 %v1415_v0, %v1415_v0  ;;  %v1478_v5 = vmul.f32 %v1414_v1, %v1414_v1 }
 0x1ac   : > { %v1608_v6 = vmul.f32 1.442695, %v1540_v2  ;;  %v1136_v7 = vpop.permute.xlu1 %1135  ;;  %v1131_v8 = vpop.permute.xlu0 %1130 }
 0x1ad   : > { %4803 = vpow2.f32 %v1610_v3  ;;  %v1543_v10 = vsub.f32 0.0, %v1479_v4  ;;  %v1542_v11 = vsub.f32 0.0, %v1478_v5  ;;  %v1417_v12 = vsub.f32 %v5531_v32, %v1136_v7 }
 0x1ae   : > { %4805 = vpow2.f32 %v1608_v6  ;;  %v1416_v13 = vsub.f32 %v5531_v32, %v1131_v8 }
 0x1af   : > { %v1614_v14 = vmul.f32 1.442695, %v1543_v10  ;;  %v1612_v15 = vmul.f32 1.442695, %v1542_v11  ;;  %v1481_v16 = vmul.f32 %v1417_v12, %v1417_v12 }
 0x1b0   : > { %v1480_v17 = vmul.f32 %v1416_v13, %v1416_v13  ;;  %v1146_v18 = vpop.permute.xlu1 %1145  ;;  %v1141_v19 = vpop.permute.xlu0 %1140 }
 0x1b1   : > { %4807 = vpow2.f32 %v1614_v14  ;;  %v1545_v20 = vsub.f32 0.0, %v1481_v16  ;;  %v1419_v21 = vsub.f32 %v5531_v32, %v1146_v18  ;;  %v1418_v22 = vsub.f32 %v5531_v32, %v1141_v19 }
 0x1b2   : > { %4809 = vpow2.f32 %v1612_v15  ;;  %v1544_v23 = vsub.f32 0.0, %v1480_v17 }
 0x1b3   : > { %v1618_v24 = vmul.f32 1.442695, %v1545_v20  ;;  %v1483_v25 = vmul.f32 %v1419_v21, %v1419_v21  ;;  %v1482_v26 = vmul.f32 %v1418_v22, %v1418_v22  ;;  %v4796_v27 = vpop.eup %4795 }
 0x1b4   : > { %v1616_v28 = vmul.f32 1.442695, %v1544_v23  ;;  %v1156_v29 = vpop.permute.xlu1 %1155  ;;  %v1151_v30 = vpop.permute.xlu0 %1150 }
 0x1b5   : > { %v4798_v31 = vpop.eup %4797  ;;  %4811 = vpow2.f32 %v1618_v24  ;;  %v1547_v33 = vsub.f32 0.0, %v1483_v25  ;;  %v1546_v34 = vsub.f32 0.0, %v1482_v26  ;;  %v1421_v35 = vsub.f32 %v5531_v32, %v1156_v29 }
 0x1b6   : > { %v4800_v36 = vpop.eup %4799  ;;  %4813 = vpow2.f32 %v1616_v28  ;;  %v1420_v37 = vsub.f32 %v5531_v32, %v1151_v30 }
 0x1b7   : > { %v4802_v38 = vpop.eup %4801  ;;  %v4333_v39 = vpack.c.bf16 %v4800_v36, %v4796_v27  ;;  %v1622_v40 = vmul.f32 1.442695, %v1547_v33  ;;  %v1620_v41 = vmul.f32 1.442695, %v1546_v34  ;;  %v1485_v42 = vmul.f32 %v1421_v35, %v1421_v35 }
 0x1b8   : > { %v4328_v43 = vpack.c.bf16 %v4802_v38, %v4798_v31  ;;  %v1484_v44 = vmul.f32 %v1420_v37, %v1420_v37  ;;  %v1166_v45 = vpop.permute.xlu1 %1165  ;;  %v1161_v46 = vpop.permute.xlu0 %1160 }
 0x1b9   : > { %4486 = vst [vmem:[#allocation5 + $0x8] sm:$0xff] %v4333_v39   ;;  %4815 = vpow2.f32 %v1622_v40  ;;  %v1549_v47 = vsub.f32 0.0, %v1485_v42  ;;  %v1423_v48 = vsub.f32 %v5531_v32, %v1166_v45  ;;  %v1422_v49 = vsub.f32 %v5531_v32, %v1161_v46 }
 0x1ba   : > { %v4804_v50 = vpop.eup %4803  ;;  %4329 = vst [vmem:[#allocation5] sm:$0xff] %v4328_v43   ;;  %4817 = vpow2.f32 %v1620_v41  ;;  %v1548_v51 = vsub.f32 0.0, %v1484_v44 }
 0x1bb   : > { %v4806_v52 = vpop.eup %4805  ;;  %v1626_v53 = vmul.f32 1.442695, %v1549_v47  ;;  %v1487_v54 = vmul.f32 %v1423_v48, %v1423_v48  ;;  %v1486_v55 = vmul.f32 %v1422_v49, %v1422_v49 }
 0x1bc   : > { %v4338_v56 = vpack.c.bf16 %v4804_v50, %v4806_v52  ;;  %v1624_v57 = vmul.f32 1.442695, %v1548_v51  ;;  %v1176_v58 = vpop.permute.xlu1 %1175  ;;  %v1171_v59 = vpop.permute.xlu0 %1170 }
 0x1bd   : > { %4819 = vpow2.f32 %v1626_v53  ;;  %v1551_v60 = vsub.f32 0.0, %v1487_v54  ;;  %v1550_v61 = vsub.f32 0.0, %v1486_v55  ;;  %v1425_v62 = vsub.f32 %v5531_v32, %v1176_v58 }
 0x1be   : > { %v4808_v63 = vpop.eup %4807  ;;  %4487 = vst [vmem:[#allocation5 + $0x10] sm:$0xff] %v4338_v56   ;;  %4821 = vpow2.f32 %v1624_v57  ;;  %v1424_v0 = vsub.f32 %v5531_v32, %v1171_v59 }
 0x1bf   : > { %v4810_v1 = vpop.eup %4809  ;;  %v1630_v2 = vmul.f32 1.442695, %v1551_v60  ;;  %v1628_v3 = vmul.f32 1.442695, %v1550_v61  ;;  %v1489_v4 = vmul.f32 %v1425_v62, %v1425_v62 }
 0x1c0   : > { %v4343_v5 = vpack.c.bf16 %v4808_v63, %v4810_v1  ;;  %v1488_v6 = vmul.f32 %v1424_v0, %v1424_v0  ;;  %v1186_v7 = vpop.permute.xlu1 %1185  ;;  %v1181_v8 = vpop.permute.xlu0 %1180 }
 0x1c1   : > { %4823 = vpow2.f32 %v1630_v2  ;;  %v1553_v10 = vsub.f32 0.0, %v1489_v4  ;;  %v1427_v11 = vsub.f32 %v5531_v32, %v1186_v7  ;;  %v1426_v12 = vsub.f32 %v5531_v32, %v1181_v8 }
 0x1c2   : > { %v4812_v13 = vpop.eup %4811  ;;  %4488 = vst [vmem:[#allocation5 + $0x18] sm:$0xff] %v4343_v5   ;;  %4825 = vpow2.f32 %v1628_v3  ;;  %v1552_v14 = vsub.f32 0.0, %v1488_v6 }
 0x1c3   : > { %v4814_v15 = vpop.eup %4813  ;;  %v1634_v16 = vmul.f32 1.442695, %v1553_v10  ;;  %v1491_v17 = vmul.f32 %v1427_v11, %v1427_v11  ;;  %v1490_v18 = vmul.f32 %v1426_v12, %v1426_v12 }
 0x1c4   : > { %v4348_v19 = vpack.c.bf16 %v4812_v13, %v4814_v15  ;;  %v1632_v20 = vmul.f32 1.442695, %v1552_v14  ;;  %v1196_v21 = vpop.permute.xlu1 %1195  ;;  %v1191_v22 = vpop.permute.xlu0 %1190 }
 0x1c5   : > { %4827 = vpow2.f32 %v1634_v16  ;;  %v1555_v23 = vsub.f32 0.0, %v1491_v17  ;;  %v1554_v24 = vsub.f32 0.0, %v1490_v18  ;;  %v1429_v25 = vsub.f32 %v5531_v32, %v1196_v21 }
 0x1c6   : > { %v4816_v26 = vpop.eup %4815  ;;  %4489 = vst [vmem:[#allocation5 + $0x20] sm:$0xff] %v4348_v19   ;;  %4829 = vpow2.f32 %v1632_v20  ;;  %v1428_v27 = vsub.f32 %v5531_v32, %v1191_v22 }
 0x1c7   : > { %v4818_v28 = vpop.eup %4817  ;;  %v1638_v29 = vmul.f32 1.442695, %v1555_v23  ;;  %v1636_v30 = vmul.f32 1.442695, %v1554_v24  ;;  %v1493_v31 = vmul.f32 %v1429_v25, %v1429_v25 }
 0x1c8   : > { %v4353_v33 = vpack.c.bf16 %v4816_v26, %v4818_v28  ;;  %v1492_v34 = vmul.f32 %v1428_v27, %v1428_v27  ;;  %v1206_v35 = vpop.permute.xlu1 %1205  ;;  %v1201_v36 = vpop.permute.xlu0 %1200 }
 0x1c9   : > { %4831 = vpow2.f32 %v1638_v29  ;;  %v1557_v37 = vsub.f32 0.0, %v1493_v31  ;;  %v1431_v38 = vsub.f32 %v5531_v32, %v1206_v35  ;;  %v1430_v39 = vsub.f32 %v5531_v32, %v1201_v36 }
 0x1ca   : > { %v4820_v40 = vpop.eup %4819  ;;  %4490 = vst [vmem:[#allocation5 + $0x28] sm:$0xff] %v4353_v33   ;;  %4833 = vpow2.f32 %v1636_v30  ;;  %v1556_v41 = vsub.f32 0.0, %v1492_v34 }
 0x1cb   : > { %v4822_v42 = vpop.eup %4821  ;;  %v1642_v43 = vmul.f32 1.442695, %v1557_v37  ;;  %v1495_v44 = vmul.f32 %v1431_v38, %v1431_v38  ;;  %v1494_v45 = vmul.f32 %v1430_v39, %v1430_v39 }
 0x1cc   : > { %v4358_v46 = vpack.c.bf16 %v4820_v40, %v4822_v42  ;;  %v1640_v47 = vmul.f32 1.442695, %v1556_v41  ;;  %v1216_v48 = vpop.permute.xlu1 %1215  ;;  %v1211_v49 = vpop.permute.xlu0 %1210 }
 0x1cd   : > { %4835 = vpow2.f32 %v1642_v43  ;;  %v1559_v50 = vsub.f32 0.0, %v1495_v44  ;;  %v1558_v51 = vsub.f32 0.0, %v1494_v45  ;;  %v1433_v52 = vsub.f32 %v5531_v32, %v1216_v48 }
 0x1ce   : > { %v4824_v53 = vpop.eup %4823  ;;  %4491 = vst [vmem:[#allocation5 + $0x30] sm:$0xff] %v4358_v46   ;;  %4837 = vpow2.f32 %v1640_v47  ;;  %v1432_v54 = vsub.f32 %v5531_v32, %v1211_v49 }
 0x1cf   : > { %v4826_v55 = vpop.eup %4825  ;;  %v1646_v56 = vmul.f32 1.442695, %v1559_v50  ;;  %v1644_v57 = vmul.f32 1.442695, %v1558_v51  ;;  %v1497_v58 = vmul.f32 %v1433_v52, %v1433_v52 }
 0x1d0   : > { %v4363_v59 = vpack.c.bf16 %v4824_v53, %v4826_v55  ;;  %v1496_v60 = vmul.f32 %v1432_v54, %v1432_v54  ;;  %v1226_v61 = vpop.permute.xlu1 %1225  ;;  %v1221_v62 = vpop.permute.xlu0 %1220 }
 0x1d1   : > { %4839 = vpow2.f32 %v1646_v56  ;;  %v1561_v63 = vsub.f32 0.0, %v1497_v58  ;;  %v1435_v0 = vsub.f32 %v5531_v32, %v1226_v61  ;;  %v1434_v1 = vsub.f32 %v5531_v32, %v1221_v62 }
 0x1d2   : > { %v4828_v2 = vpop.eup %4827  ;;  %4492 = vst [vmem:[#allocation5 + $0x38] sm:$0xff] %v4363_v59   ;;  %4841 = vpow2.f32 %v1644_v57  ;;  %v1560_v3 = vsub.f32 0.0, %v1496_v60 }
 0x1d3   : > { %v4830_v4 = vpop.eup %4829  ;;  %v1650_v5 = vmul.f32 1.442695, %v1561_v63  ;;  %v1499_v6 = vmul.f32 %v1435_v0, %v1435_v0  ;;  %v1498_v7 = vmul.f32 %v1434_v1, %v1434_v1 }
 0x1d4   : > { %v4368_v8 = vpack.c.bf16 %v4828_v2, %v4830_v4  ;;  %v1648_v10 = vmul.f32 1.442695, %v1560_v3  ;;  %v1236_v11 = vpop.permute.xlu1 %1235  ;;  %v1231_v12 = vpop.permute.xlu0 %1230 }
 0x1d5   : > { %4843 = vpow2.f32 %v1650_v5  ;;  %v1563_v13 = vsub.f32 0.0, %v1499_v6  ;;  %v1562_v14 = vsub.f32 0.0, %v1498_v7  ;;  %v1437_v15 = vsub.f32 %v5531_v32, %v1236_v11 }
 0x1d6   : > { %v4832_v16 = vpop.eup %4831  ;;  %4493 = vst [vmem:[#allocation5 + $0x40] sm:$0xff] %v4368_v8   ;;  %4845 = vpow2.f32 %v1648_v10  ;;  %v1436_v17 = vsub.f32 %v5531_v32, %v1231_v12 }
 0x1d7   : > { %v4834_v18 = vpop.eup %4833  ;;  %v1654_v19 = vmul.f32 1.442695, %v1563_v13  ;;  %v1652_v20 = vmul.f32 1.442695, %v1562_v14  ;;  %v1501_v21 = vmul.f32 %v1437_v15, %v1437_v15 }
 0x1d8   : > { %v4373_v22 = vpack.c.bf16 %v4832_v16, %v4834_v18  ;;  %v1500_v23 = vmul.f32 %v1436_v17, %v1436_v17  ;;  %v1246_v24 = vpop.permute.xlu1 %1245  ;;  %v1241_v25 = vpop.permute.xlu0 %1240 }
 0x1d9   : > { %4847 = vpow2.f32 %v1654_v19  ;;  %v1565_v26 = vsub.f32 0.0, %v1501_v21  ;;  %v1439_v27 = vsub.f32 %v5531_v32, %v1246_v24  ;;  %v1438_v28 = vsub.f32 %v5531_v32, %v1241_v25 }
 0x1da   : > { %v4836_v29 = vpop.eup %4835  ;;  %4494 = vst [vmem:[#allocation5 + $0x48] sm:$0xff] %v4373_v22   ;;  %4849 = vpow2.f32 %v1652_v20  ;;  %v1564_v30 = vsub.f32 0.0, %v1500_v23 }
 0x1db   : > { %v4838_v31 = vpop.eup %4837  ;;  %v1658_v33 = vmul.f32 1.442695, %v1565_v26  ;;  %v1503_v34 = vmul.f32 %v1439_v27, %v1439_v27  ;;  %v1502_v35 = vmul.f32 %v1438_v28, %v1438_v28 }
 0x1dc   : > { %v4378_v36 = vpack.c.bf16 %v4836_v29, %v4838_v31  ;;  %v1656_v37 = vmul.f32 1.442695, %v1564_v30  ;;  %v1256_v38 = vpop.permute.xlu1 %1255  ;;  %v1251_v39 = vpop.permute.xlu0 %1250 }
 0x1dd   : > { %4851 = vpow2.f32 %v1658_v33  ;;  %v1567_v40 = vsub.f32 0.0, %v1503_v34  ;;  %v1566_v41 = vsub.f32 0.0, %v1502_v35  ;;  %v1441_v42 = vsub.f32 %v5531_v32, %v1256_v38 }
 0x1de   : > { %v4840_v43 = vpop.eup %4839  ;;  %4495 = vst [vmem:[#allocation5 + $0x50] sm:$0xff] %v4378_v36   ;;  %4853 = vpow2.f32 %v1656_v37  ;;  %v1440_v44 = vsub.f32 %v5531_v32, %v1251_v39 }
 0x1df   : > { %v4842_v45 = vpop.eup %4841  ;;  %v1662_v46 = vmul.f32 1.442695, %v1567_v40  ;;  %v1660_v47 = vmul.f32 1.442695, %v1566_v41  ;;  %v1505_v48 = vmul.f32 %v1441_v42, %v1441_v42 }
 0x1e0   : > { %v4383_v49 = vpack.c.bf16 %v4840_v43, %v4842_v45  ;;  %v1504_v50 = vmul.f32 %v1440_v44, %v1440_v44  ;;  %v1266_v51 = vpop.permute.xlu1 %1265  ;;  %v1261_v52 = vpop.permute.xlu0 %1260 }
 0x1e1   : > { %4855 = vpow2.f32 %v1662_v46  ;;  %v1569_v53 = vsub.f32 0.0, %v1505_v48  ;;  %v1443_v54 = vsub.f32 %v5531_v32, %v1266_v51  ;;  %v1442_v55 = vsub.f32 %v5531_v32, %v1261_v52 }
 0x1e2   : > { %v4844_v56 = vpop.eup %4843  ;;  %4496 = vst [vmem:[#allocation5 + $0x58] sm:$0xff] %v4383_v49   ;;  %4857 = vpow2.f32 %v1660_v47  ;;  %v1568_v57 = vsub.f32 0.0, %v1504_v50 }
 0x1e3   : > { %v4846_v58 = vpop.eup %4845  ;;  %v1666_v59 = vmul.f32 1.442695, %v1569_v53  ;;  %v1507_v60 = vmul.f32 %v1443_v54, %v1443_v54  ;;  %v1506_v61 = vmul.f32 %v1442_v55, %v1442_v55 }
 0x1e4   : > { %v4388_v62 = vpack.c.bf16 %v4844_v56, %v4846_v58  ;;  %v1664_v63 = vmul.f32 1.442695, %v1568_v57  ;;  %v1276_v0 = vpop.permute.xlu1 %1275  ;;  %v1271_v1 = vpop.permute.xlu0 %1270 }
 0x1e5   : > { %4859 = vpow2.f32 %v1666_v59  ;;  %v1571_v2 = vsub.f32 0.0, %v1507_v60  ;;  %v1570_v3 = vsub.f32 0.0, %v1506_v61  ;;  %v1445_v4 = vsub.f32 %v5531_v32, %v1276_v0 }
 0x1e6   : > { %v4848_v5 = vpop.eup %4847  ;;  %4497 = vst [vmem:[#allocation5 + $0x60] sm:$0xff] %v4388_v62   ;;  %4861 = vpow2.f32 %v1664_v63  ;;  %v1444_v6 = vsub.f32 %v5531_v32, %v1271_v1 }
 0x1e7   : > { %v4850_v7 = vpop.eup %4849  ;;  %v1670_v8 = vmul.f32 1.442695, %v1571_v2  ;;  %v1668_v10 = vmul.f32 1.442695, %v1570_v3  ;;  %v1509_v11 = vmul.f32 %v1445_v4, %v1445_v4 }
 0x1e8   : > { %v4393_v12 = vpack.c.bf16 %v4848_v5, %v4850_v7  ;;  %v1508_v13 = vmul.f32 %v1444_v6, %v1444_v6  ;;  %v1286_v14 = vpop.permute.xlu1 %1285  ;;  %v1281_v15 = vpop.permute.xlu0 %1280 }
 0x1e9   : > { %4863 = vpow2.f32 %v1670_v8  ;;  %v1573_v16 = vsub.f32 0.0, %v1509_v11  ;;  %v1447_v17 = vsub.f32 %v5531_v32, %v1286_v14  ;;  %v1446_v18 = vsub.f32 %v5531_v32, %v1281_v15 }
 0x1ea   : > { %v4852_v19 = vpop.eup %4851  ;;  %4498 = vst [vmem:[#allocation5 + $0x68] sm:$0xff] %v4393_v12   ;;  %4865 = vpow2.f32 %v1668_v10  ;;  %v1572_v20 = vsub.f32 0.0, %v1508_v13 }
 0x1eb   : > { %v4854_v21 = vpop.eup %4853  ;;  %v1674_v22 = vmul.f32 1.442695, %v1573_v16  ;;  %v1511_v23 = vmul.f32 %v1447_v17, %v1447_v17  ;;  %v1510_v24 = vmul.f32 %v1446_v18, %v1446_v18 }
 0x1ec   : > { %v4398_v25 = vpack.c.bf16 %v4852_v19, %v4854_v21  ;;  %v1672_v26 = vmul.f32 1.442695, %v1572_v20  ;;  %v1296_v27 = vpop.permute.xlu1 %1295  ;;  %v1291_v28 = vpop.permute.xlu0 %1290 }
 0x1ed   : > { %4867 = vpow2.f32 %v1674_v22  ;;  %v1575_v29 = vsub.f32 0.0, %v1511_v23  ;;  %v1574_v30 = vsub.f32 0.0, %v1510_v24  ;;  %v1449_v31 = vsub.f32 %v5531_v32, %v1296_v27 }
 0x1ee   : > { %v4856_v33 = vpop.eup %4855  ;;  %4499 = vst [vmem:[#allocation5 + $0x70] sm:$0xff] %v4398_v25   ;;  %4869 = vpow2.f32 %v1672_v26  ;;  %v1448_v34 = vsub.f32 %v5531_v32, %v1291_v28 }
 0x1ef   : > { %v4858_v35 = vpop.eup %4857  ;;  %v1678_v36 = vmul.f32 1.442695, %v1575_v29  ;;  %v1676_v37 = vmul.f32 1.442695, %v1574_v30  ;;  %v1513_v38 = vmul.f32 %v1449_v31, %v1449_v31 }
 0x1f0   : > { %v4403_v39 = vpack.c.bf16 %v4856_v33, %v4858_v35  ;;  %v1512_v40 = vmul.f32 %v1448_v34, %v1448_v34  ;;  %v1306_v41 = vpop.permute.xlu1 %1305  ;;  %v1301_v42 = vpop.permute.xlu0 %1300 }
 0x1f1   : > { %4871 = vpow2.f32 %v1678_v36  ;;  %v1577_v43 = vsub.f32 0.0, %v1513_v38  ;;  %v1451_v44 = vsub.f32 %v5531_v32, %v1306_v41  ;;  %v1450_v45 = vsub.f32 %v5531_v32, %v1301_v42 }
 0x1f2   : > { %v4860_v46 = vpop.eup %4859  ;;  %4500 = vst [vmem:[#allocation5 + $0x78] sm:$0xff] %v4403_v39   ;;  %4873 = vpow2.f32 %v1676_v37  ;;  %v1576_v47 = vsub.f32 0.0, %v1512_v40 }
 0x1f3   : > { %v4862_v48 = vpop.eup %4861  ;;  %v1682_v49 = vmul.f32 1.442695, %v1577_v43  ;;  %v1515_v50 = vmul.f32 %v1451_v44, %v1451_v44  ;;  %v1514_v51 = vmul.f32 %v1450_v45, %v1450_v45 }
 0x1f4   : > { %v4408_v52 = vpack.c.bf16 %v4860_v46, %v4862_v48  ;;  %v1680_v53 = vmul.f32 1.442695, %v1576_v47  ;;  %v1316_v54 = vpop.permute.xlu1 %1315  ;;  %v1311_v55 = vpop.permute.xlu0 %1310 }
 0x1f5   : > { %4875 = vpow2.f32 %v1682_v49  ;;  %v1579_v56 = vsub.f32 0.0, %v1515_v50  ;;  %v1578_v57 = vsub.f32 0.0, %v1514_v51  ;;  %v1453_v58 = vsub.f32 %v5531_v32, %v1316_v54 }
 0x1f6   : > { %v4864_v59 = vpop.eup %4863  ;;  %4501 = vst [vmem:[#allocation5 + $0x80] sm:$0xff] %v4408_v52   ;;  %4877 = vpow2.f32 %v1680_v53  ;;  %v1452_v60 = vsub.f32 %v5531_v32, %v1311_v55 }
 0x1f7   : > { %v4866_v61 = vpop.eup %4865  ;;  %v1686_v62 = vmul.f32 1.442695, %v1579_v56  ;;  %v1684_v63 = vmul.f32 1.442695, %v1578_v57  ;;  %v1517_v0 = vmul.f32 %v1453_v58, %v1453_v58 }
 0x1f8   : > { %v4413_v1 = vpack.c.bf16 %v4864_v59, %v4866_v61  ;;  %v1516_v2 = vmul.f32 %v1452_v60, %v1452_v60  ;;  %v1326_v3 = vpop.permute.xlu1 %1325  ;;  %v1321_v4 = vpop.permute.xlu0 %1320 }
 0x1f9   : > { %4879 = vpow2.f32 %v1686_v62  ;;  %v1581_v5 = vsub.f32 0.0, %v1517_v0  ;;  %v1455_v6 = vsub.f32 %v5531_v32, %v1326_v3  ;;  %v1454_v7 = vsub.f32 %v5531_v32, %v1321_v4 }
 0x1fa   : > { %v4868_v8 = vpop.eup %4867  ;;  %4502 = vst [vmem:[#allocation5 + $0x88] sm:$0xff] %v4413_v1   ;;  %4881 = vpow2.f32 %v1684_v63  ;;  %v1580_v10 = vsub.f32 0.0, %v1516_v2 }
 0x1fb   : > { %v4870_v11 = vpop.eup %4869  ;;  %v1690_v12 = vmul.f32 1.442695, %v1581_v5  ;;  %v1519_v13 = vmul.f32 %v1455_v6, %v1455_v6  ;;  %v1518_v14 = vmul.f32 %v1454_v7, %v1454_v7 }
 0x1fc   : > { %v4418_v15 = vpack.c.bf16 %v4868_v8, %v4870_v11  ;;  %v1688_v16 = vmul.f32 1.442695, %v1580_v10  ;;  %v1336_v17 = vpop.permute.xlu1 %1335  ;;  %v1331_v18 = vpop.permute.xlu0 %1330 }
 0x1fd   : > { %4883 = vpow2.f32 %v1690_v12  ;;  %v1583_v19 = vsub.f32 0.0, %v1519_v13  ;;  %v1582_v20 = vsub.f32 0.0, %v1518_v14  ;;  %v1457_v21 = vsub.f32 %v5531_v32, %v1336_v17 }
 0x1fe   : > { %v4872_v22 = vpop.eup %4871  ;;  %4503 = vst [vmem:[#allocation5 + $0x90] sm:$0xff] %v4418_v15   ;;  %4885 = vpow2.f32 %v1688_v16  ;;  %v1456_v23 = vsub.f32 %v5531_v32, %v1331_v18 }
 0x1ff   : > { %v4874_v24 = vpop.eup %4873  ;;  %v1694_v25 = vmul.f32 1.442695, %v1583_v19  ;;  %v1692_v26 = vmul.f32 1.442695, %v1582_v20  ;;  %v1521_v27 = vmul.f32 %v1457_v21, %v1457_v21 }
 0x200   : > { %v4423_v28 = vpack.c.bf16 %v4872_v22, %v4874_v24  ;;  %v1520_v29 = vmul.f32 %v1456_v23, %v1456_v23  ;;  %v1346_v30 = vpop.permute.xlu1 %1345  ;;  %v1341_v31 = vpop.permute.xlu0 %1340 }
 0x201   : > { %4887 = vpow2.f32 %v1694_v25  ;;  %v1585_v33 = vsub.f32 0.0, %v1521_v27  ;;  %v1459_v34 = vsub.f32 %v5531_v32, %v1346_v30  ;;  %v1458_v35 = vsub.f32 %v5531_v32, %v1341_v31 }
 0x202   : > { %v4876_v36 = vpop.eup %4875  ;;  %4504 = vst [vmem:[#allocation5 + $0x98] sm:$0xff] %v4423_v28   ;;  %4889 = vpow2.f32 %v1692_v26  ;;  %v1584_v37 = vsub.f32 0.0, %v1520_v29 }
 0x203   : > { %v4878_v38 = vpop.eup %4877  ;;  %v1698_v39 = vmul.f32 1.442695, %v1585_v33  ;;  %v1523_v40 = vmul.f32 %v1459_v34, %v1459_v34  ;;  %v1522_v41 = vmul.f32 %v1458_v35, %v1458_v35 }
 0x204   : > { %v4428_v42 = vpack.c.bf16 %v4876_v36, %v4878_v38  ;;  %v1696_v43 = vmul.f32 1.442695, %v1584_v37  ;;  %v1356_v44 = vpop.permute.xlu1 %1355  ;;  %v1351_v45 = vpop.permute.xlu0 %1350 }
 0x205   : > { %4891 = vpow2.f32 %v1698_v39  ;;  %v1587_v46 = vsub.f32 0.0, %v1523_v40  ;;  %v1586_v47 = vsub.f32 0.0, %v1522_v41  ;;  %v1461_v48 = vsub.f32 %v5531_v32, %v1356_v44 }
 0x206   : > { %v4880_v49 = vpop.eup %4879  ;;  %4505 = vst [vmem:[#allocation5 + $0xa0] sm:$0xff] %v4428_v42   ;;  %4893 = vpow2.f32 %v1696_v43  ;;  %v1460_v50 = vsub.f32 %v5531_v32, %v1351_v45 }
 0x207   : > { %v4882_v51 = vpop.eup %4881  ;;  %v1702_v52 = vmul.f32 1.442695, %v1587_v46  ;;  %v1700_v53 = vmul.f32 1.442695, %v1586_v47  ;;  %v1525_v54 = vmul.f32 %v1461_v48, %v1461_v48 }
 0x208   : > { %v4433_v55 = vpack.c.bf16 %v4880_v49, %v4882_v51  ;;  %v1524_v56 = vmul.f32 %v1460_v50, %v1460_v50  ;;  %v1366_v57 = vpop.permute.xlu1 %1365  ;;  %v1361_v58 = vpop.permute.xlu0 %1360 }
 0x209   : > { %4895 = vpow2.f32 %v1702_v52  ;;  %v1589_v59 = vsub.f32 0.0, %v1525_v54  ;;  %v1463_v60 = vsub.f32 %v5531_v32, %v1366_v57  ;;  %v1462_v61 = vsub.f32 %v5531_v32, %v1361_v58 }
 0x20a   : > { %v4884_v62 = vpop.eup %4883  ;;  %4506 = vst [vmem:[#allocation5 + $0xa8] sm:$0xff] %v4433_v55   ;;  %4897 = vpow2.f32 %v1700_v53  ;;  %v1588_v63 = vsub.f32 0.0, %v1524_v56 }
 0x20b   : > { %v4886_v0 = vpop.eup %4885  ;;  %v1706_v1 = vmul.f32 1.442695, %v1589_v59  ;;  %v1527_v2 = vmul.f32 %v1463_v60, %v1463_v60  ;;  %v1526_v3 = vmul.f32 %v1462_v61, %v1462_v61 }
 0x20c   : > { %v4438_v4 = vpack.c.bf16 %v4884_v62, %v4886_v0  ;;  %v1704_v5 = vmul.f32 1.442695, %v1588_v63  ;;  %v1376_v6 = vpop.permute.xlu1 %1375  ;;  %v1371_v7 = vpop.permute.xlu0 %1370 }
 0x20d   : > { %4899 = vpow2.f32 %v1706_v1  ;;  %v1591_v8 = vsub.f32 0.0, %v1527_v2  ;;  %v1590_v10 = vsub.f32 0.0, %v1526_v3  ;;  %v1465_v11 = vsub.f32 %v5531_v32, %v1376_v6 }
 0x20e   : > { %v4888_v12 = vpop.eup %4887  ;;  %4507 = vst [vmem:[#allocation5 + $0xb0] sm:$0xff] %v4438_v4   ;;  %4901 = vpow2.f32 %v1704_v5  ;;  %v1464_v13 = vsub.f32 %v5531_v32, %v1371_v7 }
 0x20f   : > { %v4890_v14 = vpop.eup %4889  ;;  %v1710_v15 = vmul.f32 1.442695, %v1591_v8  ;;  %v1708_v16 = vmul.f32 1.442695, %v1590_v10  ;;  %v1529_v17 = vmul.f32 %v1465_v11, %v1465_v11 }
 0x210   : > { %v4443_v18 = vpack.c.bf16 %v4888_v12, %v4890_v14  ;;  %v1528_v19 = vmul.f32 %v1464_v13, %v1464_v13  ;;  %v1386_v20 = vpop.permute.xlu1 %1385  ;;  %v1381_v21 = vpop.permute.xlu0 %1380 }
 0x211   : > { %4903 = vpow2.f32 %v1710_v15  ;;  %v1593_v22 = vsub.f32 0.0, %v1529_v17  ;;  %v1467_v23 = vsub.f32 %v5531_v32, %v1386_v20  ;;  %v1466_v24 = vsub.f32 %v5531_v32, %v1381_v21 }
 0x212   : > { %v4892_v25 = vpop.eup %4891  ;;  %4508 = vst [vmem:[#allocation5 + $0xb8] sm:$0xff] %v4443_v18   ;;  %4905 = vpow2.f32 %v1708_v16  ;;  %v1592_v26 = vsub.f32 0.0, %v1528_v19 }
 0x213   : > { %v4894_v27 = vpop.eup %4893  ;;  %v1714_v28 = vmul.f32 1.442695, %v1593_v22  ;;  %v1531_v29 = vmul.f32 %v1467_v23, %v1467_v23  ;;  %v1530_v30 = vmul.f32 %v1466_v24, %v1466_v24 }
 0x214   : > { %v4448_v31 = vpack.c.bf16 %v4892_v25, %v4894_v27  ;;  %v1712_v33 = vmul.f32 1.442695, %v1592_v26  ;;  %v1396_v34 = vpop.permute.xlu1 %1395  ;;  %v1391_v35 = vpop.permute.xlu0 %1390 }
 0x215   : > { %4907 = vpow2.f32 %v1714_v28  ;;  %v1595_v36 = vsub.f32 0.0, %v1531_v29  ;;  %v1594_v37 = vsub.f32 0.0, %v1530_v30  ;;  %v1469_v38 = vsub.f32 %v5531_v32, %v1396_v34 }
 0x216   : > { %v4896_v39 = vpop.eup %4895  ;;  %4509 = vst [vmem:[#allocation5 + $0xc0] sm:$0xff] %v4448_v31   ;;  %4909 = vpow2.f32 %v1712_v33  ;;  %v1468_v40 = vsub.f32 %v5531_v32, %v1391_v35 }
 0x217   : > { %v4898_v41 = vpop.eup %4897  ;;  %v1718_v42 = vmul.f32 1.442695, %v1595_v36  ;;  %v1716_v43 = vmul.f32 1.442695, %v1594_v37  ;;  %v1533_v44 = vmul.f32 %v1469_v38, %v1469_v38 }
 0x218   : > { %v4453_v45 = vpack.c.bf16 %v4896_v39, %v4898_v41  ;;  %v1532_v46 = vmul.f32 %v1468_v40, %v1468_v40  ;;  %v1406_v47 = vpop.permute.xlu1 %1405  ;;  %v1401_v48 = vpop.permute.xlu0 %1400 }
 0x219   : > { %4911 = vpow2.f32 %v1718_v42  ;;  %v1597_v49 = vsub.f32 0.0, %v1533_v44  ;;  %v1471_v50 = vsub.f32 %v5531_v32, %v1406_v47  ;;  %v1470_v51 = vsub.f32 %v5531_v32, %v1401_v48 }
 0x21a   : > { %v4900_v52 = vpop.eup %4899  ;;  %4510 = vst [vmem:[#allocation5 + $0xc8] sm:$0xff] %v4453_v45   ;;  %4913 = vpow2.f32 %v1716_v43  ;;  %v1596_v53 = vsub.f32 0.0, %v1532_v46 }
 0x21b   : > { %v4902_v54 = vpop.eup %4901  ;;  %v1722_v55 = vmul.f32 1.442695, %v1597_v49  ;;  %v1535_v56 = vmul.f32 %v1471_v50, %v1471_v50  ;;  %v1534_v57 = vmul.f32 %v1470_v51, %v1470_v51 }
 0x21c   : > { %v4458_v58 = vpack.c.bf16 %v4900_v52, %v4902_v54  ;;  %v1720_v59 = vmul.f32 1.442695, %v1596_v53 }
 0x21d   : > { %4915 = vpow2.f32 %v1722_v55  ;;  %v1599_v60 = vsub.f32 0.0, %v1535_v56  ;;  %v1598_v61 = vsub.f32 0.0, %v1534_v57 }
 0x21e   : > { %v4904_v62 = vpop.eup %4903  ;;  %4511 = vst [vmem:[#allocation5 + $0xd0] sm:$0xff] %v4458_v58   ;;  %4917 = vpow2.f32 %v1720_v59 }
 0x21f   : > { %v4906_v63 = vpop.eup %4905  ;;  %v1726_v0 = vmul.f32 1.442695, %v1599_v60  ;;  %v1724_v1 = vmul.f32 1.442695, %v1598_v61 }
 0x220   : > { %v4463_v32 = vpack.c.bf16 %v4904_v62, %v4906_v63 }
 0x221   : > { %4919 = vpow2.f32 %v1726_v0 }
 0x222   : > { %v4908_v2 = vpop.eup %4907  ;;  %4512 = vst [vmem:[#allocation5 + $0xd8] sm:$0xff] %v4463_v32   ;;  %4921 = vpow2.f32 %v1724_v1 }
 0x223   : > { %v4910_v3 = vpop.eup %4909 }
 0x224   : > { %v4468_v4 = vpack.c.bf16 %v4908_v2, %v4910_v3 }
 0x226   : > { %v4912_v5 = vpop.eup %4911  ;;  %4513 = vst [vmem:[#allocation5 + $0xe0] sm:$0xff] %v4468_v4  }
 0x227   : > { %v4914_v6 = vpop.eup %4913 }
 0x228   : > { %v4473_v7 = vpack.c.bf16 %v4912_v5, %v4914_v6 }
 0x22a   : > { %v4916_v8 = vpop.eup %4915  ;;  %4514 = vst [vmem:[#allocation5 + $0xe8] sm:$0xff] %v4473_v7  }
 0x22b   : > { %v4918_v10 = vpop.eup %4917 }
 0x22c   : > { %v4478_v11 = vpack.c.bf16 %v4916_v8, %v4918_v10 }
 0x22e   : > { %v4920_v12 = vpop.eup %4919  ;;  %4515 = vst [vmem:[#allocation5 + $0xf0] sm:$0xff] %v4478_v11  }
 0x22f   : > { %v4922_v13 = vpop.eup %4921 }
 0x230   : > { %v4483_v14 = vpack.c.bf16 %v4920_v12, %v4922_v13 }
 0x232   : > { %4516 = vst [vmem:[#allocation5 + $0xf8] sm:$0xff] %v4483_v14  }
 0x233 PF: > { %v4925_v15 = vld [vmem:[#allocation5 + $0x78] sm:$0xff]   ;;  %4923 = vset.pattern.permute.xlu0 %v5107_v9  ;;  %4924 = vset.pattern.permute.xlu1 %v5107_v9  ;;  %v4929_v19 = vld [vmem:[#allocation5 + $0x70] sm:$0xff]   ;;  %v4933_v23 = vld [vmem:[#allocation5 + $0x68] sm:$0xff]   ;;  %s5912_s3 = sld [smem:[#allocation18_spill]]  ;;  %p3229_p4 = scmp.eq.s32.totalorder %s5096_s1, 1 }
 0x234   : > { %4521 = vmatprep.subr.bf16.mxu1 %v4925_v15  ;;  %v4927_v17 = vld [vmem:[#allocation5 + $0x38] sm:$0xff]   ;;  %v4931_v21 = vld [vmem:[#allocation5 + $0x30] sm:$0xff]   ;;  %v4934_v24 = vld [vmem:[#allocation5 + $0xe8] sm:$0xff]   ;;  %s4203_s26 = sld [smem:[#allocation6 + $0x1]] (%p3229_p4) }
 0x235   : > { %v4928_v18 = vld [vmem:[#allocation5 + $0xb8] sm:$0xff]   ;;  %4522 = vmatpush3.bf16.msra.mxu1 %v4927_v17  ;;  %v4930_v20 = vld [vmem:[#allocation5 + $0xf0] sm:$0xff]   ;;  %v4935_v25 = vld [vmem:[#allocation5 + $0x28] sm:$0xff]   ;;  %s4216_s24 = sld [smem:[#allocation6 + $0x2]] (%p3229_p4) }
 0x236   : > { %4523 = vmatprep.subr.bf16.mxu1 %v4929_v19  ;;  %v4932_v22 = vld [vmem:[#allocation5 + $0xb0] sm:$0xff]   ;;  %v4936_v9 = vld [vmem:[#allocation5 + $0xa8] sm:$0xff]   ;;  %v4937_v26 = vld [vmem:[#allocation5 + $0x60] sm:$0xff]   ;;  %s4229_s21 = sld [smem:[#allocation6 + $0x3]] (%p3229_p4) }
 0x237   : > { %v4938_v27 = vld [vmem:[#allocation5 + $0xe0] sm:$0xff]   ;;  %v4941_v30 = vld [vmem:[#allocation5 + $0x58] sm:$0xff]   ;;  %v4945_v35 = vld [vmem:[#allocation5 + $0x50] sm:$0xff]   ;;  %s5914_s22 = sld [smem:[#allocation25_spill]] (%p3229_p4) }
 0x238   : > { %v4939_v28 = vld [vmem:[#allocation5 + $0x20] sm:$0xff]   ;;  %v4942_v31 = vld [vmem:[#allocation5 + $0xd8] sm:$0xff]   ;;  %v4946_v36 = vld [vmem:[#allocation5 + $0xd0] sm:$0xff]  }
 0x239   : > { %v4926_v16 = vld [vmem:[#allocation5 + $0xf8] sm:$0xff]   ;;  %4524 = vmatpush3.bf16.msra.mxu1 %v4931_v21  ;;  %v4940_v29 = vld [vmem:[#allocation5 + $0xa0] sm:$0xff]   ;;  %v4947_v37 = vld [vmem:[#allocation5 + $0x10] sm:$0xff]  }
 0x23a   : > { %4549 = vmatprep.subr.bf16.mxu0 %v4926_v16  ;;  %4525 = vmatprep.subr.bf16.mxu1 %v4933_v23  ;;  %v4943_v33 = vld [vmem:[#allocation5 + $0x18] sm:$0xff]   ;;  %v4948_v38 = vld [vmem:[#allocation5 + $0x90] sm:$0xff]   ;;  %v4949_v39 = vld [vmem:[#allocation5 + $0x48] sm:$0xff]   ;;  %v2656_v23 = vlaneseq }
 0x23b   : > { %4550 = vmatpush3.bf16.msra.mxu0 %v4928_v18  ;;  %v4944_v34 = vld [vmem:[#allocation5 + $0x98] sm:$0xff]   ;;  %v4950_v40 = vld [vmem:[#allocation5 + $0xc8] sm:$0xff]   ;;  %v4953_v43 = vld [vmem:[#allocation5 + $0x40] sm:$0xff]  }
 0x23c   : > { %4551 = vmatprep.subr.bf16.mxu0 %v4930_v20  ;;  %v4951_v41 = vld [vmem:[#allocation5 + $0x8] sm:$0xff]   ;;  %v4954_v44 = vld [vmem:[#allocation5 + $0xc0] sm:$0xff]   ;;  %v2126_v54 = vld [vmem:[%s5275_s29] sm:$0xff] }
 0x23d   : > { %4526 = vmatpush3.bf16.msra.mxu1 %v4935_v25  ;;  %v4952_v42 = vld [vmem:[#allocation5 + $0x88] sm:$0xff]   ;;  %v4955_v45 = vld [vmem:[#allocation5] sm:$0xff]   ;;  %2132 = vperm.xlu1 %4924, %v2126_v54   ;;  %v2127_v57 = vld [vmem:[%s5275_s29 + $0x8] sm:$0xff]  ;;  %v2657_v25 = vshrl.u32 %v2656_v23, 7 }
 0x23e   : > { %4527 = vmatprep.subr.bf16.mxu1 %v4937_v26  ;;  %v4956_v46 = vld [vmem:[#allocation5 + $0x80] sm:$0xff]   ;;  %v4960_v49 = vld [vmem:[%s5270_s25 + $0x8] ss:$16 sps:$4 sm:$0xff]   ;;  %v4962_v50 = vld [vmem:[%s5270_s25 + $0xc] ss:$16 sps:$4 sm:$0xff]  }
 0x23f   : > { %4552 = vmatpush3.bf16.msra.mxu0 %v4932_v22  ;;  %v4957_v47 = vld [vmem:[%s5270_s25] ss:$16 sps:$4 sm:$0xff]   ;;  %v4959_v48 = vld [vmem:[%s5270_s25 + $0x4] ss:$16 sps:$4 sm:$0xff]   ;;  %2463 = vmatprep.mubr.bf16.mxu0 %v4962_v50  ;;  %v4965_v52 = vld [vmem:[%s5270_s25 + $0x2c] ss:$16 sps:$4 sm:$0xff]  }
 0x240   : > { %4553 = vmatprep.subr.bf16.mxu0 %v4934_v24  ;;  %2414 = vmatprep.mubr.bf16.mxu1 %v4959_v48  ;;  %v4963_v51 = vld [vmem:[%s5270_s25 + $0x24] ss:$16 sps:$4 sm:$0xff]   ;;  %v2129_v55 = vld [vmem:[%s5275_s29 + $0x18] sm:$0xff]  ;;  %v4967_v56 = vld [vmem:[%s5270_s25 + $0x20] ss:$16 sps:$4 sm:$0xff]   ;;  %v2672_v26 = vadd.s32 120, %v2657_v25 }
 0x241   : > { %4528 = vmatpush3.bf16.msra.mxu1 %v4939_v28  ;;  %v2128_v53 = vld [vmem:[%s5275_s29 + $0x10] sm:$0xff]  ;;  %v4968_v58 = vld [vmem:[%s5270_s25 + $0x28] ss:$16 sps:$4 sm:$0xff]   ;;  %v2526_v59 = vld [vmem:[%s5280_s2] sm:$0xff]  ;;  %2137 = vperm.xlu1 %4924, %v2127_v57   ;;  %s5913_s29 = sld [smem:[#allocation17_spill]] }
 0x242   : > { %4529 = vmatprep.subr.bf16.mxu1 %v4941_v30  ;;  %2142 = vperm.xlu0 %4923, %v2128_v53   ;;  %v2527_v60 = vld [vmem:[%s5280_s2 + $0x8] sm:$0xff]  ;;  %v2528_v61 = vld [vmem:[%s5280_s2 + $0x10] sm:$0xff]  ;;  %v2529_v62 = vld [vmem:[%s5280_s2 + $0x18] sm:$0xff]  ;;  %v5110_v28 = vmov 1.0|1.0   ;;  %v2670_v30 = vadd.s32 104, %v2657_v25 }
 0x243   : > { %4554 = vmatpush3.bf16.msra.mxu0 %v4936_v9  ;;  %v2750_v63 = vld [vmem:[%s5912_s3 + $0x70] sm:$0xff]  ;;  %v2751_v0 = vld [vmem:[%s5912_s3 + $0x78] sm:$0xff]  ;;  %v2748_v1 = vld [vmem:[%s5912_s3 + $0x60] sm:$0xff]  ;;  %v2671_v9 = vadd.s32 112, %v2657_v25 }
 0x244   : > { %4555 = vmatprep.subr.bf16.mxu0 %v4938_v27  ;;  %v2749_v32 = vld [vmem:[%s5912_s3 + $0x68] sm:$0xff]  ;;  %v2746_v2 = vld [vmem:[%s5912_s3 + $0x50] sm:$0xff]  ;;  %v2747_v3 = vld [vmem:[%s5912_s3 + $0x58] sm:$0xff] }
 0x245   : > { %4530 = vmatpush3.bf16.msra.mxu1 %v4943_v33  ;;  %2537 = vperm.xlu1 %4924, %v2527_v60   ;;  %v2744_v4 = vld [vmem:[%s5912_s3 + $0x40] sm:$0xff]  ;;  %v2745_v5 = vld [vmem:[%s5912_s3 + $0x48] sm:$0xff]  ;;  %v2742_v6 = vld [vmem:[%s5912_s3 + $0x30] sm:$0xff]  ;;  %v2668_v33 = vadd.s32 88, %v2657_v25 }
 0x246   : > { %4531 = vmatprep.subr.bf16.mxu1 %v4945_v35  ;;  %2147 = vperm.xlu0 %4923, %v2129_v55   ;;  %v2743_v7 = vld [vmem:[%s5912_s3 + $0x38] sm:$0xff]  ;;  %v2740_v8 = vld [vmem:[%s5912_s3 + $0x20] sm:$0xff]  ;;  %v2741_v10 = vld [vmem:[%s5912_s3 + $0x28] sm:$0xff]  ;;  %v2666_v35 = vadd.s32 72, %v2657_v25 }
 0x247   : > { %4556 = vmatpush3.bf16.msra.mxu0 %v4940_v29  ;;  %v2738_v11 = vld [vmem:[%s5912_s3 + $0x10] sm:$0xff]  ;;  %v2739_v12 = vld [vmem:[%s5912_s3 + $0x18] sm:$0xff]  ;;  %v2736_v13 = vld [vmem:[%s5912_s3] sm:$0xff]  ;;  %v2669_v29 = vadd.s32 96, %v2657_v25 }
 0x248   : > { %4557 = vmatprep.subr.bf16.mxu0 %v4942_v31  ;;  %v2737_v14 = vld [vmem:[%s5912_s3 + $0x8] sm:$0xff]  ;;  %v3003_v15 = vld [vmem:[%s5305_s20 + $0x10] sm:$0xff]  ;;  %v3004_v16 = vld [vmem:[%s5305_s20 + $0x18] sm:$0xff]  ;;  %v2667_v31 = vadd.s32 80, %v2657_v25 }
 0x249   : > { %4532 = vmatpush3.bf16.msra.mxu1 %v4947_v37  ;;  %2547 = vperm.xlu1 %4924, %v2529_v62   ;;  %v3001_v17 = vld [vmem:[%s5305_s20] sm:$0xff]  ;;  %v3002_v18 = vld [vmem:[%s5305_s20 + $0x8] sm:$0xff]  ;;  %v3138_v21 = vld [vmem:[%s5315_s27 + $0x10] sm:$0xff]  ;;  %v2664_v37 = vadd.s32 56, %v2657_v25 }
 0x24a   : > { %4533 = vmatprep.subr.bf16.mxu1 %v4949_v39  ;;  %2532 = vperm.xlu0 %4923, %v2526_v59   ;;  %v3136_v19 = vld [vmem:[%s5315_s27] sm:$0xff]  ;;  %v3137_v20 = vld [vmem:[%s5315_s27 + $0x8] sm:$0xff]  ;;  %v3139_v22 = vld [vmem:[%s5315_s27 + $0x18] sm:$0xff]  ;;  %v2662_v39 = vadd.s32 40, %v2657_v25 }
 0x24b   : > { %4558 = vmatpush3.bf16.msra.mxu0 %v4944_v34  ;;  %v4969_v24 = vld [vmem:[%s5285_s23] sm:$0xff]   ;;  %v2665_v34 = vadd.s32 64, %v2657_v25 }
 0x24c   : > { %4559 = vmatprep.subr.bf16.mxu0 %v4946_v36  ;;  %v4107_v27 = vld [vmem:[%s5913_s29] ss:$0 sm:$0xff]  ;;  %v2663_v36 = vadd.s32 48, %v2657_v25 }
 0x24d   : > { %4534 = vmatpush3.bf16.msra.mxu1 %v4951_v41  ;;  %2798 = vperm.xlu1 %4924, %v2751_v0   ;;  %vm2692_vm1 = vcmp.eq.s32.totalorder %v2671_v9, %v4107_v27  ;;  %vm2693_vm2 = vcmp.eq.s32.totalorder %v2672_v26, %v4107_v27  ;;  %vm2690_vm4 = vcmp.eq.s32.totalorder %v2669_v29, %v4107_v27  ;;  %v2660_v41 = vadd.s32 24, %v2657_v25 }
 0x24e   : > { %4535 = vmatprep.subr.bf16.mxu1 %v4953_v43  ;;  %2542 = vperm.xlu0 %4923, %v2528_v61   ;;  %vm4142_vm3 = vmpackc.low %vm2693_vm2, %vm2692_vm1  ;;  %vm2691_vm5 = vcmp.eq.s32.totalorder %v2670_v30, %v4107_v27  ;;  %vm2688_vm7 = vcmp.eq.s32.totalorder %v2667_v31, %v4107_v27  ;;  %vm2689_vm8 = vcmp.eq.s32.totalorder %v2668_v33, %v4107_v27  ;;  %v4971_v43 = vld [vmem:[#allocation3] sm:$0xff]  }
 0x24f   : > { %4560 = vmatpush3.bf16.msra.mxu0 %v4948_v38  ;;  %vm4144_vm6 = vmpackc.low %vm2691_vm5, %vm2690_vm4  ;;  %vm2686_vm10 = vcmp.eq.s32.totalorder %v2665_v34, %v4107_v27  ;;  %vm2687_vm11 = vcmp.eq.s32.totalorder %v2666_v35, %v4107_v27  ;;  %vm2684_vm13 = vcmp.eq.s32.totalorder %v2663_v36, %v4107_v27  ;;  %vm2685_vm14 = vcmp.eq.s32.totalorder %v2664_v37, %v4107_v27 }
 0x250   : > { %4561 = vmatprep.subr.bf16.mxu0 %v4950_v40  ;;  %vm4146_vm9 = vmpackc.low %vm2689_vm8, %vm2688_vm7  ;;  %v2661_v38 = vadd.s32 32, %v2657_v25  ;;  %vm2683_vm2 = vcmp.eq.s32.totalorder %v2662_v39, %v4107_v27  ;;  %v2659_v40 = vadd.s32 16, %v2657_v25  ;;  %vm2681_vm5 = vcmp.eq.s32.totalorder %v2660_v41, %v4107_v27 }
 0x251   : > { %4536 = vmatpush3.bf16.msra.mxu1 %v4955_v45  ;;  %2792 = vperm.xlu1 %4924, %v2749_v32   ;;  %vm4148_vm12 = vmpackc.low %vm2687_vm11, %vm2686_vm10  ;;  %vm2678_vm7 = vcmp.eq.s32.totalorder %v2657_v25, %v4107_v27 }
 0x252   : > { %2795 = vperm.xlu0 %4923, %v2750_v63   ;;  %vm4150_vm15 = vmpackc.low %vm2685_vm14, %vm2684_vm13  ;;  %vm2682_vm1 = vcmp.eq.s32.totalorder %v2661_v38, %v4107_v27  ;;  %vm2680_vm4 = vcmp.eq.s32.totalorder %v2659_v40, %v4107_v27 }
 0x253   : > { %4562 = vmatpush3.bf16.msra.mxu0 %v4952_v42  ;;  %v2658_v42 = vadd.s32 8, %v2657_v25 }
 0x254   : > { %4563 = vmatprep.subr.bf16.mxu0 %v4954_v44  ;;  %2415 = vmatmul.mubr.bf16.vlgmr.msra.gmra.mxu1 %v4957_v47  ;;  %v4972_v44 = vld [vmem:[#allocation3 + $0x8] sm:$0xff]  }
 0x255   : > { %2422 = vmatprep.mubr.bf16.mxu1 %v4963_v51  ;;  %2786 = vperm.xlu1 %4924, %v2747_v3   ;;  %vm2679_vm8 = vcmp.eq.s32.totalorder %v2658_v42, %v4107_v27 }
 0x256   : > { %2789 = vperm.xlu0 %4923, %v2748_v1  }
 0x257   : > { %4564 = vmatpush3.bf16.msra.mxu0 %v4956_v46 }
 0x258   : > { %4644 = vmatprep.subr.msk.bf16.mxu0 %vm4142_vm3, %v5110_v28 }
 0x259   : > { %2780 = vperm.xlu1 %4924, %v2745_v5  }
 0x25a   : > { %2464 = vmatmul.mubr.bf16.vlgmr.msra.gmra.mxu0 %v4960_v49  ;;  %2783 = vperm.xlu0 %4923, %v2746_v2  }
 0x25b   : > { %2471 = vmatprep.mubr.bf16.mxu0 %v4965_v52  ;;  %4645 = vmatpush3.bf16.msk.msra.mxu0 %vm4142_vm3, %v5110_v28  ;;  %vm4152_vm3 = vmpackc.low %vm2683_vm2, %vm2682_vm1 }
 0x25c   : > { %2423 = vmatmul.mubr.bf16.gmra.mxu1 %v4967_v56  ;;  %4646 = vmatprep.subr.msk.bf16.mxu0 %vm4144_vm6, %v5110_v28 }
 0x25d   : > { %2774 = vperm.xlu1 %4924, %v2743_v7   ;;  %4640 = vmatprep.mubr.msk.bf16.mxu1 %vm934_vm0, %v4969_v24 }
 0x25e   : > { %2777 = vperm.xlu0 %4923, %v2744_v4  }
 0x25f   : > { %4647 = vmatpush3.bf16.msk.msra.mxu0 %vm4144_vm6, %v5110_v28  ;;  %vm4154_vm6 = vmpackc.low %vm2681_vm5, %vm2680_vm4 }
 0x260   : > { %4648 = vmatprep.subr.msk.bf16.mxu0 %vm4146_vm9, %v5110_v28 }
 0x261   : > { %2768 = vperm.xlu1 %4924, %v2741_v10  }
 0x262   : > { %2472 = vmatmul.mubr.bf16.gmra.mxu0 %v4968_v58  ;;  %2771 = vperm.xlu0 %4923, %v2742_v6  }
 0x263   : > { %4649 = vmatpush3.bf16.msk.msra.mxu0 %vm4146_vm9, %v5110_v28  ;;  %4660 = vmatprep.mubr.bf16.mxu0 %v4971_v43  ;;  %vm4156_vm9 = vmpackc.low %vm2679_vm8, %vm2678_vm7 }
 0x264   : > { %4650 = vmatprep.subr.msk.bf16.mxu0 %vm4148_vm12, %v5110_v28 }
 0x265   : > { %2762 = vperm.xlu1 %4924, %v2739_v12  }
 0x266   : > { %2765 = vperm.xlu0 %4923, %v2740_v8  }
 0x267   : > { %4651 = vmatpush3.bf16.msk.msra.mxu0 %vm4148_vm12, %v5110_v28 }
 0x268   : > { %4652 = vmatprep.subr.msk.bf16.mxu0 %vm4150_vm15, %v5110_v28 }
 0x269   : > { %2756 = vperm.xlu1 %4924, %v2737_v14  }
 0x26a   : > { %2759 = vperm.xlu0 %4923, %v2738_v11  }
 0x26b   : > { %4653 = vmatpush3.bf16.msk.msra.mxu0 %vm4150_vm15, %v5110_v28 }
 0x26c   : > { %4654 = vmatprep.subr.msk.bf16.mxu0 %vm4152_vm3, %v5110_v28 }
 0x26d   : > { %3022 = vperm.xlu1 %4924, %v3004_v16  }
 0x26e   : > { %2753 = vperm.xlu0 %4923, %v2736_v13  }
 0x26f   : > { %4655 = vmatpush3.bf16.msk.msra.mxu0 %vm4152_vm3, %v5110_v28 }
 0x270   : > { %4656 = vmatprep.subr.msk.bf16.mxu0 %vm4154_vm6, %v5110_v28 }
 0x271   : > { %3012 = vperm.xlu1 %4924, %v3002_v18  }
 0x272   : > { %3017 = vperm.xlu0 %4923, %v3003_v15  }
 0x273   : > { %4657 = vmatpush3.bf16.msk.msra.mxu0 %vm4154_vm6, %v5110_v28 }
 0x274   : > { %4658 = vmatprep.subr.msk.bf16.mxu0 %vm4156_vm9, %v5110_v28 }
 0x275   : > { %3147 = vperm.xlu1 %4924, %v3137_v20  }
 0x276   : > { %3007 = vperm.xlu0 %4923, %v3001_v17  }
 0x277   : > { %4659 = vmatpush3.bf16.msk.msra.mxu0 %vm4156_vm9, %v5110_v28 }
 0x279   : > { %3157 = vperm.xlu1 %4924, %v3139_v22  }
 0x27a   : > { %3142 = vperm.xlu0 %4923, %v3136_v19   ;;  %4661 = vmatmul.mubr.bf16.vlgmr.msra.gmra.mxu0 %v4972_v44 }
 0x27e   : > { %3152 = vperm.xlu0 %4923, %v3138_v21  }
 0x2b8   : > { %v2133_v47 = vpop.permute.xlu1 %2132 }
 0x2bc   : > { %v2138_v59 = vpop.permute.xlu1 %2137 }
 0x2bd   : > { %v2143_v1 = vpop.permute.xlu0 %2142 }
 0x2c0   : > { %v5704_v39 = vpop.permute.xlu1 %2537 }
 0x2c1   : > { %v2148_v18 = vpop.permute.xlu0 %2147 }
 0x2c4   : > { %v5708_v42 = vpop.permute.xlu1 %2547 }
 0x2c5   : > { %v5702_v38 = vpop.permute.xlu0 %2532 }
 0x2c9   : > { %v5706_v41 = vpop.permute.xlu0 %2542 }
 0x314   : > { %v4537_v45 = vpop.f32.mrf.mxu1 }
 0x316   : > { %v4538_v48 = vpop.f32.mrf.mxu1 }
 0x317   : > { %v4539_v49 = vadd.f32 %v4538_v48, %v4537_v45 }
 0x318   : > { %v4540_v51 = vpop.f32.mrf.mxu1 }
 0x319   : > { %v2417_v52 = vadd.f32 %v4539_v49, %v2133_v47  ;;  %v2799_v47 = vpop.permute.xlu1 %2798 }
 0x31a   : > { %v4565_v46 = vpop.f32.mrf.mxu0  ;;  %v4541_v55 = vpop.f32.mrf.mxu1 }
 0x31b   : > { %v4542_v57 = vadd.f32 %v4541_v55, %v4540_v51 }
 0x31c   : > { %v4566_v50 = vpop.f32.mrf.mxu0  ;;  %v4543_v60 = vpop.f32.mrf.mxu1 }
 0x31d   : > { %v4567_v53 = vadd.f32 %v4566_v50, %v4565_v46  ;;  %v2420_v62 = vadd.f32 %v4542_v57, %v2138_v59  ;;  %v2796_v46 = vpop.permute.xlu0 %2795 }
 0x31e   : > { %v4568_v54 = vpop.f32.mrf.mxu0  ;;  %v4544_v32 = vpop.f32.mrf.mxu1 }
 0x31f   : > { %v5699_v56 = vadd.f32 %v4567_v53, %v2417_v52  ;;  %v4545_v4 = vadd.f32 %v4544_v32, %v4543_v60 }
 0x320   : > { %v4569_v58 = vpop.f32.mrf.mxu0  ;;  %v4546_v6 = vpop.f32.mrf.mxu1 }
 0x321   : > { %v2484_v61 = vand.u32 2147483647, %v5699_v56  ;;  %v4570_v63 = vadd.f32 %v4569_v58, %v4568_v54  ;;  %v2425_v8 = vadd.f32 %v4545_v4, %v2143_v1  ;;  %v2480_v54 = vmax.f32 %v5699_v56, 0.0  ;;  %v2790_v60 = vpop.permute.xlu0 %2789 }
 0x322   : > { %v4571_v0 = vpop.f32.mrf.mxu0  ;;  %v4547_v13 = vpop.f32.mrf.mxu1 }
 0x323   : > { %v2488_v2 = vsub.f32 0.0, %v2484_v61  ;;  %v2469_v3 = vadd.f32 %v4570_v63, %v2420_v62  ;;  %v4548_v16 = vadd.f32 %v4547_v13, %v4546_v6  ;;  %v2793_v61 = vpop.permute.xlu1 %2792 }
 0x324   : > { %v4572_v5 = vpop.f32.mrf.mxu0 }
 0x325   : > { %v2485_v7 = vand.u32 2147483647, %v2469_v3  ;;  %v4573_v10 = vadd.f32 %v4572_v5, %v4571_v0  ;;  %v2492_v12 = vmul.f32 1.442695, %v2488_v2  ;;  %v2428_v21 = vadd.f32 %v4548_v16, %v2148_v18  ;;  %v2784_v5 = vpop.permute.xlu0 %2783 }
 0x326   : > { %v4574_v11 = vpop.f32.mrf.mxu0  ;;  %v2481_v50 = vmax.f32 %v2469_v3, 0.0  ;;  %v2735_v2 = vand.u32 127, %v2656_v23 }
 0x327   : > { %v2489_v14 = vsub.f32 0.0, %v2485_v7  ;;  %v2474_v15 = vadd.f32 %v4573_v10, %v2425_v8  ;;  %4977 = vpow2.f32 %v2492_v12  ;;  %v2787_v6 = vpop.permute.xlu1 %2786  ;;  %v4970_v7 = vld [vmem:[%s5285_s23 + $0x8] sm:$0xff]   ;;  %s3333_s23 = sld [smem:[#allocation6]] (%p3229_p4) }
 0x328   : > { %v4575_v17 = vpop.f32.mrf.mxu0  ;;  %vm2814_vm10 = vcmp.eq.s32.totalorder %v2735_v2, %v2796_v46  ;;  %vm2815_vm11 = vcmp.eq.s32.totalorder %v2735_v2, %v2799_v47  ;;  %vm2812_vm13 = vcmp.eq.s32.totalorder %v2735_v2, %v2790_v60  ;;  %vm2813_vm14 = vcmp.eq.s32.totalorder %v2735_v2, %v2793_v61 }
 0x329   : > { %v2494_v19 = vmul.f32 1.442695, %v2489_v14  ;;  %v2486_v20 = vand.u32 2147483647, %v2474_v15  ;;  %v4576_v22 = vadd.f32 %v4575_v17, %v4574_v11  ;;  %v2482_v51 = vmax.f32 %v2474_v15, 0.0  ;;  %vm4158_vm12 = vmpackc.low %vm2815_vm11, %vm2814_vm10  ;;  %v2778_v8 = vpop.permute.xlu0 %2777 }
 0x32a   : > { %vm4160_vm15 = vmpackc.low %vm2813_vm14, %vm2812_vm13  ;;  %vm2810_vm1 = vcmp.eq.s32.totalorder %v2735_v2, %v2784_v5  ;;  %vm2811_vm2 = vcmp.eq.s32.totalorder %v2735_v2, %v2787_v6  ;;  %vm2808_vm4 = vcmp.eq.s32.totalorder %v2735_v2, %v2778_v8 }
 0x32b   : > { %4979 = vpow2.f32 %v2494_v19  ;;  %v2490_v24 = vsub.f32 0.0, %v2486_v20  ;;  %v2477_v25 = vadd.f32 %v4576_v22, %v2428_v21  ;;  %v2781_v10 = vpop.permute.xlu1 %2780  ;;  %vm4162_vm3 = vmpackc.low %vm2811_vm2, %vm2810_vm1 }
 0x32c   : > { %vm2809_vm5 = vcmp.eq.s32.totalorder %v2735_v2, %v2781_v10 }
 0x32d   : > { %v2496_v9 = vmul.f32 1.442695, %v2490_v24  ;;  %v2487_v26 = vand.u32 2147483647, %v2477_v25  ;;  %v2483_v55 = vmax.f32 %v2477_v25, 0.0  ;;  %v2772_v23 = vpop.permute.xlu0 %2771  ;;  %vm4164_vm6 = vmpackc.low %vm2809_vm5, %vm2808_vm4 }
 0x32e   : > { %vm2806_vm7 = vcmp.eq.s32.totalorder %v2735_v2, %v2772_v23 }
 0x32f   : > { %4981 = vpow2.f32 %v2496_v9  ;;  %v2491_v27 = vsub.f32 0.0, %v2487_v26  ;;  %v2775_v11 = vpop.permute.xlu1 %2774 }
 0x330   : > { %vm2807_vm8 = vcmp.eq.s32.totalorder %v2735_v2, %v2775_v11 }
 0x331   : > { %v2498_v29 = vmul.f32 1.442695, %v2491_v27  ;;  %v2766_v12 = vpop.permute.xlu0 %2765  ;;  %vm4166_vm9 = vmpackc.low %vm2807_vm8, %vm2806_vm7 }
 0x332   : > { %vm2804_vm10 = vcmp.eq.s32.totalorder %v2735_v2, %v2766_v12  ;;  %v4973_v12 = vld [vmem:[%s5300_s19] sm:$0xff]  }
 0x333   : > { %4983 = vpow2.f32 %v2498_v29  ;;  %v2769_v13 = vpop.permute.xlu1 %2768  ;;  %4688 = vmatprep.mubr.msk.bf16.mxu0 %vm934_vm0, %v4973_v12 }
 0x334   : > { %v4978_v30 = vpop.eup %4977  ;;  %vm2805_vm11 = vcmp.eq.s32.totalorder %v2735_v2, %v2769_v13  ;;  %v2927_v13 = vld [vmem:[#allocation4 + $0x8] sm:$0xff] }
 0x335   : > { %v2500_v34 = vadd.f32 1.0, %v4978_v30  ;;  %v2760_v14 = vpop.permute.xlu0 %2759 }
 0x336   : > { %vm2802_vm13 = vcmp.eq.s32.totalorder %v2735_v2, %v2760_v14 }
 0x337   : > { %v2763_v15 = vpop.permute.xlu1 %2762 }
 0x338   : > { %v4980_v31 = vpop.eup %4979  ;;  %vm2803_vm14 = vcmp.eq.s32.totalorder %v2735_v2, %v2763_v15  ;;  %v2925_v15 = vld [vmem:[#allocation4] sm:$0xff] }
 0x339   : > { %v2501_v33 = vadd.f32 1.0, %v4980_v31  ;;  %v2754_v16 = vpop.permute.xlu0 %2753 }
 0x33a   : > { %vm2800_vm1 = vcmp.eq.s32.totalorder %v2735_v2, %v2754_v16 }
 0x33b   : > { %4985 = vlog2.f32 %v2501_v33  ;;  %v2757_v17 = vpop.permute.xlu1 %2756 }
 0x33c   : > { %v4982_v35 = vpop.eup %4981  ;;  %4987 = vlog2.f32 %v2500_v34  ;;  %vm2801_vm2 = vcmp.eq.s32.totalorder %v2735_v2, %v2757_v17 }
 0x33d   : > { %v2502_v36 = vadd.f32 1.0, %v4982_v35 }
 0x33f   : > { %4989 = vlog2.f32 %v2502_v36 }
 0x340   : > { %v4984_v37 = vpop.eup %4983 }
 0x341   : > { %v2503_v40 = vadd.f32 1.0, %v4984_v37 }
 0x343   : > { %4991 = vlog2.f32 %v2503_v40 }
 0x348   : > { %v4986_v43 = vpop.eup %4985 }
 0x349   : > { %v4988_v44 = vpop.eup %4987  ;;  %v2507_v49 = vmul.f32 0.6931472, %v4986_v43 }
 0x34a   : > { %v2505_v52 = vmul.f32 0.6931472, %v4988_v44 }
 0x34b   : > { %v2513_v59 = vadd.f32 %v2507_v49, %v2481_v50 }
 0x34c   : > { %v4990_v45 = vpop.eup %4989  ;;  %v2512_v63 = vadd.f32 %v2505_v52, %v2480_v54 }
 0x34d   : > { %v2509_v48 = vmul.f32 0.6931472, %v4990_v45  ;;  %v4096_v32 = vadd.f32 -0.6931472, %v2513_v59 }
 0x34e   : > { %v4095_v4 = vadd.f32 -0.6931472, %v2512_v63 }
 0x34f   : > { %v2514_v58 = vadd.f32 %v2509_v48, %v2482_v51  ;;  %v4662_v48 = vpop.f32.mrf.mxu0 }
 0x350   : > { %v4992_v53 = vpop.eup %4991  ;;  %v2524_v56 = vpack.c.bf16 %v4096_v32, %v4095_v4 }
 0x351   : > { %v2511_v57 = vmul.f32 0.6931472, %v4992_v53  ;;  %v4097_v0 = vadd.f32 -0.6931472, %v2514_v58 }
 0x353   : > { %v2515_v62 = vadd.f32 %v2511_v57, %v2483_v55  ;;  %v2906_v57 = vpop.f32.mrf.mxu0 }
 0x355   : > { %v4098_v1 = vadd.f32 -0.6931472, %v2515_v62  ;;  %v4663_v32 = vpop.f32.mrf.mxu0 }
 0x357   : > { %v2525_v3 = vpack.c.bf16 %v4098_v1, %v4097_v0 }
 0x359   : > { %4636 = vmatprep.subr.bf16.mxu1 %v2525_v3 }
 0x35a   : > { %4637 = vmatpush3.bf16.msra.mxu1 %v2525_v3 }
 0x35b   : > { %4638 = vmatprep.subr.bf16.mxu1 %v2524_v56 }
 0x35e   : > { %4639 = vmatpush3.bf16.msra.mxu1 %v2524_v56  ;;  %v2909_v56 = vpop.f32.mrf.mxu0 }
 0x35f   : > { %4664 = vmatprep.subr.msk.bf16.mxu1 %vm4158_vm12, %v5110_v28 }
 0x361   : > { %4641 = vmatmul.mubr.msk.bf16.vlgmr.msra.gmra.mxu1 %vm934_vm0, %v4970_v7 }
 0x362   : > { %4665 = vmatpush3.bf16.msk.msra.mxu1 %vm4158_vm12, %v5110_v28  ;;  %vm4168_vm12 = vmpackc.low %vm2805_vm11, %vm2804_vm10 }
 0x363   : > { %4666 = vmatprep.subr.msk.bf16.mxu1 %vm4160_vm15, %v5110_v28 }
 0x366   : > { %4667 = vmatpush3.bf16.msk.msra.mxu1 %vm4160_vm15, %v5110_v28  ;;  %vm4170_vm15 = vmpackc.low %vm2803_vm14, %vm2802_vm13 }
 0x367   : > { %4668 = vmatprep.subr.msk.bf16.mxu1 %vm4162_vm3, %v5110_v28 }
 0x36a   : > { %4669 = vmatpush3.bf16.msk.msra.mxu1 %vm4162_vm3, %v5110_v28  ;;  %vm4172_vm3 = vmpackc.low %vm2801_vm2, %vm2800_vm1  ;;  %vm5113_vm1 = vmmov (%p3229_p4), 0  }
 0x36b   : > { %4670 = vmatprep.subr.msk.bf16.mxu1 %vm4164_vm6, %v5110_v28 }
 0x36e   : > { %4671 = vmatpush3.bf16.msk.msra.mxu1 %vm4164_vm6, %v5110_v28 }
 0x36f   : > { %4672 = vmatprep.subr.msk.bf16.mxu1 %vm4166_vm9, %v5110_v28 }
 0x372   : > { %4673 = vmatpush3.bf16.msk.msra.mxu1 %vm4166_vm9, %v5110_v28 }
 0x373   : > { %4674 = vmatprep.subr.msk.bf16.mxu1 %vm4168_vm12, %v5110_v28 }
 0x376   : > { %4675 = vmatpush3.bf16.msk.msra.mxu1 %vm4168_vm12, %v5110_v28 }
 0x377   : > { %4676 = vmatprep.subr.msk.bf16.mxu1 %vm4170_vm15, %v5110_v28 }
 0x37a   : > { %4677 = vmatpush3.bf16.msk.msra.mxu1 %vm4170_vm15, %v5110_v28 }
 0x37b   : > { %4678 = vmatprep.subr.msk.bf16.mxu1 %vm4172_vm3, %v5110_v28 }
 0x37e   : > { %4679 = vmatpush3.bf16.msk.msra.mxu1 %vm4172_vm3, %v5110_v28 }
 0x421   : > { %v4642_v18 = vpop.f32.mrf.mxu1 }
 0x422   : > { %v2610_v19 = vadd.f32 %v4642_v18, %v5706_v41  ;;  %v2928_v18 = vld [vmem:[#allocation4 + $0x10] sm:$0xff] }
 0x423   : > { %v2601_v20 = vpop.f32.mrf.mxu1 }
 0x424   : > { %v2622_v21 = vand.u32 2147483647, %v2610_v19  ;;  %v2602_v22 = vadd.f32 %v2601_v20, %v5702_v38  ;;  %v2618_v54 = vmax.f32 %v2610_v19, 0.0 }
 0x425   : > { %v4643_v24 = vpop.f32.mrf.mxu1 }
 0x426   : > { %v2626_v25 = vsub.f32 0.0, %v2622_v21  ;;  %v2620_v9 = vand.u32 2147483647, %v2602_v22  ;;  %v2613_v26 = vadd.f32 %v4643_v24, %v5708_v42  ;;  %v2616_v53 = vmax.f32 %v2602_v22, 0.0  ;;  %v2926_v21 = vld [vmem:[#allocation4 + $0x18] sm:$0xff] }
 0x427   : > { %v2604_v27 = vpop.f32.mrf.mxu1 }
 0x428   : > { %v2632_v29 = vmul.f32 1.442695, %v2626_v25  ;;  %v2624_v30 = vsub.f32 0.0, %v2620_v9  ;;  %v2623_v31 = vand.u32 2147483647, %v2613_v26  ;;  %v2605_v33 = vadd.f32 %v2604_v27, %v5704_v39  ;;  %v4974_v27 = vld [vmem:[%s5300_s19 + $0x8] sm:$0xff]  }
 0x429   : > { %v2619_v55 = vmax.f32 %v2613_v26, 0.0 }
 0x42a   : > { %4993 = vpow2.f32 %v2632_v29  ;;  %v2628_v28 = vmul.f32 1.442695, %v2624_v30  ;;  %v2627_v34 = vsub.f32 0.0, %v2623_v31  ;;  %v2621_v35 = vand.u32 2147483647, %v2605_v33  ;;  %v4975_v29 = vld [vmem:[%s5310_s17] sm:$0xff]   ;;  %v3018_v30 = vpop.permute.xlu0 %3017 }
 0x42b   : > { %v2617_v63 = vmax.f32 %v2605_v33, 0.0  ;;  %v3023_v33 = vpop.permute.xlu1 %3022 }
 0x42c   : > { %4995 = vpow2.f32 %v2628_v28  ;;  %v2634_v36 = vmul.f32 1.442695, %v2627_v34  ;;  %v2625_v37 = vsub.f32 0.0, %v2621_v35 }
 0x42e   : > { %4997 = vpow2.f32 %v2634_v36  ;;  %v2630_v38 = vmul.f32 1.442695, %v2625_v37  ;;  %v3008_v34 = vpop.permute.xlu0 %3007 }
 0x430   : > { %4999 = vpow2.f32 %v2630_v38 }
 0x437   : > { %v4994_v40 = vpop.eup %4993 }
 0x438   : > { %v2638_v41 = vadd.f32 1.0, %v4994_v40 }
 0x439   : > { %v4996_v43 = vpop.eup %4995 }
 0x43a   : > { %5001 = vlog2.f32 %v2638_v41  ;;  %v2636_v42 = vadd.f32 1.0, %v4996_v43 }
 0x43b   : > { %v4998_v44 = vpop.eup %4997 }
 0x43c   : > { %5003 = vlog2.f32 %v2636_v42  ;;  %v2639_v45 = vadd.f32 1.0, %v4998_v44  ;;  %v3013_v44 = vpop.permute.xlu1 %3012 }
 0x43d   : > { %v5000_v46 = vpop.eup %4999 }
 0x43e   : > { %5005 = vlog2.f32 %v2639_v45  ;;  %v2637_v39 = vadd.f32 1.0, %v5000_v46 }
 0x440   : > { %5007 = vlog2.f32 %v2637_v39 }
 0x447   : > { %v5002_v47 = vpop.eup %5001 }
 0x448   : > { %v2645_v50 = vmul.f32 0.6931472, %v5002_v47 }
 0x449   : > { %v5004_v49 = vpop.eup %5003 }
 0x44a   : > { %v2641_v51 = vmul.f32 0.6931472, %v5004_v49  ;;  %v2650_v61 = vadd.f32 %v2645_v50, %v2618_v54 }
 0x44b   : > { %v5006_v52 = vpop.eup %5005 }
 0x44c   : > { %v2647_v58 = vmul.f32 0.6931472, %v5006_v52  ;;  %v2648_v59 = vadd.f32 %v2641_v51, %v2616_v53  ;;  %v4105_v4 = vadd.f32 -0.6931472, %v2650_v61 }
 0x44d   : > { %v5008_v60 = vpop.eup %5007 }
 0x44e   : > { %v2651_v62 = vadd.f32 %v2647_v58, %v2619_v55  ;;  %v2643_v0 = vmul.f32 0.6931472, %v5008_v60  ;;  %v4103_v2 = vadd.f32 -0.6931472, %v2648_v59  ;;  %v2923_v10 = vmul.f32 %v4662_v48, %v4105_v4 }
 0x450   : > { %v4106_v1 = vadd.f32 -0.6931472, %v2651_v62  ;;  %v2649_v3 = vadd.f32 %v2643_v0, %v2617_v63  ;;  %v2921_v7 = vmul.f32 %v4103_v2, %v2906_v57 }
 0x452   : > { %v4104_v5 = vadd.f32 -0.6931472, %v2649_v3  ;;  %v2924_v6 = vmul.f32 %v4663_v32, %v4106_v1 }
 0x454   : > { %v2922_v8 = vmul.f32 %v4104_v5, %v2909_v56  ;;  %v2930_v11 = vpack.c.bf16 %v2924_v6, %v2923_v10 }
 0x456   : > { %v2929_v23 = vpack.c.bf16 %v2922_v8, %v2921_v7 }
 0x458   : > { %4680 = vmatprep.mubr.bf16.mxu1 %v2929_v23 }
 0x459   : > { %4681 = vmatmul.mubr.bf16.vlgmr.msra.gmra.mxu1 %v2930_v11 }
 0x519   : > { %v4682_v14 = vpop.f32.mrf.mxu1 }
 0x51a   : > { %v2982_v16 = vadd.f32 %v4682_v14, %v2927_v13 }
 0x51b   : > { %v2965_v17 = vpop.f32.mrf.mxu1 }
 0x51c   : > { %2986 = vst [vmem:[#allocation4 + $0x8] sm:$0xff] %v2982_v16  ;;  %v2980_v19 = vadd.f32 %v2965_v17, %v2925_v15 }
 0x51d   : > { %v4683_v20 = vpop.f32.mrf.mxu1 }
 0x51e   : > { %2984 = vst [vmem:[#allocation4] sm:$0xff] %v2980_v19  ;;  %v2983_v22 = vadd.f32 %v4683_v20, %v2928_v18  ;;  %v3143_v20 = vpop.permute.xlu0 %3142 }
 0x51f   : > { %v2968_v24 = vpop.f32.mrf.mxu1 }
 0x520   : > { %2987 = vst [vmem:[#allocation4 + $0x10] sm:$0xff] %v2983_v22  ;;  %v2981_v25 = vadd.f32 %v2968_v24, %v2926_v21  ;;  %v3000_v9 = vpack.c.bf16 %v2983_v22, %v2982_v16  ;;  %v3148_v21 = vpop.permute.xlu1 %3147 }
 0x522   : > { %2985 = vst [vmem:[#allocation4 + $0x18] sm:$0xff] %v2981_v25  ;;  %4684 = vmatprep.subr.bf16.mxu0 %v3000_v9  ;;  %v2999_v26 = vpack.c.bf16 %v2981_v25, %v2980_v19  ;;  %v4976_v19 = vld [vmem:[%s5310_s17 + $0x8] sm:$0xff]   ;;  %v3153_v22 = vpop.permute.xlu0 %3152 }
 0x523   : > { %4685 = vmatpush3.bf16.msra.mxu0 %v3000_v9 }
 0x524   : > { %4686 = vmatprep.subr.bf16.mxu0 %v2999_v26 }
 0x527   : > { %4687 = vmatpush3.bf16.msra.mxu0 %v2999_v26 }
 0x52a   : > { %4689 = vmatmul.mubr.msk.bf16.vlgmr.msra.gmra.mxu0 %vm934_vm0, %v4974_v27  ;;  %v3158_v27 = vpop.permute.xlu1 %3157 }
 0x52b   : > { %4696 = vmatprep.mubr.msk.bf16.mxu0 %vm934_vm0, %v4975_v29 }
 0x5ea   : > { %v4690_v31 = vpop.f32.mrf.mxu0 }
 0x5eb   : > { %v3084_v28 = vadd.f32 %v4690_v31, %v3018_v30 }
 0x5ec   : > { %v3075_v35 = vpop.f32.mrf.mxu0 }
 0x5ed   : > { %v3096_v36 = vand.u32 2147483647, %v3084_v28  ;;  %v3076_v37 = vadd.f32 %v3075_v35, %v3008_v34  ;;  %v3092_v32 = vmax.f32 %v3084_v28, 0.0 }
 0x5ee   : > { %v4691_v38 = vpop.f32.mrf.mxu0 }
 0x5ef   : > { %v3100_v40 = vsub.f32 0.0, %v3096_v36  ;;  %v3094_v41 = vand.u32 2147483647, %v3076_v37  ;;  %v3087_v43 = vadd.f32 %v4691_v38, %v3023_v33  ;;  %v3090_v56 = vmax.f32 %v3076_v37, 0.0 }
 0x5f0   : > { %v3078_v42 = vpop.f32.mrf.mxu0  ;;  %v5111_v38 = vmov (%p3229_p4), 0  }
 0x5f1   : > { %v3106_v45 = vmul.f32 1.442695, %v3100_v40  ;;  %v3098_v46 = vsub.f32 0.0, %v3094_v41  ;;  %v3097_v39 = vand.u32 2147483647, %v3087_v43  ;;  %v3079_v47 = vadd.f32 %v3078_v42, %v3013_v44  ;;  %5025 = vset.pattern.permute.xlu0 (%p3229_p4), %v5111_v38  ;;  %5026 = vset.pattern.permute.xlu1 (%p3229_p4), %v5111_v38  ;;  %v5027_v41 = vld [vmem:[%s5873_s15] sm:$0xff] (%p3229_p4)  }
 0x5f2   : > { %v3093_v5 = vmax.f32 %v3087_v43, 0.0  ;;  %v3246_v43 = vld [vmem:[%s5874_s16 + $0x10] sm:$0xff] (%p3229_p4)  ;;  %v3244_v42 = vld [vmem:[%s5874_s16] sm:$0xff] (%p3229_p4)  ;;  %v3247_v44 = vld [vmem:[%s5874_s16 + $0x18] sm:$0xff] (%p3229_p4) }
 0x5f3   : > { %5009 = vpow2.f32 %v3106_v45  ;;  %v3102_v48 = vmul.f32 1.442695, %v3098_v46  ;;  %v3101_v49 = vsub.f32 0.0, %v3097_v39  ;;  %v3095_v50 = vand.u32 2147483647, %v3079_v47  ;;  %3260 = vperm.xlu0 (%p3229_p4), %5025, %v3246_v43   ;;  %3250 = vperm.xlu1 (%p3229_p4), %5026, %v3244_v42   ;;  %v5028_v45 = vld [vmem:[%s5873_s15 + $0x8] sm:$0xff] (%p3229_p4)  }
 0x5f4   : > { %v3091_v23 = vmax.f32 %v3079_v47, 0.0  ;;  %v3245_v46 = vld [vmem:[%s5874_s16 + $0x8] sm:$0xff] (%p3229_p4)  ;;  %v4197_v39 = vld [vmem:[%s5874_s16 + $0x30] sm:$0xff] (%p3229_p4)  ;;  %v4198_v47 = vld [vmem:[%s5874_s16 + $0x38] sm:$0xff] (%p3229_p4) }
 0x5f5   : > { %5011 = vpow2.f32 %v3102_v48  ;;  %v3108_v51 = vmul.f32 1.442695, %v3101_v49  ;;  %v3099_v52 = vsub.f32 0.0, %v3095_v50  ;;  %v4195_v48 = vld [vmem:[%s5874_s16 + $0x20] sm:$0xff] (%p3229_p4)  ;;  %v4196_v49 = vld [vmem:[%s5874_s16 + $0x28] sm:$0xff] (%p3229_p4)  ;;  %v4210_v50 = vld [vmem:[%s5874_s16 + $0x50] sm:$0xff] (%p3229_p4) }
 0x5f7   : > { %5013 = vpow2.f32 %v3108_v51  ;;  %v3104_v53 = vmul.f32 1.442695, %v3099_v52  ;;  %3265 = vperm.xlu0 (%p3229_p4), %5025, %v3247_v44   ;;  %3255 = vperm.xlu1 (%p3229_p4), %5026, %v3245_v46   ;;  %v4211_v51 = vld [vmem:[%s5874_s16 + $0x58] sm:$0xff] (%p3229_p4)  ;;  %v4208_v52 = vld [vmem:[%s5874_s16 + $0x40] sm:$0xff] (%p3229_p4)  ;;  %v5033_v46 = vld [vmem:[%s5873_s15 + $0x30] sm:$0xff] (%p3229_p4)  }
 0x5f9   : > { %5015 = vpow2.f32 %v3104_v53  ;;  %v4209_v53 = vld [vmem:[%s5874_s16 + $0x48] sm:$0xff] (%p3229_p4) }
 0x5fb   : > { %3371 = vperm.xlu0 (%p3229_p4), %5025, %v4197_v39   ;;  %3376 = vperm.xlu1 (%p3229_p4), %5026, %v4198_v47  }
 0x5ff   : > { %3361 = vperm.xlu0 (%p3229_p4), %5025, %v4195_v48   ;;  %3366 = vperm.xlu1 (%p3229_p4), %5026, %v4196_v49  }
 0x600   : > { %v5010_v54 = vpop.eup %5009 }
 0x601   : > { %v3112_v55 = vadd.f32 1.0, %v5010_v54  ;;  %v4223_v54 = vld [vmem:[%s5874_s16 + $0x70] sm:$0xff] (%p3229_p4) }
 0x602   : > { %v5012_v57 = vpop.eup %5011 }
 0x603   : > { %5017 = vlog2.f32 %v3112_v55  ;;  %v3110_v58 = vadd.f32 1.0, %v5012_v57  ;;  %3482 = vperm.xlu0 (%p3229_p4), %5025, %v4210_v50   ;;  %3487 = vperm.xlu1 (%p3229_p4), %5026, %v4211_v51   ;;  %v4224_v55 = vld [vmem:[%s5874_s16 + $0x78] sm:$0xff] (%p3229_p4)  ;;  %v4221_v57 = vld [vmem:[%s5874_s16 + $0x60] sm:$0xff] (%p3229_p4)  ;;  %v3560_v51 = vstv (%p3229_p4), %s4216_s24 }
 0x604   : > { %v5014_v59 = vpop.eup %5013 }
 0x605   : > { %5019 = vlog2.f32 %v3110_v58  ;;  %v3113_v60 = vadd.f32 1.0, %v5014_v59  ;;  %v4222_v58 = vld [vmem:[%s5874_s16 + $0x68] sm:$0xff] (%p3229_p4)  ;;  %v3683_v59 = vld [vmem:[%s5876_s18] sm:$0xff] (%p3229_p4) }
 0x606   : > { %v5016_v61 = vpop.eup %5015 }
 0x607   : > { %5021 = vlog2.f32 %v3113_v60  ;;  %v3111_v62 = vadd.f32 1.0, %v5016_v61  ;;  %3472 = vperm.xlu0 (%p3229_p4), %5025, %v4208_v52   ;;  %3477 = vperm.xlu1 (%p3229_p4), %5026, %v4209_v53   ;;  %v5029_v60 = vld [vmem:[%s5873_s15 + $0x10] sm:$0xff] (%p3229_p4)  }
 0x608   : > { %4712 = vmatprep.mubr.msk.bf16.mxu1 (%p3229_p4), %vm934_vm0, %v5029_v60 }
 0x609   : > { %5023 = vlog2.f32 %v3111_v62 }
 0x60b   : > { %3593 = vperm.xlu0 (%p3229_p4), %5025, %v4223_v54   ;;  %3598 = vperm.xlu1 (%p3229_p4), %5026, %v4224_v55  }
 0x60f   : > { %3583 = vperm.xlu0 (%p3229_p4), %5025, %v4221_v57   ;;  %3588 = vperm.xlu1 (%p3229_p4), %5026, %v4222_v58  }
 0x610   : > { %v5018_v63 = vpop.eup %5017 }
 0x611   : > { %v3119_v0 = vmul.f32 0.6931472, %v5018_v63 }
 0x612   : > { %v5020_v1 = vpop.eup %5019 }
 0x613   : > { %v3115_v3 = vmul.f32 0.6931472, %v5020_v1  ;;  %v3124_v4 = vadd.f32 %v3119_v0, %v3092_v32  ;;  %3686 = vperm.xlu0 (%p3229_p4), %5025, %v3683_v59   ;;  %v3338_v1 = vstv (%p3229_p4), %s3333_s23 }
 0x614   : > { %v5022_v2 = vpop.eup %5021 }
 0x615   : > { %v3121_v6 = vmul.f32 0.6931472, %v5022_v2  ;;  %v3122_v10 = vadd.f32 %v3115_v3, %v3090_v56  ;;  %v4180_v12 = vadd.f32 -0.6931472, %v3124_v4 }
 0x616   : > { %v5024_v7 = vpop.eup %5023 }
 0x617   : > { %v3125_v8 = vadd.f32 %v3121_v6, %v3093_v5  ;;  %v3117_v11 = vmul.f32 0.6931472, %v5024_v7  ;;  %v4178_v16 = vadd.f32 -0.6931472, %v3122_v10 }
 0x619   : > { %v4181_v13 = vadd.f32 -0.6931472, %v3125_v8  ;;  %v3123_v14 = vadd.f32 %v3117_v11, %v3091_v23 }
 0x61b   : > { %v3135_v15 = vpack.c.bf16 %v4181_v13, %v4180_v12  ;;  %v4179_v17 = vadd.f32 -0.6931472, %v3123_v14 }
 0x61d   : > { %4692 = vmatprep.subr.bf16.mxu0 %v3135_v15  ;;  %v3134_v18 = vpack.c.bf16 %v4179_v17, %v4178_v16 }
 0x61e   : > { %4693 = vmatpush3.bf16.msra.mxu0 %v3135_v15 }
 0x61f   : > { %4694 = vmatprep.subr.bf16.mxu0 %v3134_v18 }
 0x622   : > { %4695 = vmatpush3.bf16.msra.mxu0 %v3134_v18  ;;  %v5030_v18 = vld [vmem:[%s5873_s15 + $0x18] sm:$0xff] (%p3229_p4)  }
 0x625   : > { %4697 = vmatmul.mubr.msk.bf16.vlgmr.msra.gmra.mxu0 %vm934_vm0, %v4976_v19  ;;  %v5031_v19 = vld [vmem:[%s5873_s15 + $0x20] sm:$0xff] (%p3229_p4)  }
 0x626   : > { %4704 = vmatprep.mubr.msk.bf16.mxu0 (%p3229_p4), %vm934_vm0, %v5027_v41 }
 0x66e   : > { %v3261_v61 = vpop.permute.xlu0 (%p3229_p4), %3260  ;;  %v3251_v62 = vpop.permute.xlu1 (%p3229_p4), %3250 }
 0x672   : > { %v3266_v3 = vpop.permute.xlu0 (%p3229_p4), %3265  ;;  %v3256_v56 = vpop.permute.xlu1 (%p3229_p4), %3255 }
 0x6e5   : > { %v4698_v24 = vpop.f32.mrf.mxu0 }
 0x6e6   : > { %v3219_v25 = vadd.f32 %v4698_v24, %v3153_v22 }
 0x6e7   : > { %v3210_v9 = vpop.f32.mrf.mxu0 }
 0x6e8   : > { %3227 = vst [vmem:[#allocation2 + $0x18] sm:$0xff] %v3219_v25  ;;  %v3211_v26 = vadd.f32 %v3210_v9, %v3143_v20  ;;  %v3372_v20 = vpop.permute.xlu0 (%p3229_p4), %3371  ;;  %v3449_v9 = vstv (%p3229_p4), %s4203_s26 }
 0x6e9   : > { %v4699_v29 = vpop.f32.mrf.mxu0 }
 0x6ea   : > { %3225 = vst [vmem:[#allocation2 + $0x10] sm:$0xff] %v3211_v26  ;;  %v3222_v30 = vadd.f32 %v4699_v29, %v3158_v27  ;;  %3233 = sbr.rel (!%p3229_p4) target bundleno = 2836 (0xb14), region = 124 }
 0x6eb   : > { %v3213_v31 = vpop.f32.mrf.mxu0 }
 0x6ec   : > { %3228 = vst [vmem:[#allocation2 + $0x8] sm:$0xff] %v3222_v30  ;;  %v3214_v33 = vadd.f32 %v3213_v31, %v3148_v21  ;;  %v3377_v21 = vpop.permute.xlu1 (%p3229_p4), %3376  ;;  %v3362_v25 = vpop.permute.xlu0 (%p3229_p4), %3361 }
 0x6ee   : > { %3226 = vst [vmem:[#allocation2] sm:$0xff] %v3214_v33 }
 0x6ef   : > { %v3236_v28 = vld [vmem:[#allocation2 + $0x18] sm:$0xff] }
 0x6f0   : > { %v3367_v33 = vpop.permute.xlu1 %3366  ;;  %v3483_v39 = vpop.permute.xlu0 %3482 }
 0x6f1   : > { %v3234_v35 = vld [vmem:[#allocation2 + $0x10] sm:$0xff] }
 0x6f3   : > { %v3237_v34 = vld [vmem:[#allocation2 + $0x8] sm:$0xff] }
 0x6f4   : > { %v3243_v36 = vpack.c.bf16 %v3237_v34, %v3236_v28  ;;  %v3488_v47 = vpop.permute.xlu1 %3487  ;;  %v3473_v50 = vpop.permute.xlu0 %3472 }
 0x6f5   : > { %v3235_v37 = vld [vmem:[#allocation2] sm:$0xff] }
 0x6f6   : > { %v3242_v40 = vpack.c.bf16 %v3235_v37, %v3234_v35  ;;  %4700 = vmatprep.subr.bf16.mxu0 %v3243_v36 }
 0x6f7   : > { %4701 = vmatpush3.bf16.msra.mxu0 %v3243_v36 }
 0x6f8   : > { %4702 = vmatprep.subr.bf16.mxu0 %v3242_v40  ;;  %v3478_v58 = vpop.permute.xlu1 %3477 }
 0x6fb   : > { %4703 = vmatpush3.bf16.msra.mxu0 %v3242_v40 }
 0x6fe   : > { %4705 = vmatmul.mubr.msk.bf16.vlgmr.msra.gmra.mxu0 %vm934_vm0, %v5028_v45  ;;  %v5032_v45 = vld [vmem:[%s5873_s15 + $0x28] sm:$0xff]  }
 0x6ff   : > { %4720 = vmatprep.mubr.msk.bf16.mxu0 %vm934_vm0, %v5031_v19 }
 0x7be   : > { %v4706_v63 = vpop.f32.mrf.mxu0 }
 0x7bf   : > { %v3327_v0 = vadd.f32 %v4706_v63, %v3261_v61 }
 0x7c0   : > { %v3318_v32 = vpop.f32.mrf.mxu0 }
 0x7c1   : > { %v3319_v2 = vadd.f32 %v3318_v32, %v3251_v62  ;;  %v3341_v5 = vmul.f32 %v3338_v1, %v3327_v0  ;;  %vm3336_vm4 = vcmp.ge.f32.partialorder %v3327_v0, 0.0 }
 0x7c2   : > { %v4707_v4 = vpop.f32.mrf.mxu0 }
 0x7c3   : > { %v3330_v6 = vadd.f32 %v4707_v4, %v3266_v3  ;;  %v3339_v8 = vmul.f32 %v3338_v1, %v3319_v2  ;;  %vm3334_vm6 = vcmp.ge.f32.partialorder %v3319_v2, 0.0  ;;  %v3345_v12 = vsel %vm3336_vm4, %v3327_v0, %v3341_v5  ;;  %v5034_v5 = vld [vmem:[%s5873_s15 + $0x38] sm:$0xff]  }
 0x7c4   : > { %v3321_v7 = vpop.f32.mrf.mxu0 }
 0x7c5   : > { %v3342_v10 = vmul.f32 %v3338_v1, %v3330_v6  ;;  %v3322_v23 = vadd.f32 %v3321_v7, %v3256_v56  ;;  %vm3337_vm5 = vcmp.ge.f32.partialorder %v3330_v6, 0.0  ;;  %v3343_v15 = vsel %vm3334_vm6, %v3319_v2, %v3339_v8  ;;  %v3594_v56 = vpop.permute.xlu0 %3593  ;;  %v3599_v7 = vpop.permute.xlu1 %3598 }
 0x7c7   : > { %vm3335_vm7 = vcmp.ge.f32.partialorder %v3322_v23, 0.0  ;;  %v3340_v11 = vmul.f32 %v3338_v1, %v3322_v23  ;;  %v3346_v13 = vsel %vm3337_vm5, %v3330_v6, %v3342_v10  ;;  %v5112_v6 = vmov 0.0  }
 0x7c8   : > { %v3353_v14 = vpack.c.bf16 %v3346_v13, %v3345_v12 }
 0x7c9   : > { %v3344_v16 = vsel %vm3335_vm7, %v3322_v23, %v3340_v11  ;;  %v3671_v23 = vstv %s4229_s21  ;;  %v3584_v12 = vpop.permute.xlu0 %3583 }
 0x7ca   : > { %4708 = vmatprep.subr.bf16.mxu1 %v3353_v14  ;;  %v3352_v17 = vpack.c.bf16 %v3344_v16, %v3343_v15 }
 0x7cb   : > { %4709 = vmatpush3.bf16.msra.mxu1 %v3353_v14 }
 0x7cc   : > { %4710 = vmatprep.subr.bf16.mxu1 %v3352_v17 }
 0x7cf   : > { %4711 = vmatpush3.bf16.msra.mxu1 %v3352_v17  ;;  %v3589_v17 = vpop.permute.xlu1 %3588 }
 0x7d2   : > { %4713 = vmatmul.mubr.msk.bf16.vlgmr.msra.gmra.mxu1 %vm934_vm0, %v5030_v18 }
 0x7d3   : > { %4728 = vmatprep.mubr.msk.bf16.mxu1 %vm934_vm0, %v5033_v46 }
 0x892   : > { %v4714_v22 = vpop.f32.mrf.mxu1 }
 0x893   : > { %v3438_v24 = vadd.f32 %v4714_v22, %v3372_v20 }
 0x894   : > { %v3429_v26 = vpop.f32.mrf.mxu1 }
 0x895   : > { %v3430_v27 = vadd.f32 %v3429_v26, %v3362_v25  ;;  %v3452_v30 = vmul.f32 %v3449_v9, %v3438_v24  ;;  %vm3447_vm8 = vcmp.ge.f32.partialorder %v3438_v24, 0.0 }
 0x896   : > { %v4715_v29 = vpop.f32.mrf.mxu1 }
 0x897   : > { %v3441_v31 = vadd.f32 %v4715_v29, %v3377_v21  ;;  %v3450_v34 = vmul.f32 %v3449_v9, %v3430_v27  ;;  %vm3445_vm10 = vcmp.ge.f32.partialorder %v3430_v27, 0.0  ;;  %v3456_v38 = vsel %vm3447_vm8, %v3438_v24, %v3452_v30  ;;  %v3680_v30 = vld [vmem:[%s5914_s22] sm:$0xf] }
 0x898   : > { %v3432_v28 = vpop.f32.mrf.mxu1 }
 0x899   : > { %vm3448_vm9 = vcmp.ge.f32.partialorder %v3441_v31, 0.0  ;;  %v3453_v35 = vmul.f32 %v3449_v9, %v3441_v31  ;;  %v3433_v36 = vadd.f32 %v3432_v28, %v3367_v33  ;;  %v3454_v43 = vsel %vm3445_vm10, %v3430_v27, %v3450_v34 }
 0x89b   : > { %vm3446_vm11 = vcmp.ge.f32.partialorder %v3433_v36, 0.0  ;;  %v3451_v37 = vmul.f32 %v3449_v9, %v3433_v36  ;;  %v3457_v40 = vsel %vm3448_vm9, %v3441_v31, %v3453_v35  ;;  %v3687_v31 = vpop.permute.xlu0 %3686 }
 0x89c   : > { %v3464_v41 = vpack.c.bf16 %v3457_v40, %v3456_v38 }
 0x89d   : > { %v3455_v42 = vsel %vm3446_vm11, %v3433_v36, %v3451_v37 }
 0x89e   : > { %4716 = vmatprep.subr.bf16.mxu0 %v3464_v41  ;;  %v3463_v44 = vpack.c.bf16 %v3455_v42, %v3454_v43 }
 0x89f   : > { %4717 = vmatpush3.bf16.msra.mxu0 %v3464_v41 }
 0x8a0   : > { %4718 = vmatprep.subr.bf16.mxu0 %v3463_v44 }
 0x8a3   : > { %4719 = vmatpush3.bf16.msra.mxu0 %v3463_v44 }
 0x8a4   : > { %4732 = vmatprep.subr.bf16.mxu0 %v5112_v6 }
 0x8a6   : > { %4721 = vmatmul.mubr.msk.bf16.vlgmr.msra.gmra.mxu0 %vm934_vm0, %v5032_v45 }
 0x8a7   : > { %4736 = vmatprep.mubr.msk.bf16.mxu0 %vm5113_vm1, %v5112_v6 }
 0x966   : > { %v4722_v48 = vpop.f32.mrf.mxu0 }
 0x967   : > { %v3549_v49 = vadd.f32 %v4722_v48, %v3483_v39 }
 0x968   : > { %v3540_v52 = vpop.f32.mrf.mxu0 }
 0x969   : > { %v3541_v53 = vadd.f32 %v3540_v52, %v3473_v50  ;;  %v3563_v55 = vmul.f32 %v3560_v51, %v3549_v49  ;;  %vm3558_vm12 = vcmp.ge.f32.partialorder %v3549_v49, 0.0 }
 0x96a   : > { %v4723_v54 = vpop.f32.mrf.mxu0 }
 0x96b   : > { %v3552_v57 = vadd.f32 %v4723_v54, %v3488_v47  ;;  %v3561_v60 = vmul.f32 %v3560_v51, %v3541_v53  ;;  %vm3556_vm14 = vcmp.ge.f32.partialorder %v3541_v53, 0.0  ;;  %v3567_v0 = vsel %vm3558_vm12, %v3549_v49, %v3563_v55 }
 0x96c   : > { %v3543_v59 = vpop.f32.mrf.mxu0 }
 0x96d   : > { %vm3559_vm13 = vcmp.ge.f32.partialorder %v3552_v57, 0.0  ;;  %v3564_v61 = vmul.f32 %v3560_v51, %v3552_v57  ;;  %v3544_v62 = vadd.f32 %v3543_v59, %v3478_v58  ;;  %v3565_v2 = vsel %vm3556_vm14, %v3541_v53, %v3561_v60 }
 0x96f   : > { %vm3557_vm15 = vcmp.ge.f32.partialorder %v3544_v62, 0.0  ;;  %v3562_v63 = vmul.f32 %v3560_v51, %v3544_v62  ;;  %v3568_v1 = vsel %vm3559_vm13, %v3552_v57, %v3564_v61 }
 0x970   : > { %v3575_v32 = vpack.c.bf16 %v3568_v1, %v3567_v0 }
 0x971   : > { %v3566_v3 = vsel %vm3557_vm15, %v3544_v62, %v3562_v63 }
 0x972   : > { %4724 = vmatprep.subr.bf16.mxu1 %v3575_v32  ;;  %v3574_v4 = vpack.c.bf16 %v3566_v3, %v3565_v2 }
 0x973   : > { %4725 = vmatpush3.bf16.msra.mxu1 %v3575_v32 }
 0x974   : > { %4726 = vmatprep.subr.bf16.mxu1 %v3574_v4 }
 0x977   : > { %4727 = vmatpush3.bf16.msra.mxu1 %v3574_v4 }
 0x97a   : > { %4729 = vmatmul.mubr.msk.bf16.vlgmr.msra.gmra.mxu1 %vm934_vm0, %v5034_v5 }
 0xa3a   : > { %v4730_v8 = vpop.f32.mrf.mxu1 }
 0xa3b   : > { %v3660_v10 = vadd.f32 %v4730_v8, %v3594_v56 }
 0xa3c   : > { %v3651_v11 = vpop.f32.mrf.mxu1 }
 0xa3d   : > { %v3674_v13 = vmul.f32 %v3671_v23, %v3660_v10  ;;  %vm3669_vm2 = vcmp.ge.f32.partialorder %v3660_v10, 0.0  ;;  %v3652_v15 = vadd.f32 %v3651_v11, %v3584_v12 }
 0xa3e   : > { %v4731_v14 = vpop.f32.mrf.mxu1 }
 0xa3f   : > { %v3663_v16 = vadd.f32 %v4731_v14, %v3599_v7  ;;  %v3678_v21 = vsel %vm3669_vm2, %v3660_v10, %v3674_v13  ;;  %v3672_v22 = vmul.f32 %v3671_v23, %v3652_v15  ;;  %vm3667_vm5 = vcmp.ge.f32.partialorder %v3652_v15, 0.0 }
 0xa40   : > { %v3654_v18 = vpop.f32.mrf.mxu1 }
 0xa41   : > { %vm3670_vm3 = vcmp.ge.f32.partialorder %v3663_v16, 0.0  ;;  %v3675_v19 = vmul.f32 %v3671_v23, %v3663_v16  ;;  %v3655_v20 = vadd.f32 %v3654_v18, %v3589_v17  ;;  %v3676_v27 = vsel %vm3667_vm5, %v3652_v15, %v3672_v22 }
 0xa43   : > { %v3679_v24 = vsel %vm3670_vm3, %v3663_v16, %v3675_v19  ;;  %vm3668_vm4 = vcmp.ge.f32.partialorder %v3655_v20, 0.0  ;;  %v3673_v25 = vmul.f32 %v3671_v23, %v3655_v20 }
 0xa44   : > { %v3682_v9 = vpack.c.bf16 %v3679_v24, %v3678_v21 }
 0xa45   : > { %v3677_v26 = vsel %vm3668_vm4, %v3655_v20, %v3673_v25 }
 0xa46   : > { %4733 = vmatpush3.bf16.msra.mxu0 %v3682_v9  ;;  %v3681_v29 = vpack.c.bf16 %v3677_v26, %v3676_v27 }
 0xa47   : > { %4734 = vmatprep.subr.bf16.mxu0 %v5112_v6 }
 0xa4a   : > { %4735 = vmatpush3.bf16.msra.mxu0 %v3681_v29 }
 0xa4d   : > { %4737 = vmatmul.mubr.msk.bf16.vlgmr.msra.gmra.mxu0 %vm934_vm0, %v3680_v30 }
 0xb0d   : > { %v3726_v33 = vpop.f32.mrf.mxu0 }
 0xb0e   : > { %v3727_v28 = vadd.f32 %v3726_v33, %v3687_v31 }
 0xb0f   : > { %v4738_v34 = vpop.f32.mrf.mxu0 }
 0xb10   : > { %3732 = vst [vmem:[#allocation9] sm:$0xff] %v3727_v28 }
 0xb11   : > { %v3729_v35 = vpop.f32.mrf.mxu0 }
 0xb13   : > { %v4739_v36 = vpop.f32.mrf.mxu0 }
 0xb14 PF: > { %s5915_s25 = sld [smem:[#allocation13_spill]]  ;;  %s5114_s23 = smov [#allocation9]  }
 0xb15   : > { %s3740_s19 = sshll.u32 %s5114_s23, 4  ;;  %s3741_s19 = int_to_ptr.vmem [resolvable:$true] %s3740_s19 }
 0xb16   : > { %s5050_s17 = scalar_lea.vmem %s3741_s19, 128  ;;  %p5057_p9 = scmp.lt.s32.totalorder %s3741_s19, %s3741_s19 }
 0xb17   : > { %p5051_p6 = scmp.ne.s32.totalorder %s3741_s19, %s5050_s17  ;;  %p5058_p10 = scmp.lt.s32.totalorder %s5050_s17, %s5050_s17 }
 0xb19   : > { %p5059_p11 = por %p5058_p10, %p5057_p9 }
 0xb1a   : > { %s5916_s20 = sadd.s32 4294967295, %s5915_s25  }
 0xb1b   : > { %p5834_p5 = scmp.eq.s32.totalorder %s5916_s20, 1 }
 0xb1d   : > { %p5052_p7 = pnand %p5051_p6, %p5834_p5 }
 0xb1f   : > { %p5053_p8 = pneg %p5052_p7 }
 0xb21   : > { %p5060_p12 = pnand %p5059_p11, %p5053_p8 }
 0xb23   : > { %5063 = shalt.err (!%p5060_p12)
}
 0xb24   : > { %s5918_s26 = sld [smem:[#allocation27_spill]] }
 0xb2a   : > { %4745 = dma.vmem_to_hbm [thread:$0]  (%p5834_p5), %s3741_s19, 128, %s5918_s26, [#allocation7]  }
 0xb2b   : > { %5091 = dma.done.wait (%p5834_p5), [#allocation7], 128  }
 0xb2c   : > { %5093 = vsyncadd (%p5834_p5), [#allocation7], 4294967168 }
 0xb2d PF: > { %s5919_s5 = sld [smem:[#allocation13_spill]] }
 0xb2e   : > { %s5920_s1 = sld [smem:[#allocation12_spill]] }
 0xb2f   : > { %s5921_s22 = sld [smem:[#allocation14_spill]] }
 0xb33   : > { %s32_s23 = sadd.s32 1, %s5919_s5  }
 0xb34   : > { %p29_p13 = scmp.ge.s32.totalorder %s32_s23, 4  }
 0xb36   :  { %31 = sbr.rel (!%p29_p13) target bundleno = 17 (0x11), region = 196 }
 0xb3b   :  { %3753 = vsyncpa [#allocation7], 1 }
 0xb3c   :  { %3755 = vsyncpa [#allocation7 + $0x1], 1 }
 0xb3d   :  { %3756 = vsyncpa [#allocation8], 1 }
 0xb3e   :  { %3758 = vsyncpa [#allocation8 + $0x1], 1 }

</bundles_post_ra>
